<compile_context>
chip_gen: v7x
topology: tpu7x:2x2x1
jax: 0.10.0
libtpu: 0.0.40
codegen_flags: <defaults>
</compile_context>

<pallas_src>
import jax
import jax.numpy as jnp
from jax import lax
from jax.experimental import pallas as pl
from jax.experimental.pallas import tpu as pltpu

VOCAB = 16      # vocab_size
K_CLASSES = 3   # k
X_DIM = 8
H_DIM = 32
Z_DIM = 16


# ----------------------------- helpers (in-kernel) ---------------------------
def _relu(x):
    return jnp.maximum(x, 0.0)


def _sigmoid(x):
    # exact: sigmoid(x) = 0.5 * (tanh(x/2) + 1); EUP tanh path, no division.
    return 0.5 * (jnp.tanh(0.5 * x) + 1.0)


def _softplus(x):
    # matches torch.nn.Softplus(beta=1, threshold=20)
    return jnp.where(x > 20.0, x, jnp.log1p(jnp.exp(jnp.minimum(x, 20.0))))


KERNEL_WEIGHTS = (
    "enc_w1", "enc_b1", "enc_w2", "enc_b2",
    "encm_w", "encm_b", "encs_w", "encs_b",
    "dec_w1", "dec_b1", "dec_w2", "dec_b2",
    "decm_w", "decm_b",
    "gru_wi", "gru_bi", "gru_wh", "gru_bh",
)


# ----------------------------- VRNN recurrence kernel ------------------------
def vrnn_kernel(
    xs_ref, eps_ref, h0_ref,
    enc_w1_ref, enc_b1_ref, enc_w2_ref, enc_b2_ref,
    encm_w_ref, encm_b_ref, encs_w_ref, encs_b_ref,
    dec_w1_ref, dec_b1_ref, dec_w2_ref, dec_b2_ref,
    decm_w_ref, decm_b_ref,
    gru_wi_ref, gru_bi_ref, gru_wh_ref, gru_bh_ref,
    dec_means_ref, h_last_ref,
):
    T = xs_ref.shape[0]
    H = H_DIM

    def dot(a, b):
        return jnp.dot(a, b, preferred_element_type=jnp.float32)

    # Load weights once; they remain VMEM/vreg resident for the whole sequence.
    enc_w1 = enc_w1_ref[...]   # (X+H, H) = concat(W_x, W_h) along input dim
    enc_b1 = enc_b1_ref[...]
    enc_w2 = enc_w2_ref[...]
    enc_b2 = enc_b2_ref[...]
    encm_w = encm_w_ref[...]
    encm_b = encm_b_ref[...]
    encs_w = encs_w_ref[...]
    encs_b = encs_b_ref[...]
    dec_w1 = dec_w1_ref[...]   # (Z+H, H)
    dec_b1 = dec_b1_ref[...]
    dec_w2 = dec_w2_ref[...]
    dec_b2 = dec_b2_ref[...]
    decm_w = decm_w_ref[...]
    decm_b = decm_b_ref[...]
    gru_wi = gru_wi_ref[...]   # (X+Z, 3H), PyTorch gate order (r, z, n)
    gru_bi = gru_bi_ref[...]
    gru_wh = gru_wh_ref[...]   # (H, 3H)
    gru_bh = gru_bh_ref[...]

    def step(t, h):
        x = xs_ref[t]        # (N, X)
        eps = eps_ref[t]     # (N, Z)

        # encoder on cat([x, h_prev]) as split matmuls over the fused slab
        e1 = _relu(dot(x, enc_w1[:X_DIM]) + dot(h, enc_w1[X_DIM:]) + enc_b1)
        e2 = _relu(dot(e1, enc_w2) + enc_b2)
        enc_mean = dot(e2, encm_w) + encm_b
        enc_std = _softplus(dot(e2, encs_w) + encs_b)

        # reparameterized sample: z = eps * std + mean
        z = eps * enc_std + enc_mean

        # decoder on cat([z, h_prev])
        d1 = _relu(dot(z, dec_w1[:Z_DIM]) + dot(h, dec_w1[Z_DIM:]) + dec_b1)
        d2 = _relu(dot(d1, dec_w2) + dec_b2)
        dec_mean = _sigmoid(dot(d2, decm_w) + decm_b)

        # GRUCell on cat([x, z]) with state h (gate order r, z, n)
        gi = dot(x, gru_wi[:X_DIM]) + dot(z, gru_wi[X_DIM:]) + gru_bi   # (N,3H)
        gh = dot(h, gru_wh) + gru_bh                                    # (N,3H)
        r = _sigmoid(gi[:, 0:H] + gh[:, 0:H])
        u = _sigmoid(gi[:, H:2 * H] + gh[:, H:2 * H])
        n = jnp.tanh(gi[:, 2 * H:3 * H] + r * gh[:, 2 * H:3 * H])
        h_new = (1.0 - u) * n + u * h

        dec_means_ref[t] = dec_mean
        return h_new

    h_final = lax.fori_loop(0, T, step, h0_ref[...], unroll=True)
    h_last_ref[...] = h_final


def run_vrnn(xs_tnd, eps_tnd, h0, params):
    """xs_tnd: (T,N,X), eps_tnd: (T,N,Z), h0: (N,H) -> ((T,N,X), (N,H))."""
    T, N, _ = xs_tnd.shape
    weights = [params[name] for name in KERNEL_WEIGHTS]
    n_in = 3 + len(weights)

    def vmem_spec():
        return pl.BlockSpec(memory_space=pltpu.MemorySpace.VMEM)

    dec_means_t, h_last = pl.pallas_call(
        vrnn_kernel,
        out_shape=(
            jax.ShapeDtypeStruct((T, N, X_DIM), jnp.float32),
            jax.ShapeDtypeStruct((N, H_DIM), jnp.float32),
        ),
        in_specs=[vmem_spec() for _ in range(n_in)],
        out_specs=(vmem_spec(), vmem_spec()),
    )(xs_tnd, eps_tnd, h0, *weights)
    return dec_means_t, h_last


# ----------------------------- parameters ------------------------------------
def init_params(key):
    names_shapes = [
        ("embed", (VOCAB, X_DIM)),
        ("hinit_w", (1, H_DIM)), ("hinit_b", (1, H_DIM)),        # adaptive init_h
        ("enc_w1", (X_DIM + H_DIM, H_DIM)), ("enc_b1", (1, H_DIM)),
        ("enc_w2", (H_DIM, H_DIM)), ("enc_b2", (1, H_DIM)),
        ("encm_w", (H_DIM, Z_DIM)), ("encm_b", (1, Z_DIM)),
        ("encs_w", (H_DIM, Z_DIM)), ("encs_b", (1, Z_DIM)),
        ("dec_w1", (Z_DIM + H_DIM, H_DIM)), ("dec_b1", (1, H_DIM)),
        ("dec_w2", (H_DIM, H_DIM)), ("dec_b2", (1, H_DIM)),
        ("decm_w", (H_DIM, X_DIM)), ("decm_b", (1, X_DIM)),
        ("gru_wi", (X_DIM + Z_DIM, 3 * H_DIM)), ("gru_bi", (1, 3 * H_DIM)),
        ("gru_wh", (H_DIM, 3 * H_DIM)), ("gru_bh", (1, 3 * H_DIM)),
        ("gen_w", (X_DIM, VOCAB)), ("gen_b", (1, VOCAB)),
        ("cla_w", (H_DIM, K_CLASSES)), ("cla_b", (1, K_CLASSES)),
    ]
    keys = jax.random.split(key, len(names_shapes))
    return {n: 0.1 * jax.random.normal(k, s, dtype=jnp.float32)
            for (n, s), k in zip(names_shapes, keys)}


# ----------------------------- loss heads (plain XLA) ------------------------
def _mean_cross_entropy(logits, targets):
    # matches F.cross_entropy(reduction='mean') with integer targets
    logp = jax.nn.log_softmax(logits, axis=-1)
    nll = -jnp.take_along_axis(logp, targets[:, None], axis=-1)[:, 0]
    return jnp.mean(nll)


# ----------------------------- full forward ----------------------------------
def catvrnn_forward(params, xs_tokens, ts_tokens, labels, key):
    """CatVRNN.forward with 'c' in mode and init_h='adaptive' (disturb=True)."""
    N, T = xs_tokens.shape
    k_h, k_eps = jax.random.split(key)

    # init_adaptive_h: h = Linear(labels.float().view(N,1)) + Uniform[0,1) noise
    lab_f = labels.astype(jnp.float32).reshape(N, 1)
    h0 = (lab_f @ params["hinit_w"] + params["hinit_b"]
          + jax.random.uniform(k_h, (N, H_DIM), dtype=jnp.float32))

    # time-major end-to-end: (T, N, X) embedding gather, (T, N, Z) noise
    xs_tnd = params["embed"][xs_tokens.T]
    eps_tnd = jax.random.normal(k_eps, (T, N, Z_DIM), dtype=jnp.float32)

    dec_means_t, h_last = run_vrnn(xs_tnd, eps_tnd, h0, params)

    # generation loss: fc4generate + mean CE over all T*N rows (order-invariant)
    gen_logits = (dec_means_t.reshape(T * N, X_DIM) @ params["gen_w"]
                  + params["gen_b"])
    gen_loss = _mean_cross_entropy(gen_logits, ts_tokens.T.reshape(T * N))

    # classification loss ('c' in mode) on the last hidden state.
    # NOTE: the reference computes F.dropout(hs, 0.5) but immediately discards
    # the result, so it has no effect on the output -> omitted (dead code).
    cla_logits = h_last @ params["cla_w"] + params["cla_b"]
    cla_loss = _mean_cross_entropy(cla_logits, labels)
    return gen_loss, cla_loss


# ----------------------------- main ------------------------------------------
if __name__ == "__main__":
    key = jax.random.PRNGKey(0)
    k_param, k_xs, k_ts, k_lab, k_noise = jax.random.split(key, 5)
    params = init_params(k_param)

    N, T = 2, 8
    xs = jax.random.randint(k_xs, (N, T), 0, VOCAB, dtype=jnp.int32)
    ts = jax.random.randint(k_ts, (N, T), 0, VOCAB, dtype=jnp.int32)
    labels = jax.random.randint(k_lab, (N,), 0, K_CLASSES, dtype=jnp.int32)

    gen_loss, cla_loss = jax.jit(catvrnn_forward)(params, xs, ts, labels, k_noise)
    jax.block_until_ready((gen_loss, cla_loss))
    assert gen_loss.shape == () and cla_loss.shape == ()
    assert jnp.isfinite(gen_loss) and jnp.isfinite(cla_loss)
    print("KERNEL_OK")
</pallas_src>

<mosaic_0001>
module attributes {stable_mosaic.version = 11 : i64} {
  func.func @vrnn_kernel(%arg0: memref<8x2x8xf32, #tpu.memory_space<vmem>>, %arg1: memref<8x2x16xf32, #tpu.memory_space<vmem>>, %arg2: memref<2x32xf32, #tpu.memory_space<vmem>>, %arg3: memref<40x32xf32, #tpu.memory_space<vmem>>, %arg4: memref<1x32xf32, #tpu.memory_space<vmem>>, %arg5: memref<32x32xf32, #tpu.memory_space<vmem>>, %arg6: memref<1x32xf32, #tpu.memory_space<vmem>>, %arg7: memref<32x16xf32, #tpu.memory_space<vmem>>, %arg8: memref<1x16xf32, #tpu.memory_space<vmem>>, %arg9: memref<32x16xf32, #tpu.memory_space<vmem>>, %arg10: memref<1x16xf32, #tpu.memory_space<vmem>>, %arg11: memref<48x32xf32, #tpu.memory_space<vmem>>, %arg12: memref<1x32xf32, #tpu.memory_space<vmem>>, %arg13: memref<32x32xf32, #tpu.memory_space<vmem>>, %arg14: memref<1x32xf32, #tpu.memory_space<vmem>>, %arg15: memref<32x8xf32, #tpu.memory_space<vmem>>, %arg16: memref<1x8xf32, #tpu.memory_space<vmem>>, %arg17: memref<24x96xf32, #tpu.memory_space<vmem>>, %arg18: memref<1x96xf32, #tpu.memory_space<vmem>>, %arg19: memref<32x96xf32, #tpu.memory_space<vmem>>, %arg20: memref<1x96xf32, #tpu.memory_space<vmem>>, %arg21: memref<8x2x8xf32, #tpu.memory_space<vmem>>, %arg22: memref<2x32xf32, #tpu.memory_space<vmem>>) attributes {dimension_semantics = [], scalar_prefetch = 0 : i64, scratch_operands = 0 : i64, tpu.core_type = #tpu.core_type<tc>} {
    %c0 = arith.constant 0 : index
    %c0_0 = arith.constant 0 : index
    %0 = vector.load %arg3[%c0, %c0_0] : memref<40x32xf32, #tpu.memory_space<vmem>>, vector<40x32xf32>
    %c0_1 = arith.constant 0 : index
    %c0_2 = arith.constant 0 : index
    %1 = vector.load %arg4[%c0_1, %c0_2] : memref<1x32xf32, #tpu.memory_space<vmem>>, vector<1x32xf32>
    %c0_3 = arith.constant 0 : index
    %c0_4 = arith.constant 0 : index
    %2 = vector.load %arg5[%c0_3, %c0_4] : memref<32x32xf32, #tpu.memory_space<vmem>>, vector<32x32xf32>
    %c0_5 = arith.constant 0 : index
    %c0_6 = arith.constant 0 : index
    %3 = vector.load %arg6[%c0_5, %c0_6] : memref<1x32xf32, #tpu.memory_space<vmem>>, vector<1x32xf32>
    %c0_7 = arith.constant 0 : index
    %c0_8 = arith.constant 0 : index
    %4 = vector.load %arg7[%c0_7, %c0_8] : memref<32x16xf32, #tpu.memory_space<vmem>>, vector<32x16xf32>
    %c0_9 = arith.constant 0 : index
    %c0_10 = arith.constant 0 : index
    %5 = vector.load %arg8[%c0_9, %c0_10] : memref<1x16xf32, #tpu.memory_space<vmem>>, vector<1x16xf32>
    %c0_11 = arith.constant 0 : index
    %c0_12 = arith.constant 0 : index
    %6 = vector.load %arg9[%c0_11, %c0_12] : memref<32x16xf32, #tpu.memory_space<vmem>>, vector<32x16xf32>
    %c0_13 = arith.constant 0 : index
    %c0_14 = arith.constant 0 : index
    %7 = vector.load %arg10[%c0_13, %c0_14] : memref<1x16xf32, #tpu.memory_space<vmem>>, vector<1x16xf32>
    %c0_15 = arith.constant 0 : index
    %c0_16 = arith.constant 0 : index
    %8 = vector.load %arg11[%c0_15, %c0_16] : memref<48x32xf32, #tpu.memory_space<vmem>>, vector<48x32xf32>
    %c0_17 = arith.constant 0 : index
    %c0_18 = arith.constant 0 : index
    %9 = vector.load %arg12[%c0_17, %c0_18] : memref<1x32xf32, #tpu.memory_space<vmem>>, vector<1x32xf32>
    %c0_19 = arith.constant 0 : index
    %c0_20 = arith.constant 0 : index
    %10 = vector.load %arg13[%c0_19, %c0_20] : memref<32x32xf32, #tpu.memory_space<vmem>>, vector<32x32xf32>
    %c0_21 = arith.constant 0 : index
    %c0_22 = arith.constant 0 : index
    %11 = vector.load %arg14[%c0_21, %c0_22] : memref<1x32xf32, #tpu.memory_space<vmem>>, vector<1x32xf32>
    %c0_23 = arith.constant 0 : index
    %c0_24 = arith.constant 0 : index
    %12 = vector.load %arg15[%c0_23, %c0_24] : memref<32x8xf32, #tpu.memory_space<vmem>>, vector<32x8xf32>
    %c0_25 = arith.constant 0 : index
    %c0_26 = arith.constant 0 : index
    %13 = vector.load %arg16[%c0_25, %c0_26] : memref<1x8xf32, #tpu.memory_space<vmem>>, vector<1x8xf32>
    %c0_27 = arith.constant 0 : index
    %c0_28 = arith.constant 0 : index
    %14 = vector.load %arg17[%c0_27, %c0_28] : memref<24x96xf32, #tpu.memory_space<vmem>>, vector<24x96xf32>
    %c0_29 = arith.constant 0 : index
    %c0_30 = arith.constant 0 : index
    %15 = vector.load %arg18[%c0_29, %c0_30] : memref<1x96xf32, #tpu.memory_space<vmem>>, vector<1x96xf32>
    %c0_31 = arith.constant 0 : index
    %c0_32 = arith.constant 0 : index
    %16 = vector.load %arg19[%c0_31, %c0_32] : memref<32x96xf32, #tpu.memory_space<vmem>>, vector<32x96xf32>
    %c0_33 = arith.constant 0 : index
    %c0_34 = arith.constant 0 : index
    %17 = vector.load %arg20[%c0_33, %c0_34] : memref<1x96xf32, #tpu.memory_space<vmem>>, vector<1x96xf32>
    %c0_35 = arith.constant 0 : index
    %c0_36 = arith.constant 0 : index
    %18 = vector.load %arg2[%c0_35, %c0_36] : memref<2x32xf32, #tpu.memory_space<vmem>>, vector<2x32xf32>
    %c0_i32 = arith.constant 0 : i32
    %19 = arith.index_cast %c0_i32 : i32 to index
    %c0_37 = arith.constant 0 : index
    %c0_38 = arith.constant 0 : index
    %20 = vector.load %arg0[%19, %c0_37, %c0_38] : memref<8x2x8xf32, #tpu.memory_space<vmem>>, vector<1x2x8xf32>
    %21 = vector.shape_cast %20 : vector<1x2x8xf32> to vector<2x8xf32>
    %22 = arith.index_cast %c0_i32 : i32 to index
    %c0_39 = arith.constant 0 : index
    %c0_40 = arith.constant 0 : index
    %23 = vector.load %arg1[%22, %c0_39, %c0_40] : memref<8x2x16xf32, #tpu.memory_space<vmem>>, vector<1x2x16xf32>
    %24 = vector.shape_cast %23 : vector<1x2x16xf32> to vector<2x16xf32>
    %25 = vector.extract_strided_slice %0 {offsets = [0, 0], sizes = [8, 32], strides = [1, 1]} : vector<40x32xf32> to vector<8x32xf32>
    %cst = arith.constant dense<0.000000e+00> : vector<2x32xf32>
    %26 = tpu.matmul %21, %25, %cst {dimension_numbers = #tpu.dot_dimension_numbers<[1], [0], [0], [1], [0, 0, 1, 1], [], []>} : vector<2x8xf32>, vector<8x32xf32>, vector<2x32xf32> -> vector<2x32xf32>
    %27 = vector.extract_strided_slice %0 {offsets = [8, 0], sizes = [32, 32], strides = [1, 1]} : vector<40x32xf32> to vector<32x32xf32>
    %cst_41 = arith.constant dense<0.000000e+00> : vector<2x32xf32>
    %28 = tpu.matmul %18, %27, %cst_41 {dimension_numbers = #tpu.dot_dimension_numbers<[1], [0], [0], [1], [0, 0, 1, 1], [], []>} : vector<2x32xf32>, vector<32x32xf32>, vector<2x32xf32> -> vector<2x32xf32>
    %29 = arith.addf %26, %28 : vector<2x32xf32>
    %30 = vector.broadcast %1 : vector<1x32xf32> to vector<2x32xf32>
    %31 = arith.addf %29, %30 : vector<2x32xf32>
    %cst_42 = arith.constant 0.000000e+00 : f32
    %32 = vector.broadcast %cst_42 : f32 to vector<2x32xf32>
    %33 = arith.maximumf %31, %32 : vector<2x32xf32>
    %cst_43 = arith.constant dense<0.000000e+00> : vector<2x32xf32>
    %34 = tpu.matmul %33, %2, %cst_43 {dimension_numbers = #tpu.dot_dimension_numbers<[1], [0], [0], [1], [0, 0, 1, 1], [], []>} : vector<2x32xf32>, vector<32x32xf32>, vector<2x32xf32> -> vector<2x32xf32>
    %35 = vector.broadcast %3 : vector<1x32xf32> to vector<2x32xf32>
    %36 = arith.addf %34, %35 : vector<2x32xf32>
    %cst_44 = arith.constant 0.000000e+00 : f32
    %37 = vector.broadcast %cst_44 : f32 to vector<2x32xf32>
    %38 = arith.maximumf %36, %37 : vector<2x32xf32>
    %cst_45 = arith.constant dense<0.000000e+00> : vector<2x16xf32>
    %39 = tpu.matmul %38, %4, %cst_45 {dimension_numbers = #tpu.dot_dimension_numbers<[1], [0], [0], [1], [0, 0, 1, 1], [], []>} : vector<2x32xf32>, vector<32x16xf32>, vector<2x16xf32> -> vector<2x16xf32>
    %40 = vector.broadcast %5 : vector<1x16xf32> to vector<2x16xf32>
    %41 = arith.addf %39, %40 : vector<2x16xf32>
    %cst_46 = arith.constant dense<0.000000e+00> : vector<2x16xf32>
    %42 = tpu.matmul %38, %6, %cst_46 {dimension_numbers = #tpu.dot_dimension_numbers<[1], [0], [0], [1], [0, 0, 1, 1], [], []>} : vector<2x32xf32>, vector<32x16xf32>, vector<2x16xf32> -> vector<2x16xf32>
    %43 = vector.broadcast %7 : vector<1x16xf32> to vector<2x16xf32>
    %44 = arith.addf %42, %43 : vector<2x16xf32>
    %cst_47 = arith.constant 2.000000e+01 : f32
    %45 = vector.broadcast %cst_47 : f32 to vector<2x16xf32>
    %46 = arith.cmpf ogt, %44, %45 : vector<2x16xf32>
    %cst_48 = arith.constant 2.000000e+01 : f32
    %47 = vector.broadcast %cst_48 : f32 to vector<2x16xf32>
    %48 = arith.minimumf %44, %47 : vector<2x16xf32>
    %49 = math.exp %48 : vector<2x16xf32>
    %50 = math.log1p %49 : vector<2x16xf32>
    %51 = arith.select %46, %44, %50 : vector<2x16xi1>, vector<2x16xf32>
    %52 = arith.mulf %24, %51 : vector<2x16xf32>
    %53 = arith.addf %52, %41 : vector<2x16xf32>
    %54 = vector.extract_strided_slice %8 {offsets = [0, 0], sizes = [16, 32], strides = [1, 1]} : vector<48x32xf32> to vector<16x32xf32>
    %cst_49 = arith.constant dense<0.000000e+00> : vector<2x32xf32>
    %55 = tpu.matmul %53, %54, %cst_49 {dimension_numbers = #tpu.dot_dimension_numbers<[1], [0], [0], [1], [0, 0, 1, 1], [], []>} : vector<2x16xf32>, vector<16x32xf32>, vector<2x32xf32> -> vector<2x32xf32>
    %56 = vector.extract_strided_slice %8 {offsets = [16, 0], sizes = [32, 32], strides = [1, 1]} : vector<48x32xf32> to vector<32x32xf32>
    %cst_50 = arith.constant dense<0.000000e+00> : vector<2x32xf32>
    %57 = tpu.matmul %18, %56, %cst_50 {dimension_numbers = #tpu.dot_dimension_numbers<[1], [0], [0], [1], [0, 0, 1, 1], [], []>} : vector<2x32xf32>, vector<32x32xf32>, vector<2x32xf32> -> vector<2x32xf32>
    %58 = arith.addf %55, %57 : vector<2x32xf32>
    %59 = vector.broadcast %9 : vector<1x32xf32> to vector<2x32xf32>
    %60 = arith.addf %58, %59 : vector<2x32xf32>
    %cst_51 = arith.constant 0.000000e+00 : f32
    %61 = vector.broadcast %cst_51 : f32 to vector<2x32xf32>
    %62 = arith.maximumf %60, %61 : vector<2x32xf32>
    %cst_52 = arith.constant dense<0.000000e+00> : vector<2x32xf32>
    %63 = tpu.matmul %62, %10, %cst_52 {dimension_numbers = #tpu.dot_dimension_numbers<[1], [0], [0], [1], [0, 0, 1, 1], [], []>} : vector<2x32xf32>, vector<32x32xf32>, vector<2x32xf32> -> vector<2x32xf32>
    %64 = vector.broadcast %11 : vector<1x32xf32> to vector<2x32xf32>
    %65 = arith.addf %63, %64 : vector<2x32xf32>
    %cst_53 = arith.constant 0.000000e+00 : f32
    %66 = vector.broadcast %cst_53 : f32 to vector<2x32xf32>
    %67 = arith.maximumf %65, %66 : vector<2x32xf32>
    %cst_54 = arith.constant dense<0.000000e+00> : vector<2x8xf32>
    %68 = tpu.matmul %67, %12, %cst_54 {dimension_numbers = #tpu.dot_dimension_numbers<[1], [0], [0], [1], [0, 0, 1, 1], [], []>} : vector<2x32xf32>, vector<32x8xf32>, vector<2x8xf32> -> vector<2x8xf32>
    %69 = vector.broadcast %13 : vector<1x8xf32> to vector<2x8xf32>
    %70 = arith.addf %68, %69 : vector<2x8xf32>
    %cst_55 = arith.constant 5.000000e-01 : f32
    %71 = vector.broadcast %cst_55 : f32 to vector<2x8xf32>
    %72 = arith.mulf %71, %70 : vector<2x8xf32>
    %73 = math.tanh %72 : vector<2x8xf32>
    %cst_56 = arith.constant 1.000000e+00 : f32
    %74 = vector.broadcast %cst_56 : f32 to vector<2x8xf32>
    %75 = arith.addf %73, %74 : vector<2x8xf32>
    %cst_57 = arith.constant 5.000000e-01 : f32
    %76 = vector.broadcast %cst_57 : f32 to vector<2x8xf32>
    %77 = arith.mulf %76, %75 : vector<2x8xf32>
    %78 = vector.extract_strided_slice %14 {offsets = [0, 0], sizes = [8, 96], strides = [1, 1]} : vector<24x96xf32> to vector<8x96xf32>
    %cst_58 = arith.constant dense<0.000000e+00> : vector<2x96xf32>
    %79 = tpu.matmul %21, %78, %cst_58 {dimension_numbers = #tpu.dot_dimension_numbers<[1], [0], [0], [1], [0, 0, 1, 1], [], []>} : vector<2x8xf32>, vector<8x96xf32>, vector<2x96xf32> -> vector<2x96xf32>
    %80 = vector.extract_strided_slice %14 {offsets = [8, 0], sizes = [16, 96], strides = [1, 1]} : vector<24x96xf32> to vector<16x96xf32>
    %cst_59 = arith.constant dense<0.000000e+00> : vector<2x96xf32>
    %81 = tpu.matmul %53, %80, %cst_59 {dimension_numbers = #tpu.dot_dimension_numbers<[1], [0], [0], [1], [0, 0, 1, 1], [], []>} : vector<2x16xf32>, vector<16x96xf32>, vector<2x96xf32> -> vector<2x96xf32>
    %82 = arith.addf %79, %81 : vector<2x96xf32>
    %83 = vector.broadcast %15 : vector<1x96xf32> to vector<2x96xf32>
    %84 = arith.addf %82, %83 : vector<2x96xf32>
    %cst_60 = arith.constant dense<0.000000e+00> : vector<2x96xf32>
    %85 = tpu.matmul %18, %16, %cst_60 {dimension_numbers = #tpu.dot_dimension_numbers<[1], [0], [0], [1], [0, 0, 1, 1], [], []>} : vector<2x32xf32>, vector<32x96xf32>, vector<2x96xf32> -> vector<2x96xf32>
    %86 = vector.broadcast %17 : vector<1x96xf32> to vector<2x96xf32>
    %87 = arith.addf %85, %86 : vector<2x96xf32>
    %88 = vector.extract_strided_slice %84 {offsets = [0, 0], sizes = [2, 32], strides = [1, 1]} : vector<2x96xf32> to vector<2x32xf32>
    %89 = vector.extract_strided_slice %87 {offsets = [0, 0], sizes = [2, 32], strides = [1, 1]} : vector<2x96xf32> to vector<2x32xf32>
    %90 = arith.addf %88, %89 : vector<2x32xf32>
    %cst_61 = arith.constant 5.000000e-01 : f32
    %91 = vector.broadcast %cst_61 : f32 to vector<2x32xf32>
    %92 = arith.mulf %91, %90 : vector<2x32xf32>
    %93 = math.tanh %92 : vector<2x32xf32>
    %cst_62 = arith.constant 1.000000e+00 : f32
    %94 = vector.broadcast %cst_62 : f32 to vector<2x32xf32>
    %95 = arith.addf %93, %94 : vector<2x32xf32>
    %cst_63 = arith.constant 5.000000e-01 : f32
    %96 = vector.broadcast %cst_63 : f32 to vector<2x32xf32>
    %97 = arith.mulf %96, %95 : vector<2x32xf32>
    %98 = vector.extract_strided_slice %84 {offsets = [0, 32], sizes = [2, 32], strides = [1, 1]} : vector<2x96xf32> to vector<2x32xf32>
    %99 = vector.extract_strided_slice %87 {offsets = [0, 32], sizes = [2, 32], strides = [1, 1]} : vector<2x96xf32> to vector<2x32xf32>
    %100 = arith.addf %98, %99 : vector<2x32xf32>
    %cst_64 = arith.constant 5.000000e-01 : f32
    %101 = vector.broadcast %cst_64 : f32 to vector<2x32xf32>
    %102 = arith.mulf %101, %100 : vector<2x32xf32>
    %103 = math.tanh %102 : vector<2x32xf32>
    %cst_65 = arith.constant 1.000000e+00 : f32
    %104 = vector.broadcast %cst_65 : f32 to vector<2x32xf32>
    %105 = arith.addf %103, %104 : vector<2x32xf32>
    %cst_66 = arith.constant 5.000000e-01 : f32
    %106 = vector.broadcast %cst_66 : f32 to vector<2x32xf32>
    %107 = arith.mulf %106, %105 : vector<2x32xf32>
    %108 = vector.extract_strided_slice %84 {offsets = [0, 64], sizes = [2, 32], strides = [1, 1]} : vector<2x96xf32> to vector<2x32xf32>
    %109 = vector.extract_strided_slice %87 {offsets = [0, 64], sizes = [2, 32], strides = [1, 1]} : vector<2x96xf32> to vector<2x32xf32>
    %110 = arith.mulf %97, %109 : vector<2x32xf32>
    %111 = arith.addf %108, %110 : vector<2x32xf32>
    %112 = math.tanh %111 : vector<2x32xf32>
    %cst_67 = arith.constant 1.000000e+00 : f32
    %113 = vector.broadcast %cst_67 : f32 to vector<2x32xf32>
    %114 = arith.subf %113, %107 : vector<2x32xf32>
    %115 = arith.mulf %114, %112 : vector<2x32xf32>
    %116 = arith.mulf %107, %18 : vector<2x32xf32>
    %117 = arith.addf %115, %116 : vector<2x32xf32>
    %118 = arith.index_cast %c0_i32 : i32 to index
    %c0_68 = arith.constant 0 : index
    %c0_69 = arith.constant 0 : index
    %119 = vector.load %arg21[%118, %c0_68, %c0_69] : memref<8x2x8xf32, #tpu.memory_space<vmem>>, vector<1x2x8xf32>
    %120 = vector.shape_cast %119 : vector<1x2x8xf32> to vector<2x8xf32>
    %121 = vector.shape_cast %77 : vector<2x8xf32> to vector<1x2x8xf32>
    tpu.vector_store %arg21[%118, %c0_68, %c0_69], %121 {strides = array<i32>} : memref<8x2x8xf32, #tpu.memory_space<vmem>>, vector<1x2x8xf32>,
    %c1_i32 = arith.constant 1 : i32
    %122 = arith.index_cast %c1_i32 : i32 to index
    %c0_70 = arith.constant 0 : index
    %c0_71 = arith.constant 0 : index
    %123 = vector.load %arg0[%122, %c0_70, %c0_71] : memref<8x2x8xf32, #tpu.memory_space<vmem>>, vector<1x2x8xf32>
    %124 = vector.shape_cast %123 : vector<1x2x8xf32> to vector<2x8xf32>
    %125 = arith.index_cast %c1_i32 : i32 to index
    %c0_72 = arith.constant 0 : index
    %c0_73 = arith.constant 0 : index
    %126 = vector.load %arg1[%125, %c0_72, %c0_73] : memref<8x2x16xf32, #tpu.memory_space<vmem>>, vector<1x2x16xf32>
    %127 = vector.shape_cast %126 : vector<1x2x16xf32> to vector<2x16xf32>
    %128 = vector.extract_strided_slice %0 {offsets = [0, 0], sizes = [8, 32], strides = [1, 1]} : vector<40x32xf32> to vector<8x32xf32>
    %cst_74 = arith.constant dense<0.000000e+00> : vector<2x32xf32>
    %129 = tpu.matmul %124, %128, %cst_74 {dimension_numbers = #tpu.dot_dimension_numbers<[1], [0], [0], [1], [0, 0, 1, 1], [], []>} : vector<2x8xf32>, vector<8x32xf32>, vector<2x32xf32> -> vector<2x32xf32>
    %130 = vector.extract_strided_slice %0 {offsets = [8, 0], sizes = [32, 32], strides = [1, 1]} : vector<40x32xf32> to vector<32x32xf32>
    %cst_75 = arith.constant dense<0.000000e+00> : vector<2x32xf32>
    %131 = tpu.matmul %117, %130, %cst_75 {dimension_numbers = #tpu.dot_dimension_numbers<[1], [0], [0], [1], [0, 0, 1, 1], [], []>} : vector<2x32xf32>, vector<32x32xf32>, vector<2x32xf32> -> vector<2x32xf32>
    %132 = arith.addf %129, %131 : vector<2x32xf32>
    %133 = vector.broadcast %1 : vector<1x32xf32> to vector<2x32xf32>
    %134 = arith.addf %132, %133 : vector<2x32xf32>
    %cst_76 = arith.constant 0.000000e+00 : f32
    %135 = vector.broadcast %cst_76 : f32 to vector<2x32xf32>
    %136 = arith.maximumf %134, %135 : vector<2x32xf32>
    %cst_77 = arith.constant dense<0.000000e+00> : vector<2x32xf32>
    %137 = tpu.matmul %136, %2, %cst_77 {dimension_numbers = #tpu.dot_dimension_numbers<[1], [0], [0], [1], [0, 0, 1, 1], [], []>} : vector<2x32xf32>, vector<32x32xf32>, vector<2x32xf32> -> vector<2x32xf32>
    %138 = vector.broadcast %3 : vector<1x32xf32> to vector<2x32xf32>
    %139 = arith.addf %137, %138 : vector<2x32xf32>
    %cst_78 = arith.constant 0.000000e+00 : f32
    %140 = vector.broadcast %cst_78 : f32 to vector<2x32xf32>
    %141 = arith.maximumf %139, %140 : vector<2x32xf32>
    %cst_79 = arith.constant dense<0.000000e+00> : vector<2x16xf32>
    %142 = tpu.matmul %141, %4, %cst_79 {dimension_numbers = #tpu.dot_dimension_numbers<[1], [0], [0], [1], [0, 0, 1, 1], [], []>} : vector<2x32xf32>, vector<32x16xf32>, vector<2x16xf32> -> vector<2x16xf32>
    %143 = vector.broadcast %5 : vector<1x16xf32> to vector<2x16xf32>
    %144 = arith.addf %142, %143 : vector<2x16xf32>
    %cst_80 = arith.constant dense<0.000000e+00> : vector<2x16xf32>
    %145 = tpu.matmul %141, %6, %cst_80 {dimension_numbers = #tpu.dot_dimension_numbers<[1], [0], [0], [1], [0, 0, 1, 1], [], []>} : vector<2x32xf32>, vector<32x16xf32>, vector<2x16xf32> -> vector<2x16xf32>
    %146 = vector.broadcast %7 : vector<1x16xf32> to vector<2x16xf32>
    %147 = arith.addf %145, %146 : vector<2x16xf32>
    %cst_81 = arith.constant 2.000000e+01 : f32
    %148 = vector.broadcast %cst_81 : f32 to vector<2x16xf32>
    %149 = arith.cmpf ogt, %147, %148 : vector<2x16xf32>
    %cst_82 = arith.constant 2.000000e+01 : f32
    %150 = vector.broadcast %cst_82 : f32 to vector<2x16xf32>
    %151 = arith.minimumf %147, %150 : vector<2x16xf32>
    %152 = math.exp %151 : vector<2x16xf32>
    %153 = math.log1p %152 : vector<2x16xf32>
    %154 = arith.select %149, %147, %153 : vector<2x16xi1>, vector<2x16xf32>
    %155 = arith.mulf %127, %154 : vector<2x16xf32>
    %156 = arith.addf %155, %144 : vector<2x16xf32>
    %157 = vector.extract_strided_slice %8 {offsets = [0, 0], sizes = [16, 32], strides = [1, 1]} : vector<48x32xf32> to vector<16x32xf32>
    %cst_83 = arith.constant dense<0.000000e+00> : vector<2x32xf32>
    %158 = tpu.matmul %156, %157, %cst_83 {dimension_numbers = #tpu.dot_dimension_numbers<[1], [0], [0], [1], [0, 0, 1, 1], [], []>} : vector<2x16xf32>, vector<16x32xf32>, vector<2x32xf32> -> vector<2x32xf32>
    %159 = vector.extract_strided_slice %8 {offsets = [16, 0], sizes = [32, 32], strides = [1, 1]} : vector<48x32xf32> to vector<32x32xf32>
    %cst_84 = arith.constant dense<0.000000e+00> : vector<2x32xf32>
    %160 = tpu.matmul %117, %159, %cst_84 {dimension_numbers = #tpu.dot_dimension_numbers<[1], [0], [0], [1], [0, 0, 1, 1], [], []>} : vector<2x32xf32>, vector<32x32xf32>, vector<2x32xf32> -> vector<2x32xf32>
    %161 = arith.addf %158, %160 : vector<2x32xf32>
    %162 = vector.broadcast %9 : vector<1x32xf32> to vector<2x32xf32>
    %163 = arith.addf %161, %162 : vector<2x32xf32>
    %cst_85 = arith.constant 0.000000e+00 : f32
    %164 = vector.broadcast %cst_85 : f32 to vector<2x32xf32>
    %165 = arith.maximumf %163, %164 : vector<2x32xf32>
    %cst_86 = arith.constant dense<0.000000e+00> : vector<2x32xf32>
    %166 = tpu.matmul %165, %10, %cst_86 {dimension_numbers = #tpu.dot_dimension_numbers<[1], [0], [0], [1], [0, 0, 1, 1], [], []>} : vector<2x32xf32>, vector<32x32xf32>, vector<2x32xf32> -> vector<2x32xf32>
    %167 = vector.broadcast %11 : vector<1x32xf32> to vector<2x32xf32>
    %168 = arith.addf %166, %167 : vector<2x32xf32>
    %cst_87 = arith.constant 0.000000e+00 : f32
    %169 = vector.broadcast %cst_87 : f32 to vector<2x32xf32>
    %170 = arith.maximumf %168, %169 : vector<2x32xf32>
    %cst_88 = arith.constant dense<0.000000e+00> : vector<2x8xf32>
    %171 = tpu.matmul %170, %12, %cst_88 {dimension_numbers = #tpu.dot_dimension_numbers<[1], [0], [0], [1], [0, 0, 1, 1], [], []>} : vector<2x32xf32>, vector<32x8xf32>, vector<2x8xf32> -> vector<2x8xf32>
    %172 = vector.broadcast %13 : vector<1x8xf32> to vector<2x8xf32>
    %173 = arith.addf %171, %172 : vector<2x8xf32>
    %cst_89 = arith.constant 5.000000e-01 : f32
    %174 = vector.broadcast %cst_89 : f32 to vector<2x8xf32>
    %175 = arith.mulf %174, %173 : vector<2x8xf32>
    %176 = math.tanh %175 : vector<2x8xf32>
    %cst_90 = arith.constant 1.000000e+00 : f32
    %177 = vector.broadcast %cst_90 : f32 to vector<2x8xf32>
    %178 = arith.addf %176, %177 : vector<2x8xf32>
    %cst_91 = arith.constant 5.000000e-01 : f32
    %179 = vector.broadcast %cst_91 : f32 to vector<2x8xf32>
    %180 = arith.mulf %179, %178 : vector<2x8xf32>
    %181 = vector.extract_strided_slice %14 {offsets = [0, 0], sizes = [8, 96], strides = [1, 1]} : vector<24x96xf32> to vector<8x96xf32>
    %cst_92 = arith.constant dense<0.000000e+00> : vector<2x96xf32>
    %182 = tpu.matmul %124, %181, %cst_92 {dimension_numbers = #tpu.dot_dimension_numbers<[1], [0], [0], [1], [0, 0, 1, 1], [], []>} : vector<2x8xf32>, vector<8x96xf32>, vector<2x96xf32> -> vector<2x96xf32>
    %183 = vector.extract_strided_slice %14 {offsets = [8, 0], sizes = [16, 96], strides = [1, 1]} : vector<24x96xf32> to vector<16x96xf32>
    %cst_93 = arith.constant dense<0.000000e+00> : vector<2x96xf32>
    %184 = tpu.matmul %156, %183, %cst_93 {dimension_numbers = #tpu.dot_dimension_numbers<[1], [0], [0], [1], [0, 0, 1, 1], [], []>} : vector<2x16xf32>, vector<16x96xf32>, vector<2x96xf32> -> vector<2x96xf32>
    %185 = arith.addf %182, %184 : vector<2x96xf32>
    %186 = vector.broadcast %15 : vector<1x96xf32> to vector<2x96xf32>
    %187 = arith.addf %185, %186 : vector<2x96xf32>
    %cst_94 = arith.constant dense<0.000000e+00> : vector<2x96xf32>
    %188 = tpu.matmul %117, %16, %cst_94 {dimension_numbers = #tpu.dot_dimension_numbers<[1], [0], [0], [1], [0, 0, 1, 1], [], []>} : vector<2x32xf32>, vector<32x96xf32>, vector<2x96xf32> -> vector<2x96xf32>
    %189 = vector.broadcast %17 : vector<1x96xf32> to vector<2x96xf32>
    %190 = arith.addf %188, %189 : vector<2x96xf32>
    %191 = vector.extract_strided_slice %187 {offsets = [0, 0], sizes = [2, 32], strides = [1, 1]} : vector<2x96xf32> to vector<2x32xf32>
    %192 = vector.extract_strided_slice %190 {offsets = [0, 0], sizes = [2, 32], strides = [1, 1]} : vector<2x96xf32> to vector<2x32xf32>
    %193 = arith.addf %191, %192 : vector<2x32xf32>
    %cst_95 = arith.constant 5.000000e-01 : f32
    %194 = vector.broadcast %cst_95 : f32 to vector<2x32xf32>
    %195 = arith.mulf %194, %193 : vector<2x32xf32>
    %196 = math.tanh %195 : vector<2x32xf32>
    %cst_96 = arith.constant 1.000000e+00 : f32
    %197 = vector.broadcast %cst_96 : f32 to vector<2x32xf32>
    %198 = arith.addf %196, %197 : vector<2x32xf32>
    %cst_97 = arith.constant 5.000000e-01 : f32
    %199 = vector.broadcast %cst_97 : f32 to vector<2x32xf32>
    %200 = arith.mulf %199, %198 : vector<2x32xf32>
    %201 = vector.extract_strided_slice %187 {offsets = [0, 32], sizes = [2, 32], strides = [1, 1]} : vector<2x96xf32> to vector<2x32xf32>
    %202 = vector.extract_strided_slice %190 {offsets = [0, 32], sizes = [2, 32], strides = [1, 1]} : vector<2x96xf32> to vector<2x32xf32>
    %203 = arith.addf %201, %202 : vector<2x32xf32>
    %cst_98 = arith.constant 5.000000e-01 : f32
    %204 = vector.broadcast %cst_98 : f32 to vector<2x32xf32>
    %205 = arith.mulf %204, %203 : vector<2x32xf32>
    %206 = math.tanh %205 : vector<2x32xf32>
    %cst_99 = arith.constant 1.000000e+00 : f32
    %207 = vector.broadcast %cst_99 : f32 to vector<2x32xf32>
    %208 = arith.addf %206, %207 : vector<2x32xf32>
    %cst_100 = arith.constant 5.000000e-01 : f32
    %209 = vector.broadcast %cst_100 : f32 to vector<2x32xf32>
    %210 = arith.mulf %209, %208 : vector<2x32xf32>
    %211 = vector.extract_strided_slice %187 {offsets = [0, 64], sizes = [2, 32], strides = [1, 1]} : vector<2x96xf32> to vector<2x32xf32>
    %212 = vector.extract_strided_slice %190 {offsets = [0, 64], sizes = [2, 32], strides = [1, 1]} : vector<2x96xf32> to vector<2x32xf32>
    %213 = arith.mulf %200, %212 : vector<2x32xf32>
    %214 = arith.addf %211, %213 : vector<2x32xf32>
    %215 = math.tanh %214 : vector<2x32xf32>
    %cst_101 = arith.constant 1.000000e+00 : f32
    %216 = vector.broadcast %cst_101 : f32 to vector<2x32xf32>
    %217 = arith.subf %216, %210 : vector<2x32xf32>
    %218 = arith.mulf %217, %215 : vector<2x32xf32>
    %219 = arith.mulf %210, %117 : vector<2x32xf32>
    %220 = arith.addf %218, %219 : vector<2x32xf32>
    %221 = arith.index_cast %c1_i32 : i32 to index
    %c0_102 = arith.constant 0 : index
    %c0_103 = arith.constant 0 : index
    %222 = vector.load %arg21[%221, %c0_102, %c0_103] : memref<8x2x8xf32, #tpu.memory_space<vmem>>, vector<1x2x8xf32>
    %223 = vector.shape_cast %222 : vector<1x2x8xf32> to vector<2x8xf32>
    %224 = vector.shape_cast %180 : vector<2x8xf32> to vector<1x2x8xf32>
    tpu.vector_store %arg21[%221, %c0_102, %c0_103], %224 {strides = array<i32>} : memref<8x2x8xf32, #tpu.memory_space<vmem>>, vector<1x2x8xf32>,
    %c2_i32 = arith.constant 2 : i32
    %225 = arith.index_cast %c2_i32 : i32 to index
    %c0_104 = arith.constant 0 : index
    %c0_105 = arith.constant 0 : index
    %226 = vector.load %arg0[%225, %c0_104, %c0_105] : memref<8x2x8xf32, #tpu.memory_space<vmem>>, vector<1x2x8xf32>
    %227 = vector.shape_cast %226 : vector<1x2x8xf32> to vector<2x8xf32>
    %228 = arith.index_cast %c2_i32 : i32 to index
    %c0_106 = arith.constant 0 : index
    %c0_107 = arith.constant 0 : index
    %229 = vector.load %arg1[%228, %c0_106, %c0_107] : memref<8x2x16xf32, #tpu.memory_space<vmem>>, vector<1x2x16xf32>
    %230 = vector.shape_cast %229 : vector<1x2x16xf32> to vector<2x16xf32>
    %231 = vector.extract_strided_slice %0 {offsets = [0, 0], sizes = [8, 32], strides = [1, 1]} : vector<40x32xf32> to vector<8x32xf32>
    %cst_108 = arith.constant dense<0.000000e+00> : vector<2x32xf32>
    %232 = tpu.matmul %227, %231, %cst_108 {dimension_numbers = #tpu.dot_dimension_numbers<[1], [0], [0], [1], [0, 0, 1, 1], [], []>} : vector<2x8xf32>, vector<8x32xf32>, vector<2x32xf32> -> vector<2x32xf32>
    %233 = vector.extract_strided_slice %0 {offsets = [8, 0], sizes = [32, 32], strides = [1, 1]} : vector<40x32xf32> to vector<32x32xf32>
    %cst_109 = arith.constant dense<0.000000e+00> : vector<2x32xf32>
    %234 = tpu.matmul %220, %233, %cst_109 {dimension_numbers = #tpu.dot_dimension_numbers<[1], [0], [0], [1], [0, 0, 1, 1], [], []>} : vector<2x32xf32>, vector<32x32xf32>, vector<2x32xf32> -> vector<2x32xf32>
    %235 = arith.addf %232, %234 : vector<2x32xf32>
    %236 = vector.broadcast %1 : vector<1x32xf32> to vector<2x32xf32>
    %237 = arith.addf %235, %236 : vector<2x32xf32>
    %cst_110 = arith.constant 0.000000e+00 : f32
    %238 = vector.broadcast %cst_110 : f32 to vector<2x32xf32>
    %239 = arith.maximumf %237, %238 : vector<2x32xf32>
    %cst_111 = arith.constant dense<0.000000e+00> : vector<2x32xf32>
    %240 = tpu.matmul %239, %2, %cst_111 {dimension_numbers = #tpu.dot_dimension_numbers<[1], [0], [0], [1], [0, 0, 1, 1], [], []>} : vector<2x32xf32>, vector<32x32xf32>, vector<2x32xf32> -> vector<2x32xf32>
    %241 = vector.broadcast %3 : vector<1x32xf32> to vector<2x32xf32>
    %242 = arith.addf %240, %241 : vector<2x32xf32>
    %cst_112 = arith.constant 0.000000e+00 : f32
    %243 = vector.broadcast %cst_112 : f32 to vector<2x32xf32>
    %244 = arith.maximumf %242, %243 : vector<2x32xf32>
    %cst_113 = arith.constant dense<0.000000e+00> : vector<2x16xf32>
    %245 = tpu.matmul %244, %4, %cst_113 {dimension_numbers = #tpu.dot_dimension_numbers<[1], [0], [0], [1], [0, 0, 1, 1], [], []>} : vector<2x32xf32>, vector<32x16xf32>, vector<2x16xf32> -> vector<2x16xf32>
    %246 = vector.broadcast %5 : vector<1x16xf32> to vector<2x16xf32>
    %247 = arith.addf %245, %246 : vector<2x16xf32>
    %cst_114 = arith.constant dense<0.000000e+00> : vector<2x16xf32>
    %248 = tpu.matmul %244, %6, %cst_114 {dimension_numbers = #tpu.dot_dimension_numbers<[1], [0], [0], [1], [0, 0, 1, 1], [], []>} : vector<2x32xf32>, vector<32x16xf32>, vector<2x16xf32> -> vector<2x16xf32>
    %249 = vector.broadcast %7 : vector<1x16xf32> to vector<2x16xf32>
    %250 = arith.addf %248, %249 : vector<2x16xf32>
    %cst_115 = arith.constant 2.000000e+01 : f32
    %251 = vector.broadcast %cst_115 : f32 to vector<2x16xf32>
    %252 = arith.cmpf ogt, %250, %251 : vector<2x16xf32>
    %cst_116 = arith.constant 2.000000e+01 : f32
    %253 = vector.broadcast %cst_116 : f32 to vector<2x16xf32>
    %254 = arith.minimumf %250, %253 : vector<2x16xf32>
    %255 = math.exp %254 : vector<2x16xf32>
    %256 = math.log1p %255 : vector<2x16xf32>
    %257 = arith.select %252, %250, %256 : vector<2x16xi1>, vector<2x16xf32>
    %258 = arith.mulf %230, %257 : vector<2x16xf32>
    %259 = arith.addf %258, %247 : vector<2x16xf32>
    %260 = vector.extract_strided_slice %8 {offsets = [0, 0], sizes = [16, 32], strides = [1, 1]} : vector<48x32xf32> to vector<16x32xf32>
    %cst_117 = arith.constant dense<0.000000e+00> : vector<2x32xf32>
    %261 = tpu.matmul %259, %260, %cst_117 {dimension_numbers = #tpu.dot_dimension_numbers<[1], [0], [0], [1], [0, 0, 1, 1], [], []>} : vector<2x16xf32>, vector<16x32xf32>, vector<2x32xf32> -> vector<2x32xf32>
    %262 = vector.extract_strided_slice %8 {offsets = [16, 0], sizes = [32, 32], strides = [1, 1]} : vector<48x32xf32> to vector<32x32xf32>
    %cst_118 = arith.constant dense<0.000000e+00> : vector<2x32xf32>
    %263 = tpu.matmul %220, %262, %cst_118 {dimension_numbers = #tpu.dot_dimension_numbers<[1], [0], [0], [1], [0, 0, 1, 1], [], []>} : vector<2x32xf32>, vector<32x32xf32>, vector<2x32xf32> -> vector<2x32xf32>
    %264 = arith.addf %261, %263 : vector<2x32xf32>
    %265 = vector.broadcast %9 : vector<1x32xf32> to vector<2x32xf32>
    %266 = arith.addf %264, %265 : vector<2x32xf32>
    %cst_119 = arith.constant 0.000000e+00 : f32
    %267 = vector.broadcast %cst_119 : f32 to vector<2x32xf32>
    %268 = arith.maximumf %266, %267 : vector<2x32xf32>
    %cst_120 = arith.constant dense<0.000000e+00> : vector<2x32xf32>
    %269 = tpu.matmul %268, %10, %cst_120 {dimension_numbers = #tpu.dot_dimension_numbers<[1], [0], [0], [1], [0, 0, 1, 1], [], []>} : vector<2x32xf32>, vector<32x32xf32>, vector<2x32xf32> -> vector<2x32xf32>
    %270 = vector.broadcast %11 : vector<1x32xf32> to vector<2x32xf32>
    %271 = arith.addf %269, %270 : vector<2x32xf32>
    %cst_121 = arith.constant 0.000000e+00 : f32
    %272 = vector.broadcast %cst_121 : f32 to vector<2x32xf32>
    %273 = arith.maximumf %271, %272 : vector<2x32xf32>
    %cst_122 = arith.constant dense<0.000000e+00> : vector<2x8xf32>
    %274 = tpu.matmul %273, %12, %cst_122 {dimension_numbers = #tpu.dot_dimension_numbers<[1], [0], [0], [1], [0, 0, 1, 1], [], []>} : vector<2x32xf32>, vector<32x8xf32>, vector<2x8xf32> -> vector<2x8xf32>
    %275 = vector.broadcast %13 : vector<1x8xf32> to vector<2x8xf32>
    %276 = arith.addf %274, %275 : vector<2x8xf32>
    %cst_123 = arith.constant 5.000000e-01 : f32
    %277 = vector.broadcast %cst_123 : f32 to vector<2x8xf32>
    %278 = arith.mulf %277, %276 : vector<2x8xf32>
    %279 = math.tanh %278 : vector<2x8xf32>
    %cst_124 = arith.constant 1.000000e+00 : f32
    %280 = vector.broadcast %cst_124 : f32 to vector<2x8xf32>
    %281 = arith.addf %279, %280 : vector<2x8xf32>
    %cst_125 = arith.constant 5.000000e-01 : f32
    %282 = vector.broadcast %cst_125 : f32 to vector<2x8xf32>
    %283 = arith.mulf %282, %281 : vector<2x8xf32>
    %284 = vector.extract_strided_slice %14 {offsets = [0, 0], sizes = [8, 96], strides = [1, 1]} : vector<24x96xf32> to vector<8x96xf32>
    %cst_126 = arith.constant dense<0.000000e+00> : vector<2x96xf32>
    %285 = tpu.matmul %227, %284, %cst_126 {dimension_numbers = #tpu.dot_dimension_numbers<[1], [0], [0], [1], [0, 0, 1, 1], [], []>} : vector<2x8xf32>, vector<8x96xf32>, vector<2x96xf32> -> vector<2x96xf32>
    %286 = vector.extract_strided_slice %14 {offsets = [8, 0], sizes = [16, 96], strides = [1, 1]} : vector<24x96xf32> to vector<16x96xf32>
    %cst_127 = arith.constant dense<0.000000e+00> : vector<2x96xf32>
    %287 = tpu.matmul %259, %286, %cst_127 {dimension_numbers = #tpu.dot_dimension_numbers<[1], [0], [0], [1], [0, 0, 1, 1], [], []>} : vector<2x16xf32>, vector<16x96xf32>, vector<2x96xf32> -> vector<2x96xf32>
    %288 = arith.addf %285, %287 : vector<2x96xf32>
    %289 = vector.broadcast %15 : vector<1x96xf32> to vector<2x96xf32>
    %290 = arith.addf %288, %289 : vector<2x96xf32>
    %cst_128 = arith.constant dense<0.000000e+00> : vector<2x96xf32>
    %291 = tpu.matmul %220, %16, %cst_128 {dimension_numbers = #tpu.dot_dimension_numbers<[1], [0], [0], [1], [0, 0, 1, 1], [], []>} : vector<2x32xf32>, vector<32x96xf32>, vector<2x96xf32> -> vector<2x96xf32>
    %292 = vector.broadcast %17 : vector<1x96xf32> to vector<2x96xf32>
    %293 = arith.addf %291, %292 : vector<2x96xf32>
    %294 = vector.extract_strided_slice %290 {offsets = [0, 0], sizes = [2, 32], strides = [1, 1]} : vector<2x96xf32> to vector<2x32xf32>
    %295 = vector.extract_strided_slice %293 {offsets = [0, 0], sizes = [2, 32], strides = [1, 1]} : vector<2x96xf32> to vector<2x32xf32>
    %296 = arith.addf %294, %295 : vector<2x32xf32>
    %cst_129 = arith.constant 5.000000e-01 : f32
    %297 = vector.broadcast %cst_129 : f32 to vector<2x32xf32>
    %298 = arith.mulf %297, %296 : vector<2x32xf32>
    %299 = math.tanh %298 : vector<2x32xf32>
    %cst_130 = arith.constant 1.000000e+00 : f32
    %300 = vector.broadcast %cst_130 : f32 to vector<2x32xf32>
    %301 = arith.addf %299, %300 : vector<2x32xf32>
    %cst_131 = arith.constant 5.000000e-01 : f32
    %302 = vector.broadcast %cst_131 : f32 to vector<2x32xf32>
    %303 = arith.mulf %302, %301 : vector<2x32xf32>
    %304 = vector.extract_strided_slice %290 {offsets = [0, 32], sizes = [2, 32], strides = [1, 1]} : vector<2x96xf32> to vector<2x32xf32>
    %305 = vector.extract_strided_slice %293 {offsets = [0, 32], sizes = [2, 32], strides = [1, 1]} : vector<2x96xf32> to vector<2x32xf32>
    %306 = arith.addf %304, %305 : vector<2x32xf32>
    %cst_132 = arith.constant 5.000000e-01 : f32
    %307 = vector.broadcast %cst_132 : f32 to vector<2x32xf32>
    %308 = arith.mulf %307, %306 : vector<2x32xf32>
    %309 = math.tanh %308 : vector<2x32xf32>
    %cst_133 = arith.constant 1.000000e+00 : f32
    %310 = vector.broadcast %cst_133 : f32 to vector<2x32xf32>
    %311 = arith.addf %309, %310 : vector<2x32xf32>
    %cst_134 = arith.constant 5.000000e-01 : f32
    %312 = vector.broadcast %cst_134 : f32 to vector<2x32xf32>
    %313 = arith.mulf %312, %311 : vector<2x32xf32>
    %314 = vector.extract_strided_slice %290 {offsets = [0, 64], sizes = [2, 32], strides = [1, 1]} : vector<2x96xf32> to vector<2x32xf32>
    %315 = vector.extract_strided_slice %293 {offsets = [0, 64], sizes = [2, 32], strides = [1, 1]} : vector<2x96xf32> to vector<2x32xf32>
    %316 = arith.mulf %303, %315 : vector<2x32xf32>
    %317 = arith.addf %314, %316 : vector<2x32xf32>
    %318 = math.tanh %317 : vector<2x32xf32>
    %cst_135 = arith.constant 1.000000e+00 : f32
    %319 = vector.broadcast %cst_135 : f32 to vector<2x32xf32>
    %320 = arith.subf %319, %313 : vector<2x32xf32>
    %321 = arith.mulf %320, %318 : vector<2x32xf32>
    %322 = arith.mulf %313, %220 : vector<2x32xf32>
    %323 = arith.addf %321, %322 : vector<2x32xf32>
    %324 = arith.index_cast %c2_i32 : i32 to index
    %c0_136 = arith.constant 0 : index
    %c0_137 = arith.constant 0 : index
    %325 = vector.load %arg21[%324, %c0_136, %c0_137] : memref<8x2x8xf32, #tpu.memory_space<vmem>>, vector<1x2x8xf32>
    %326 = vector.shape_cast %325 : vector<1x2x8xf32> to vector<2x8xf32>
    %327 = vector.shape_cast %283 : vector<2x8xf32> to vector<1x2x8xf32>
    tpu.vector_store %arg21[%324, %c0_136, %c0_137], %327 {strides = array<i32>} : memref<8x2x8xf32, #tpu.memory_space<vmem>>, vector<1x2x8xf32>,
    %c3_i32 = arith.constant 3 : i32
    %328 = arith.index_cast %c3_i32 : i32 to index
    %c0_138 = arith.constant 0 : index
    %c0_139 = arith.constant 0 : index
    %329 = vector.load %arg0[%328, %c0_138, %c0_139] : memref<8x2x8xf32, #tpu.memory_space<vmem>>, vector<1x2x8xf32>
    %330 = vector.shape_cast %329 : vector<1x2x8xf32> to vector<2x8xf32>
    %331 = arith.index_cast %c3_i32 : i32 to index
    %c0_140 = arith.constant 0 : index
    %c0_141 = arith.constant 0 : index
    %332 = vector.load %arg1[%331, %c0_140, %c0_141] : memref<8x2x16xf32, #tpu.memory_space<vmem>>, vector<1x2x16xf32>
    %333 = vector.shape_cast %332 : vector<1x2x16xf32> to vector<2x16xf32>
    %334 = vector.extract_strided_slice %0 {offsets = [0, 0], sizes = [8, 32], strides = [1, 1]} : vector<40x32xf32> to vector<8x32xf32>
    %cst_142 = arith.constant dense<0.000000e+00> : vector<2x32xf32>
    %335 = tpu.matmul %330, %334, %cst_142 {dimension_numbers = #tpu.dot_dimension_numbers<[1], [0], [0], [1], [0, 0, 1, 1], [], []>} : vector<2x8xf32>, vector<8x32xf32>, vector<2x32xf32> -> vector<2x32xf32>
    %336 = vector.extract_strided_slice %0 {offsets = [8, 0], sizes = [32, 32], strides = [1, 1]} : vector<40x32xf32> to vector<32x32xf32>
    %cst_143 = arith.constant dense<0.000000e+00> : vector<2x32xf32>
    %337 = tpu.matmul %323, %336, %cst_143 {dimension_numbers = #tpu.dot_dimension_numbers<[1], [0], [0], [1], [0, 0, 1, 1], [], []>} : vector<2x32xf32>, vector<32x32xf32>, vector<2x32xf32> -> vector<2x32xf32>
    %338 = arith.addf %335, %337 : vector<2x32xf32>
    %339 = vector.broadcast %1 : vector<1x32xf32> to vector<2x32xf32>
    %340 = arith.addf %338, %339 : vector<2x32xf32>
    %cst_144 = arith.constant 0.000000e+00 : f32
    %341 = vector.broadcast %cst_144 : f32 to vector<2x32xf32>
    %342 = arith.maximumf %340, %341 : vector<2x32xf32>
    %cst_145 = arith.constant dense<0.000000e+00> : vector<2x32xf32>
    %343 = tpu.matmul %342, %2, %cst_145 {dimension_numbers = #tpu.dot_dimension_numbers<[1], [0], [0], [1], [0, 0, 1, 1], [], []>} : vector<2x32xf32>, vector<32x32xf32>, vector<2x32xf32> -> vector<2x32xf32>
    %344 = vector.broadcast %3 : vector<1x32xf32> to vector<2x32xf32>
    %345 = arith.addf %343, %344 : vector<2x32xf32>
    %cst_146 = arith.constant 0.000000e+00 : f32
    %346 = vector.broadcast %cst_146 : f32 to vector<2x32xf32>
    %347 = arith.maximumf %345, %346 : vector<2x32xf32>
    %cst_147 = arith.constant dense<0.000000e+00> : vector<2x16xf32>
    %348 = tpu.matmul %347, %4, %cst_147 {dimension_numbers = #tpu.dot_dimension_numbers<[1], [0], [0], [1], [0, 0, 1, 1], [], []>} : vector<2x32xf32>, vector<32x16xf32>, vector<2x16xf32> -> vector<2x16xf32>
    %349 = vector.broadcast %5 : vector<1x16xf32> to vector<2x16xf32>
    %350 = arith.addf %348, %349 : vector<2x16xf32>
    %cst_148 = arith.constant dense<0.000000e+00> : vector<2x16xf32>
    %351 = tpu.matmul %347, %6, %cst_148 {dimension_numbers = #tpu.dot_dimension_numbers<[1], [0], [0], [1], [0, 0, 1, 1], [], []>} : vector<2x32xf32>, vector<32x16xf32>, vector<2x16xf32> -> vector<2x16xf32>
    %352 = vector.broadcast %7 : vector<1x16xf32> to vector<2x16xf32>
    %353 = arith.addf %351, %352 : vector<2x16xf32>
    %cst_149 = arith.constant 2.000000e+01 : f32
    %354 = vector.broadcast %cst_149 : f32 to vector<2x16xf32>
    %355 = arith.cmpf ogt, %353, %354 : vector<2x16xf32>
    %cst_150 = arith.constant 2.000000e+01 : f32
    %356 = vector.broadcast %cst_150 : f32 to vector<2x16xf32>
    %357 = arith.minimumf %353, %356 : vector<2x16xf32>
    %358 = math.exp %357 : vector<2x16xf32>
    %359 = math.log1p %358 : vector<2x16xf32>
    %360 = arith.select %355, %353, %359 : vector<2x16xi1>, vector<2x16xf32>
    %361 = arith.mulf %333, %360 : vector<2x16xf32>
    %362 = arith.addf %361, %350 : vector<2x16xf32>
    %363 = vector.extract_strided_slice %8 {offsets = [0, 0], sizes = [16, 32], strides = [1, 1]} : vector<48x32xf32> to vector<16x32xf32>
    %cst_151 = arith.constant dense<0.000000e+00> : vector<2x32xf32>
    %364 = tpu.matmul %362, %363, %cst_151 {dimension_numbers = #tpu.dot_dimension_numbers<[1], [0], [0], [1], [0, 0, 1, 1], [], []>} : vector<2x16xf32>, vector<16x32xf32>, vector<2x32xf32> -> vector<2x32xf32>
    %365 = vector.extract_strided_slice %8 {offsets = [16, 0], sizes = [32, 32], strides = [1, 1]} : vector<48x32xf32> to vector<32x32xf32>
    %cst_152 = arith.constant dense<0.000000e+00> : vector<2x32xf32>
    %366 = tpu.matmul %323, %365, %cst_152 {dimension_numbers = #tpu.dot_dimension_numbers<[1], [0], [0], [1], [0, 0, 1, 1], [], []>} : vector<2x32xf32>, vector<32x32xf32>, vector<2x32xf32> -> vector<2x32xf32>
    %367 = arith.addf %364, %366 : vector<2x32xf32>
    %368 = vector.broadcast %9 : vector<1x32xf32> to vector<2x32xf32>
    %369 = arith.addf %367, %368 : vector<2x32xf32>
    %cst_153 = arith.constant 0.000000e+00 : f32
    %370 = vector.broadcast %cst_153 : f32 to vector<2x32xf32>
    %371 = arith.maximumf %369, %370 : vector<2x32xf32>
    %cst_154 = arith.constant dense<0.000000e+00> : vector<2x32xf32>
    %372 = tpu.matmul %371, %10, %cst_154 {dimension_numbers = #tpu.dot_dimension_numbers<[1], [0], [0], [1], [0, 0, 1, 1], [], []>} : vector<2x32xf32>, vector<32x32xf32>, vector<2x32xf32> -> vector<2x32xf32>
    %373 = vector.broadcast %11 : vector<1x32xf32> to vector<2x32xf32>
    %374 = arith.addf %372, %373 : vector<2x32xf32>
    %cst_155 = arith.constant 0.000000e+00 : f32
    %375 = vector.broadcast %cst_155 : f32 to vector<2x32xf32>
    %376 = arith.maximumf %374, %375 : vector<2x32xf32>
    %cst_156 = arith.constant dense<0.000000e+00> : vector<2x8xf32>
    %377 = tpu.matmul %376, %12, %cst_156 {dimension_numbers = #tpu.dot_dimension_numbers<[1], [0], [0], [1], [0, 0, 1, 1], [], []>} : vector<2x32xf32>, vector<32x8xf32>, vector<2x8xf32> -> vector<2x8xf32>
    %378 = vector.broadcast %13 : vector<1x8xf32> to vector<2x8xf32>
    %379 = arith.addf %377, %378 : vector<2x8xf32>
    %cst_157 = arith.constant 5.000000e-01 : f32
    %380 = vector.broadcast %cst_157 : f32 to vector<2x8xf32>
    %381 = arith.mulf %380, %379 : vector<2x8xf32>
    %382 = math.tanh %381 : vector<2x8xf32>
    %cst_158 = arith.constant 1.000000e+00 : f32
    %383 = vector.broadcast %cst_158 : f32 to vector<2x8xf32>
    %384 = arith.addf %382, %383 : vector<2x8xf32>
    %cst_159 = arith.constant 5.000000e-01 : f32
    %385 = vector.broadcast %cst_159 : f32 to vector<2x8xf32>
    %386 = arith.mulf %385, %384 : vector<2x8xf32>
    %387 = vector.extract_strided_slice %14 {offsets = [0, 0], sizes = [8, 96], strides = [1, 1]} : vector<24x96xf32> to vector<8x96xf32>
    %cst_160 = arith.constant dense<0.000000e+00> : vector<2x96xf32>
    %388 = tpu.matmul %330, %387, %cst_160 {dimension_numbers = #tpu.dot_dimension_numbers<[1], [0], [0], [1], [0, 0, 1, 1], [], []>} : vector<2x8xf32>, vector<8x96xf32>, vector<2x96xf32> -> vector<2x96xf32>
    %389 = vector.extract_strided_slice %14 {offsets = [8, 0], sizes = [16, 96], strides = [1, 1]} : vector<24x96xf32> to vector<16x96xf32>
    %cst_161 = arith.constant dense<0.000000e+00> : vector<2x96xf32>
    %390 = tpu.matmul %362, %389, %cst_161 {dimension_numbers = #tpu.dot_dimension_numbers<[1], [0], [0], [1], [0, 0, 1, 1], [], []>} : vector<2x16xf32>, vector<16x96xf32>, vector<2x96xf32> -> vector<2x96xf32>
    %391 = arith.addf %388, %390 : vector<2x96xf32>
    %392 = vector.broadcast %15 : vector<1x96xf32> to vector<2x96xf32>
    %393 = arith.addf %391, %392 : vector<2x96xf32>
    %cst_162 = arith.constant dense<0.000000e+00> : vector<2x96xf32>
    %394 = tpu.matmul %323, %16, %cst_162 {dimension_numbers = #tpu.dot_dimension_numbers<[1], [0], [0], [1], [0, 0, 1, 1], [], []>} : vector<2x32xf32>, vector<32x96xf32>, vector<2x96xf32> -> vector<2x96xf32>
    %395 = vector.broadcast %17 : vector<1x96xf32> to vector<2x96xf32>
    %396 = arith.addf %394, %395 : vector<2x96xf32>
    %397 = vector.extract_strided_slice %393 {offsets = [0, 0], sizes = [2, 32], strides = [1, 1]} : vector<2x96xf32> to vector<2x32xf32>
    %398 = vector.extract_strided_slice %396 {offsets = [0, 0], sizes = [2, 32], strides = [1, 1]} : vector<2x96xf32> to vector<2x32xf32>
    %399 = arith.addf %397, %398 : vector<2x32xf32>
    %cst_163 = arith.constant 5.000000e-01 : f32
    %400 = vector.broadcast %cst_163 : f32 to vector<2x32xf32>
    %401 = arith.mulf %400, %399 : vector<2x32xf32>
    %402 = math.tanh %401 : vector<2x32xf32>
    %cst_164 = arith.constant 1.000000e+00 : f32
    %403 = vector.broadcast %cst_164 : f32 to vector<2x32xf32>
    %404 = arith.addf %402, %403 : vector<2x32xf32>
    %cst_165 = arith.constant 5.000000e-01 : f32
    %405 = vector.broadcast %cst_165 : f32 to vector<2x32xf32>
    %406 = arith.mulf %405, %404 : vector<2x32xf32>
    %407 = vector.extract_strided_slice %393 {offsets = [0, 32], sizes = [2, 32], strides = [1, 1]} : vector<2x96xf32> to vector<2x32xf32>
    %408 = vector.extract_strided_slice %396 {offsets = [0, 32], sizes = [2, 32], strides = [1, 1]} : vector<2x96xf32> to vector<2x32xf32>
    %409 = arith.addf %407, %408 : vector<2x32xf32>
    %cst_166 = arith.constant 5.000000e-01 : f32
    %410 = vector.broadcast %cst_166 : f32 to vector<2x32xf32>
    %411 = arith.mulf %410, %409 : vector<2x32xf32>
    %412 = math.tanh %411 : vector<2x32xf32>
    %cst_167 = arith.constant 1.000000e+00 : f32
    %413 = vector.broadcast %cst_167 : f32 to vector<2x32xf32>
    %414 = arith.addf %412, %413 : vector<2x32xf32>
    %cst_168 = arith.constant 5.000000e-01 : f32
    %415 = vector.broadcast %cst_168 : f32 to vector<2x32xf32>
    %416 = arith.mulf %415, %414 : vector<2x32xf32>
    %417 = vector.extract_strided_slice %393 {offsets = [0, 64], sizes = [2, 32], strides = [1, 1]} : vector<2x96xf32> to vector<2x32xf32>
    %418 = vector.extract_strided_slice %396 {offsets = [0, 64], sizes = [2, 32], strides = [1, 1]} : vector<2x96xf32> to vector<2x32xf32>
    %419 = arith.mulf %406, %418 : vector<2x32xf32>
    %420 = arith.addf %417, %419 : vector<2x32xf32>
    %421 = math.tanh %420 : vector<2x32xf32>
    %cst_169 = arith.constant 1.000000e+00 : f32
    %422 = vector.broadcast %cst_169 : f32 to vector<2x32xf32>
    %423 = arith.subf %422, %416 : vector<2x32xf32>
    %424 = arith.mulf %423, %421 : vector<2x32xf32>
    %425 = arith.mulf %416, %323 : vector<2x32xf32>
    %426 = arith.addf %424, %425 : vector<2x32xf32>
    %427 = arith.index_cast %c3_i32 : i32 to index
    %c0_170 = arith.constant 0 : index
    %c0_171 = arith.constant 0 : index
    %428 = vector.load %arg21[%427, %c0_170, %c0_171] : memref<8x2x8xf32, #tpu.memory_space<vmem>>, vector<1x2x8xf32>
    %429 = vector.shape_cast %428 : vector<1x2x8xf32> to vector<2x8xf32>
    %430 = vector.shape_cast %386 : vector<2x8xf32> to vector<1x2x8xf32>
    tpu.vector_store %arg21[%427, %c0_170, %c0_171], %430 {strides = array<i32>} : memref<8x2x8xf32, #tpu.memory_space<vmem>>, vector<1x2x8xf32>,
    %c4_i32 = arith.constant 4 : i32
    %431 = arith.index_cast %c4_i32 : i32 to index
    %c0_172 = arith.constant 0 : index
    %c0_173 = arith.constant 0 : index
    %432 = vector.load %arg0[%431, %c0_172, %c0_173] : memref<8x2x8xf32, #tpu.memory_space<vmem>>, vector<1x2x8xf32>
    %433 = vector.shape_cast %432 : vector<1x2x8xf32> to vector<2x8xf32>
    %434 = arith.index_cast %c4_i32 : i32 to index
    %c0_174 = arith.constant 0 : index
    %c0_175 = arith.constant 0 : index
    %435 = vector.load %arg1[%434, %c0_174, %c0_175] : memref<8x2x16xf32, #tpu.memory_space<vmem>>, vector<1x2x16xf32>
    %436 = vector.shape_cast %435 : vector<1x2x16xf32> to vector<2x16xf32>
    %437 = vector.extract_strided_slice %0 {offsets = [0, 0], sizes = [8, 32], strides = [1, 1]} : vector<40x32xf32> to vector<8x32xf32>
    %cst_176 = arith.constant dense<0.000000e+00> : vector<2x32xf32>
    %438 = tpu.matmul %433, %437, %cst_176 {dimension_numbers = #tpu.dot_dimension_numbers<[1], [0], [0], [1], [0, 0, 1, 1], [], []>} : vector<2x8xf32>, vector<8x32xf32>, vector<2x32xf32> -> vector<2x32xf32>
    %439 = vector.extract_strided_slice %0 {offsets = [8, 0], sizes = [32, 32], strides = [1, 1]} : vector<40x32xf32> to vector<32x32xf32>
    %cst_177 = arith.constant dense<0.000000e+00> : vector<2x32xf32>
    %440 = tpu.matmul %426, %439, %cst_177 {dimension_numbers = #tpu.dot_dimension_numbers<[1], [0], [0], [1], [0, 0, 1, 1], [], []>} : vector<2x32xf32>, vector<32x32xf32>, vector<2x32xf32> -> vector<2x32xf32>
    %441 = arith.addf %438, %440 : vector<2x32xf32>
    %442 = vector.broadcast %1 : vector<1x32xf32> to vector<2x32xf32>
    %443 = arith.addf %441, %442 : vector<2x32xf32>
    %cst_178 = arith.constant 0.000000e+00 : f32
    %444 = vector.broadcast %cst_178 : f32 to vector<2x32xf32>
    %445 = arith.maximumf %443, %444 : vector<2x32xf32>
    %cst_179 = arith.constant dense<0.000000e+00> : vector<2x32xf32>
    %446 = tpu.matmul %445, %2, %cst_179 {dimension_numbers = #tpu.dot_dimension_numbers<[1], [0], [0], [1], [0, 0, 1, 1], [], []>} : vector<2x32xf32>, vector<32x32xf32>, vector<2x32xf32> -> vector<2x32xf32>
    %447 = vector.broadcast %3 : vector<1x32xf32> to vector<2x32xf32>
    %448 = arith.addf %446, %447 : vector<2x32xf32>
    %cst_180 = arith.constant 0.000000e+00 : f32
    %449 = vector.broadcast %cst_180 : f32 to vector<2x32xf32>
    %450 = arith.maximumf %448, %449 : vector<2x32xf32>
    %cst_181 = arith.constant dense<0.000000e+00> : vector<2x16xf32>
    %451 = tpu.matmul %450, %4, %cst_181 {dimension_numbers = #tpu.dot_dimension_numbers<[1], [0], [0], [1], [0, 0, 1, 1], [], []>} : vector<2x32xf32>, vector<32x16xf32>, vector<2x16xf32> -> vector<2x16xf32>
    %452 = vector.broadcast %5 : vector<1x16xf32> to vector<2x16xf32>
    %453 = arith.addf %451, %452 : vector<2x16xf32>
    %cst_182 = arith.constant dense<0.000000e+00> : vector<2x16xf32>
    %454 = tpu.matmul %450, %6, %cst_182 {dimension_numbers = #tpu.dot_dimension_numbers<[1], [0], [0], [1], [0, 0, 1, 1], [], []>} : vector<2x32xf32>, vector<32x16xf32>, vector<2x16xf32> -> vector<2x16xf32>
    %455 = vector.broadcast %7 : vector<1x16xf32> to vector<2x16xf32>
    %456 = arith.addf %454, %455 : vector<2x16xf32>
    %cst_183 = arith.constant 2.000000e+01 : f32
    %457 = vector.broadcast %cst_183 : f32 to vector<2x16xf32>
    %458 = arith.cmpf ogt, %456, %457 : vector<2x16xf32>
    %cst_184 = arith.constant 2.000000e+01 : f32
    %459 = vector.broadcast %cst_184 : f32 to vector<2x16xf32>
    %460 = arith.minimumf %456, %459 : vector<2x16xf32>
    %461 = math.exp %460 : vector<2x16xf32>
    %462 = math.log1p %461 : vector<2x16xf32>
    %463 = arith.select %458, %456, %462 : vector<2x16xi1>, vector<2x16xf32>
    %464 = arith.mulf %436, %463 : vector<2x16xf32>
    %465 = arith.addf %464, %453 : vector<2x16xf32>
    %466 = vector.extract_strided_slice %8 {offsets = [0, 0], sizes = [16, 32], strides = [1, 1]} : vector<48x32xf32> to vector<16x32xf32>
    %cst_185 = arith.constant dense<0.000000e+00> : vector<2x32xf32>
    %467 = tpu.matmul %465, %466, %cst_185 {dimension_numbers = #tpu.dot_dimension_numbers<[1], [0], [0], [1], [0, 0, 1, 1], [], []>} : vector<2x16xf32>, vector<16x32xf32>, vector<2x32xf32> -> vector<2x32xf32>
    %468 = vector.extract_strided_slice %8 {offsets = [16, 0], sizes = [32, 32], strides = [1, 1]} : vector<48x32xf32> to vector<32x32xf32>
    %cst_186 = arith.constant dense<0.000000e+00> : vector<2x32xf32>
    %469 = tpu.matmul %426, %468, %cst_186 {dimension_numbers = #tpu.dot_dimension_numbers<[1], [0], [0], [1], [0, 0, 1, 1], [], []>} : vector<2x32xf32>, vector<32x32xf32>, vector<2x32xf32> -> vector<2x32xf32>
    %470 = arith.addf %467, %469 : vector<2x32xf32>
    %471 = vector.broadcast %9 : vector<1x32xf32> to vector<2x32xf32>
    %472 = arith.addf %470, %471 : vector<2x32xf32>
    %cst_187 = arith.constant 0.000000e+00 : f32
    %473 = vector.broadcast %cst_187 : f32 to vector<2x32xf32>
    %474 = arith.maximumf %472, %473 : vector<2x32xf32>
    %cst_188 = arith.constant dense<0.000000e+00> : vector<2x32xf32>
    %475 = tpu.matmul %474, %10, %cst_188 {dimension_numbers = #tpu.dot_dimension_numbers<[1], [0], [0], [1], [0, 0, 1, 1], [], []>} : vector<2x32xf32>, vector<32x32xf32>, vector<2x32xf32> -> vector<2x32xf32>
    %476 = vector.broadcast %11 : vector<1x32xf32> to vector<2x32xf32>
    %477 = arith.addf %475, %476 : vector<2x32xf32>
    %cst_189 = arith.constant 0.000000e+00 : f32
    %478 = vector.broadcast %cst_189 : f32 to vector<2x32xf32>
    %479 = arith.maximumf %477, %478 : vector<2x32xf32>
    %cst_190 = arith.constant dense<0.000000e+00> : vector<2x8xf32>
    %480 = tpu.matmul %479, %12, %cst_190 {dimension_numbers = #tpu.dot_dimension_numbers<[1], [0], [0], [1], [0, 0, 1, 1], [], []>} : vector<2x32xf32>, vector<32x8xf32>, vector<2x8xf32> -> vector<2x8xf32>
    %481 = vector.broadcast %13 : vector<1x8xf32> to vector<2x8xf32>
    %482 = arith.addf %480, %481 : vector<2x8xf32>
    %cst_191 = arith.constant 5.000000e-01 : f32
    %483 = vector.broadcast %cst_191 : f32 to vector<2x8xf32>
    %484 = arith.mulf %483, %482 : vector<2x8xf32>
    %485 = math.tanh %484 : vector<2x8xf32>
    %cst_192 = arith.constant 1.000000e+00 : f32
    %486 = vector.broadcast %cst_192 : f32 to vector<2x8xf32>
    %487 = arith.addf %485, %486 : vector<2x8xf32>
    %cst_193 = arith.constant 5.000000e-01 : f32
    %488 = vector.broadcast %cst_193 : f32 to vector<2x8xf32>
    %489 = arith.mulf %488, %487 : vector<2x8xf32>
    %490 = vector.extract_strided_slice %14 {offsets = [0, 0], sizes = [8, 96], strides = [1, 1]} : vector<24x96xf32> to vector<8x96xf32>
    %cst_194 = arith.constant dense<0.000000e+00> : vector<2x96xf32>
    %491 = tpu.matmul %433, %490, %cst_194 {dimension_numbers = #tpu.dot_dimension_numbers<[1], [0], [0], [1], [0, 0, 1, 1], [], []>} : vector<2x8xf32>, vector<8x96xf32>, vector<2x96xf32> -> vector<2x96xf32>
    %492 = vector.extract_strided_slice %14 {offsets = [8, 0], sizes = [16, 96], strides = [1, 1]} : vector<24x96xf32> to vector<16x96xf32>
    %cst_195 = arith.constant dense<0.000000e+00> : vector<2x96xf32>
    %493 = tpu.matmul %465, %492, %cst_195 {dimension_numbers = #tpu.dot_dimension_numbers<[1], [0], [0], [1], [0, 0, 1, 1], [], []>} : vector<2x16xf32>, vector<16x96xf32>, vector<2x96xf32> -> vector<2x96xf32>
    %494 = arith.addf %491, %493 : vector<2x96xf32>
    %495 = vector.broadcast %15 : vector<1x96xf32> to vector<2x96xf32>
    %496 = arith.addf %494, %495 : vector<2x96xf32>
    %cst_196 = arith.constant dense<0.000000e+00> : vector<2x96xf32>
    %497 = tpu.matmul %426, %16, %cst_196 {dimension_numbers = #tpu.dot_dimension_numbers<[1], [0], [0], [1], [0, 0, 1, 1], [], []>} : vector<2x32xf32>, vector<32x96xf32>, vector<2x96xf32> -> vector<2x96xf32>
    %498 = vector.broadcast %17 : vector<1x96xf32> to vector<2x96xf32>
    %499 = arith.addf %497, %498 : vector<2x96xf32>
    %500 = vector.extract_strided_slice %496 {offsets = [0, 0], sizes = [2, 32], strides = [1, 1]} : vector<2x96xf32> to vector<2x32xf32>
    %501 = vector.extract_strided_slice %499 {offsets = [0, 0], sizes = [2, 32], strides = [1, 1]} : vector<2x96xf32> to vector<2x32xf32>
    %502 = arith.addf %500, %501 : vector<2x32xf32>
    %cst_197 = arith.constant 5.000000e-01 : f32
    %503 = vector.broadcast %cst_197 : f32 to vector<2x32xf32>
    %504 = arith.mulf %503, %502 : vector<2x32xf32>
    %505 = math.tanh %504 : vector<2x32xf32>
    %cst_198 = arith.constant 1.000000e+00 : f32
    %506 = vector.broadcast %cst_198 : f32 to vector<2x32xf32>
    %507 = arith.addf %505, %506 : vector<2x32xf32>
    %cst_199 = arith.constant 5.000000e-01 : f32
    %508 = vector.broadcast %cst_199 : f32 to vector<2x32xf32>
    %509 = arith.mulf %508, %507 : vector<2x32xf32>
    %510 = vector.extract_strided_slice %496 {offsets = [0, 32], sizes = [2, 32], strides = [1, 1]} : vector<2x96xf32> to vector<2x32xf32>
    %511 = vector.extract_strided_slice %499 {offsets = [0, 32], sizes = [2, 32], strides = [1, 1]} : vector<2x96xf32> to vector<2x32xf32>
    %512 = arith.addf %510, %511 : vector<2x32xf32>
    %cst_200 = arith.constant 5.000000e-01 : f32
    %513 = vector.broadcast %cst_200 : f32 to vector<2x32xf32>
    %514 = arith.mulf %513, %512 : vector<2x32xf32>
    %515 = math.tanh %514 : vector<2x32xf32>
    %cst_201 = arith.constant 1.000000e+00 : f32
    %516 = vector.broadcast %cst_201 : f32 to vector<2x32xf32>
    %517 = arith.addf %515, %516 : vector<2x32xf32>
    %cst_202 = arith.constant 5.000000e-01 : f32
    %518 = vector.broadcast %cst_202 : f32 to vector<2x32xf32>
    %519 = arith.mulf %518, %517 : vector<2x32xf32>
    %520 = vector.extract_strided_slice %496 {offsets = [0, 64], sizes = [2, 32], strides = [1, 1]} : vector<2x96xf32> to vector<2x32xf32>
    %521 = vector.extract_strided_slice %499 {offsets = [0, 64], sizes = [2, 32], strides = [1, 1]} : vector<2x96xf32> to vector<2x32xf32>
    %522 = arith.mulf %509, %521 : vector<2x32xf32>
    %523 = arith.addf %520, %522 : vector<2x32xf32>
    %524 = math.tanh %523 : vector<2x32xf32>
    %cst_203 = arith.constant 1.000000e+00 : f32
    %525 = vector.broadcast %cst_203 : f32 to vector<2x32xf32>
    %526 = arith.subf %525, %519 : vector<2x32xf32>
    %527 = arith.mulf %526, %524 : vector<2x32xf32>
    %528 = arith.mulf %519, %426 : vector<2x32xf32>
    %529 = arith.addf %527, %528 : vector<2x32xf32>
    %530 = arith.index_cast %c4_i32 : i32 to index
    %c0_204 = arith.constant 0 : index
    %c0_205 = arith.constant 0 : index
    %531 = vector.load %arg21[%530, %c0_204, %c0_205] : memref<8x2x8xf32, #tpu.memory_space<vmem>>, vector<1x2x8xf32>
    %532 = vector.shape_cast %531 : vector<1x2x8xf32> to vector<2x8xf32>
    %533 = vector.shape_cast %489 : vector<2x8xf32> to vector<1x2x8xf32>
    tpu.vector_store %arg21[%530, %c0_204, %c0_205], %533 {strides = array<i32>} : memref<8x2x8xf32, #tpu.memory_space<vmem>>, vector<1x2x8xf32>,
    %c5_i32 = arith.constant 5 : i32
    %534 = arith.index_cast %c5_i32 : i32 to index
    %c0_206 = arith.constant 0 : index
    %c0_207 = arith.constant 0 : index
    %535 = vector.load %arg0[%534, %c0_206, %c0_207] : memref<8x2x8xf32, #tpu.memory_space<vmem>>, vector<1x2x8xf32>
    %536 = vector.shape_cast %535 : vector<1x2x8xf32> to vector<2x8xf32>
    %537 = arith.index_cast %c5_i32 : i32 to index
    %c0_208 = arith.constant 0 : index
    %c0_209 = arith.constant 0 : index
    %538 = vector.load %arg1[%537, %c0_208, %c0_209] : memref<8x2x16xf32, #tpu.memory_space<vmem>>, vector<1x2x16xf32>
    %539 = vector.shape_cast %538 : vector<1x2x16xf32> to vector<2x16xf32>
    %540 = vector.extract_strided_slice %0 {offsets = [0, 0], sizes = [8, 32], strides = [1, 1]} : vector<40x32xf32> to vector<8x32xf32>
    %cst_210 = arith.constant dense<0.000000e+00> : vector<2x32xf32>
    %541 = tpu.matmul %536, %540, %cst_210 {dimension_numbers = #tpu.dot_dimension_numbers<[1], [0], [0], [1], [0, 0, 1, 1], [], []>} : vector<2x8xf32>, vector<8x32xf32>, vector<2x32xf32> -> vector<2x32xf32>
    %542 = vector.extract_strided_slice %0 {offsets = [8, 0], sizes = [32, 32], strides = [1, 1]} : vector<40x32xf32> to vector<32x32xf32>
    %cst_211 = arith.constant dense<0.000000e+00> : vector<2x32xf32>
    %543 = tpu.matmul %529, %542, %cst_211 {dimension_numbers = #tpu.dot_dimension_numbers<[1], [0], [0], [1], [0, 0, 1, 1], [], []>} : vector<2x32xf32>, vector<32x32xf32>, vector<2x32xf32> -> vector<2x32xf32>
    %544 = arith.addf %541, %543 : vector<2x32xf32>
    %545 = vector.broadcast %1 : vector<1x32xf32> to vector<2x32xf32>
    %546 = arith.addf %544, %545 : vector<2x32xf32>
    %cst_212 = arith.constant 0.000000e+00 : f32
    %547 = vector.broadcast %cst_212 : f32 to vector<2x32xf32>
    %548 = arith.maximumf %546, %547 : vector<2x32xf32>
    %cst_213 = arith.constant dense<0.000000e+00> : vector<2x32xf32>
    %549 = tpu.matmul %548, %2, %cst_213 {dimension_numbers = #tpu.dot_dimension_numbers<[1], [0], [0], [1], [0, 0, 1, 1], [], []>} : vector<2x32xf32>, vector<32x32xf32>, vector<2x32xf32> -> vector<2x32xf32>
    %550 = vector.broadcast %3 : vector<1x32xf32> to vector<2x32xf32>
    %551 = arith.addf %549, %550 : vector<2x32xf32>
    %cst_214 = arith.constant 0.000000e+00 : f32
    %552 = vector.broadcast %cst_214 : f32 to vector<2x32xf32>
    %553 = arith.maximumf %551, %552 : vector<2x32xf32>
    %cst_215 = arith.constant dense<0.000000e+00> : vector<2x16xf32>
    %554 = tpu.matmul %553, %4, %cst_215 {dimension_numbers = #tpu.dot_dimension_numbers<[1], [0], [0], [1], [0, 0, 1, 1], [], []>} : vector<2x32xf32>, vector<32x16xf32>, vector<2x16xf32> -> vector<2x16xf32>
    %555 = vector.broadcast %5 : vector<1x16xf32> to vector<2x16xf32>
    %556 = arith.addf %554, %555 : vector<2x16xf32>
    %cst_216 = arith.constant dense<0.000000e+00> : vector<2x16xf32>
    %557 = tpu.matmul %553, %6, %cst_216 {dimension_numbers = #tpu.dot_dimension_numbers<[1], [0], [0], [1], [0, 0, 1, 1], [], []>} : vector<2x32xf32>, vector<32x16xf32>, vector<2x16xf32> -> vector<2x16xf32>
    %558 = vector.broadcast %7 : vector<1x16xf32> to vector<2x16xf32>
    %559 = arith.addf %557, %558 : vector<2x16xf32>
    %cst_217 = arith.constant 2.000000e+01 : f32
    %560 = vector.broadcast %cst_217 : f32 to vector<2x16xf32>
    %561 = arith.cmpf ogt, %559, %560 : vector<2x16xf32>
    %cst_218 = arith.constant 2.000000e+01 : f32
    %562 = vector.broadcast %cst_218 : f32 to vector<2x16xf32>
    %563 = arith.minimumf %559, %562 : vector<2x16xf32>
    %564 = math.exp %563 : vector<2x16xf32>
    %565 = math.log1p %564 : vector<2x16xf32>
    %566 = arith.select %561, %559, %565 : vector<2x16xi1>, vector<2x16xf32>
    %567 = arith.mulf %539, %566 : vector<2x16xf32>
    %568 = arith.addf %567, %556 : vector<2x16xf32>
    %569 = vector.extract_strided_slice %8 {offsets = [0, 0], sizes = [16, 32], strides = [1, 1]} : vector<48x32xf32> to vector<16x32xf32>
    %cst_219 = arith.constant dense<0.000000e+00> : vector<2x32xf32>
    %570 = tpu.matmul %568, %569, %cst_219 {dimension_numbers = #tpu.dot_dimension_numbers<[1], [0], [0], [1], [0, 0, 1, 1], [], []>} : vector<2x16xf32>, vector<16x32xf32>, vector<2x32xf32> -> vector<2x32xf32>
    %571 = vector.extract_strided_slice %8 {offsets = [16, 0], sizes = [32, 32], strides = [1, 1]} : vector<48x32xf32> to vector<32x32xf32>
    %cst_220 = arith.constant dense<0.000000e+00> : vector<2x32xf32>
    %572 = tpu.matmul %529, %571, %cst_220 {dimension_numbers = #tpu.dot_dimension_numbers<[1], [0], [0], [1], [0, 0, 1, 1], [], []>} : vector<2x32xf32>, vector<32x32xf32>, vector<2x32xf32> -> vector<2x32xf32>
    %573 = arith.addf %570, %572 : vector<2x32xf32>
    %574 = vector.broadcast %9 : vector<1x32xf32> to vector<2x32xf32>
    %575 = arith.addf %573, %574 : vector<2x32xf32>
    %cst_221 = arith.constant 0.000000e+00 : f32
    %576 = vector.broadcast %cst_221 : f32 to vector<2x32xf32>
    %577 = arith.maximumf %575, %576 : vector<2x32xf32>
    %cst_222 = arith.constant dense<0.000000e+00> : vector<2x32xf32>
    %578 = tpu.matmul %577, %10, %cst_222 {dimension_numbers = #tpu.dot_dimension_numbers<[1], [0], [0], [1], [0, 0, 1, 1], [], []>} : vector<2x32xf32>, vector<32x32xf32>, vector<2x32xf32> -> vector<2x32xf32>
    %579 = vector.broadcast %11 : vector<1x32xf32> to vector<2x32xf32>
    %580 = arith.addf %578, %579 : vector<2x32xf32>
    %cst_223 = arith.constant 0.000000e+00 : f32
    %581 = vector.broadcast %cst_223 : f32 to vector<2x32xf32>
    %582 = arith.maximumf %580, %581 : vector<2x32xf32>
    %cst_224 = arith.constant dense<0.000000e+00> : vector<2x8xf32>
    %583 = tpu.matmul %582, %12, %cst_224 {dimension_numbers = #tpu.dot_dimension_numbers<[1], [0], [0], [1], [0, 0, 1, 1], [], []>} : vector<2x32xf32>, vector<32x8xf32>, vector<2x8xf32> -> vector<2x8xf32>
    %584 = vector.broadcast %13 : vector<1x8xf32> to vector<2x8xf32>
    %585 = arith.addf %583, %584 : vector<2x8xf32>
    %cst_225 = arith.constant 5.000000e-01 : f32
    %586 = vector.broadcast %cst_225 : f32 to vector<2x8xf32>
    %587 = arith.mulf %586, %585 : vector<2x8xf32>
    %588 = math.tanh %587 : vector<2x8xf32>
    %cst_226 = arith.constant 1.000000e+00 : f32
    %589 = vector.broadcast %cst_226 : f32 to vector<2x8xf32>
    %590 = arith.addf %588, %589 : vector<2x8xf32>
    %cst_227 = arith.constant 5.000000e-01 : f32
    %591 = vector.broadcast %cst_227 : f32 to vector<2x8xf32>
    %592 = arith.mulf %591, %590 : vector<2x8xf32>
    %593 = vector.extract_strided_slice %14 {offsets = [0, 0], sizes = [8, 96], strides = [1, 1]} : vector<24x96xf32> to vector<8x96xf32>
    %cst_228 = arith.constant dense<0.000000e+00> : vector<2x96xf32>
    %594 = tpu.matmul %536, %593, %cst_228 {dimension_numbers = #tpu.dot_dimension_numbers<[1], [0], [0], [1], [0, 0, 1, 1], [], []>} : vector<2x8xf32>, vector<8x96xf32>, vector<2x96xf32> -> vector<2x96xf32>
    %595 = vector.extract_strided_slice %14 {offsets = [8, 0], sizes = [16, 96], strides = [1, 1]} : vector<24x96xf32> to vector<16x96xf32>
    %cst_229 = arith.constant dense<0.000000e+00> : vector<2x96xf32>
    %596 = tpu.matmul %568, %595, %cst_229 {dimension_numbers = #tpu.dot_dimension_numbers<[1], [0], [0], [1], [0, 0, 1, 1], [], []>} : vector<2x16xf32>, vector<16x96xf32>, vector<2x96xf32> -> vector<2x96xf32>
    %597 = arith.addf %594, %596 : vector<2x96xf32>
    %598 = vector.broadcast %15 : vector<1x96xf32> to vector<2x96xf32>
    %599 = arith.addf %597, %598 : vector<2x96xf32>
    %cst_230 = arith.constant dense<0.000000e+00> : vector<2x96xf32>
    %600 = tpu.matmul %529, %16, %cst_230 {dimension_numbers = #tpu.dot_dimension_numbers<[1], [0], [0], [1], [0, 0, 1, 1], [], []>} : vector<2x32xf32>, vector<32x96xf32>, vector<2x96xf32> -> vector<2x96xf32>
    %601 = vector.broadcast %17 : vector<1x96xf32> to vector<2x96xf32>
    %602 = arith.addf %600, %601 : vector<2x96xf32>
    %603 = vector.extract_strided_slice %599 {offsets = [0, 0], sizes = [2, 32], strides = [1, 1]} : vector<2x96xf32> to vector<2x32xf32>
    %604 = vector.extract_strided_slice %602 {offsets = [0, 0], sizes = [2, 32], strides = [1, 1]} : vector<2x96xf32> to vector<2x32xf32>
    %605 = arith.addf %603, %604 : vector<2x32xf32>
    %cst_231 = arith.constant 5.000000e-01 : f32
    %606 = vector.broadcast %cst_231 : f32 to vector<2x32xf32>
    %607 = arith.mulf %606, %605 : vector<2x32xf32>
    %608 = math.tanh %607 : vector<2x32xf32>
    %cst_232 = arith.constant 1.000000e+00 : f32
    %609 = vector.broadcast %cst_232 : f32 to vector<2x32xf32>
    %610 = arith.addf %608, %609 : vector<2x32xf32>
    %cst_233 = arith.constant 5.000000e-01 : f32
    %611 = vector.broadcast %cst_233 : f32 to vector<2x32xf32>
    %612 = arith.mulf %611, %610 : vector<2x32xf32>
    %613 = vector.extract_strided_slice %599 {offsets = [0, 32], sizes = [2, 32], strides = [1, 1]} : vector<2x96xf32> to vector<2x32xf32>
    %614 = vector.extract_strided_slice %602 {offsets = [0, 32], sizes = [2, 32], strides = [1, 1]} : vector<2x96xf32> to vector<2x32xf32>
    %615 = arith.addf %613, %614 : vector<2x32xf32>
    %cst_234 = arith.constant 5.000000e-01 : f32
    %616 = vector.broadcast %cst_234 : f32 to vector<2x32xf32>
    %617 = arith.mulf %616, %615 : vector<2x32xf32>
    %618 = math.tanh %617 : vector<2x32xf32>
    %cst_235 = arith.constant 1.000000e+00 : f32
    %619 = vector.broadcast %cst_235 : f32 to vector<2x32xf32>
    %620 = arith.addf %618, %619 : vector<2x32xf32>
    %cst_236 = arith.constant 5.000000e-01 : f32
    %621 = vector.broadcast %cst_236 : f32 to vector<2x32xf32>
    %622 = arith.mulf %621, %620 : vector<2x32xf32>
    %623 = vector.extract_strided_slice %599 {offsets = [0, 64], sizes = [2, 32], strides = [1, 1]} : vector<2x96xf32> to vector<2x32xf32>
    %624 = vector.extract_strided_slice %602 {offsets = [0, 64], sizes = [2, 32], strides = [1, 1]} : vector<2x96xf32> to vector<2x32xf32>
    %625 = arith.mulf %612, %624 : vector<2x32xf32>
    %626 = arith.addf %623, %625 : vector<2x32xf32>
    %627 = math.tanh %626 : vector<2x32xf32>
    %cst_237 = arith.constant 1.000000e+00 : f32
    %628 = vector.broadcast %cst_237 : f32 to vector<2x32xf32>
    %629 = arith.subf %628, %622 : vector<2x32xf32>
    %630 = arith.mulf %629, %627 : vector<2x32xf32>
    %631 = arith.mulf %622, %529 : vector<2x32xf32>
    %632 = arith.addf %630, %631 : vector<2x32xf32>
    %633 = arith.index_cast %c5_i32 : i32 to index
    %c0_238 = arith.constant 0 : index
    %c0_239 = arith.constant 0 : index
    %634 = vector.load %arg21[%633, %c0_238, %c0_239] : memref<8x2x8xf32, #tpu.memory_space<vmem>>, vector<1x2x8xf32>
    %635 = vector.shape_cast %634 : vector<1x2x8xf32> to vector<2x8xf32>
    %636 = vector.shape_cast %592 : vector<2x8xf32> to vector<1x2x8xf32>
    tpu.vector_store %arg21[%633, %c0_238, %c0_239], %636 {strides = array<i32>} : memref<8x2x8xf32, #tpu.memory_space<vmem>>, vector<1x2x8xf32>,
    %c6_i32 = arith.constant 6 : i32
    %637 = arith.index_cast %c6_i32 : i32 to index
    %c0_240 = arith.constant 0 : index
    %c0_241 = arith.constant 0 : index
    %638 = vector.load %arg0[%637, %c0_240, %c0_241] : memref<8x2x8xf32, #tpu.memory_space<vmem>>, vector<1x2x8xf32>
    %639 = vector.shape_cast %638 : vector<1x2x8xf32> to vector<2x8xf32>
    %640 = arith.index_cast %c6_i32 : i32 to index
    %c0_242 = arith.constant 0 : index
    %c0_243 = arith.constant 0 : index
    %641 = vector.load %arg1[%640, %c0_242, %c0_243] : memref<8x2x16xf32, #tpu.memory_space<vmem>>, vector<1x2x16xf32>
    %642 = vector.shape_cast %641 : vector<1x2x16xf32> to vector<2x16xf32>
    %643 = vector.extract_strided_slice %0 {offsets = [0, 0], sizes = [8, 32], strides = [1, 1]} : vector<40x32xf32> to vector<8x32xf32>
    %cst_244 = arith.constant dense<0.000000e+00> : vector<2x32xf32>
    %644 = tpu.matmul %639, %643, %cst_244 {dimension_numbers = #tpu.dot_dimension_numbers<[1], [0], [0], [1], [0, 0, 1, 1], [], []>} : vector<2x8xf32>, vector<8x32xf32>, vector<2x32xf32> -> vector<2x32xf32>
    %645 = vector.extract_strided_slice %0 {offsets = [8, 0], sizes = [32, 32], strides = [1, 1]} : vector<40x32xf32> to vector<32x32xf32>
    %cst_245 = arith.constant dense<0.000000e+00> : vector<2x32xf32>
    %646 = tpu.matmul %632, %645, %cst_245 {dimension_numbers = #tpu.dot_dimension_numbers<[1], [0], [0], [1], [0, 0, 1, 1], [], []>} : vector<2x32xf32>, vector<32x32xf32>, vector<2x32xf32> -> vector<2x32xf32>
    %647 = arith.addf %644, %646 : vector<2x32xf32>
    %648 = vector.broadcast %1 : vector<1x32xf32> to vector<2x32xf32>
    %649 = arith.addf %647, %648 : vector<2x32xf32>
    %cst_246 = arith.constant 0.000000e+00 : f32
    %650 = vector.broadcast %cst_246 : f32 to vector<2x32xf32>
    %651 = arith.maximumf %649, %650 : vector<2x32xf32>
    %cst_247 = arith.constant dense<0.000000e+00> : vector<2x32xf32>
    %652 = tpu.matmul %651, %2, %cst_247 {dimension_numbers = #tpu.dot_dimension_numbers<[1], [0], [0], [1], [0, 0, 1, 1], [], []>} : vector<2x32xf32>, vector<32x32xf32>, vector<2x32xf32> -> vector<2x32xf32>
    %653 = vector.broadcast %3 : vector<1x32xf32> to vector<2x32xf32>
    %654 = arith.addf %652, %653 : vector<2x32xf32>
    %cst_248 = arith.constant 0.000000e+00 : f32
    %655 = vector.broadcast %cst_248 : f32 to vector<2x32xf32>
    %656 = arith.maximumf %654, %655 : vector<2x32xf32>
    %cst_249 = arith.constant dense<0.000000e+00> : vector<2x16xf32>
    %657 = tpu.matmul %656, %4, %cst_249 {dimension_numbers = #tpu.dot_dimension_numbers<[1], [0], [0], [1], [0, 0, 1, 1], [], []>} : vector<2x32xf32>, vector<32x16xf32>, vector<2x16xf32> -> vector<2x16xf32>
    %658 = vector.broadcast %5 : vector<1x16xf32> to vector<2x16xf32>
    %659 = arith.addf %657, %658 : vector<2x16xf32>
    %cst_250 = arith.constant dense<0.000000e+00> : vector<2x16xf32>
    %660 = tpu.matmul %656, %6, %cst_250 {dimension_numbers = #tpu.dot_dimension_numbers<[1], [0], [0], [1], [0, 0, 1, 1], [], []>} : vector<2x32xf32>, vector<32x16xf32>, vector<2x16xf32> -> vector<2x16xf32>
    %661 = vector.broadcast %7 : vector<1x16xf32> to vector<2x16xf32>
    %662 = arith.addf %660, %661 : vector<2x16xf32>
    %cst_251 = arith.constant 2.000000e+01 : f32
    %663 = vector.broadcast %cst_251 : f32 to vector<2x16xf32>
    %664 = arith.cmpf ogt, %662, %663 : vector<2x16xf32>
    %cst_252 = arith.constant 2.000000e+01 : f32
    %665 = vector.broadcast %cst_252 : f32 to vector<2x16xf32>
    %666 = arith.minimumf %662, %665 : vector<2x16xf32>
    %667 = math.exp %666 : vector<2x16xf32>
    %668 = math.log1p %667 : vector<2x16xf32>
    %669 = arith.select %664, %662, %668 : vector<2x16xi1>, vector<2x16xf32>
    %670 = arith.mulf %642, %669 : vector<2x16xf32>
    %671 = arith.addf %670, %659 : vector<2x16xf32>
    %672 = vector.extract_strided_slice %8 {offsets = [0, 0], sizes = [16, 32], strides = [1, 1]} : vector<48x32xf32> to vector<16x32xf32>
    %cst_253 = arith.constant dense<0.000000e+00> : vector<2x32xf32>
    %673 = tpu.matmul %671, %672, %cst_253 {dimension_numbers = #tpu.dot_dimension_numbers<[1], [0], [0], [1], [0, 0, 1, 1], [], []>} : vector<2x16xf32>, vector<16x32xf32>, vector<2x32xf32> -> vector<2x32xf32>
    %674 = vector.extract_strided_slice %8 {offsets = [16, 0], sizes = [32, 32], strides = [1, 1]} : vector<48x32xf32> to vector<32x32xf32>
    %cst_254 = arith.constant dense<0.000000e+00> : vector<2x32xf32>
    %675 = tpu.matmul %632, %674, %cst_254 {dimension_numbers = #tpu.dot_dimension_numbers<[1], [0], [0], [1], [0, 0, 1, 1], [], []>} : vector<2x32xf32>, vector<32x32xf32>, vector<2x32xf32> -> vector<2x32xf32>
    %676 = arith.addf %673, %675 : vector<2x32xf32>
    %677 = vector.broadcast %9 : vector<1x32xf32> to vector<2x32xf32>
    %678 = arith.addf %676, %677 : vector<2x32xf32>
    %cst_255 = arith.constant 0.000000e+00 : f32
    %679 = vector.broadcast %cst_255 : f32 to vector<2x32xf32>
    %680 = arith.maximumf %678, %679 : vector<2x32xf32>
    %cst_256 = arith.constant dense<0.000000e+00> : vector<2x32xf32>
    %681 = tpu.matmul %680, %10, %cst_256 {dimension_numbers = #tpu.dot_dimension_numbers<[1], [0], [0], [1], [0, 0, 1, 1], [], []>} : vector<2x32xf32>, vector<32x32xf32>, vector<2x32xf32> -> vector<2x32xf32>
    %682 = vector.broadcast %11 : vector<1x32xf32> to vector<2x32xf32>
    %683 = arith.addf %681, %682 : vector<2x32xf32>
    %cst_257 = arith.constant 0.000000e+00 : f32
    %684 = vector.broadcast %cst_257 : f32 to vector<2x32xf32>
    %685 = arith.maximumf %683, %684 : vector<2x32xf32>
    %cst_258 = arith.constant dense<0.000000e+00> : vector<2x8xf32>
    %686 = tpu.matmul %685, %12, %cst_258 {dimension_numbers = #tpu.dot_dimension_numbers<[1], [0], [0], [1], [0, 0, 1, 1], [], []>} : vector<2x32xf32>, vector<32x8xf32>, vector<2x8xf32> -> vector<2x8xf32>
    %687 = vector.broadcast %13 : vector<1x8xf32> to vector<2x8xf32>
    %688 = arith.addf %686, %687 : vector<2x8xf32>
    %cst_259 = arith.constant 5.000000e-01 : f32
    %689 = vector.broadcast %cst_259 : f32 to vector<2x8xf32>
    %690 = arith.mulf %689, %688 : vector<2x8xf32>
    %691 = math.tanh %690 : vector<2x8xf32>
    %cst_260 = arith.constant 1.000000e+00 : f32
    %692 = vector.broadcast %cst_260 : f32 to vector<2x8xf32>
    %693 = arith.addf %691, %692 : vector<2x8xf32>
    %cst_261 = arith.constant 5.000000e-01 : f32
    %694 = vector.broadcast %cst_261 : f32 to vector<2x8xf32>
    %695 = arith.mulf %694, %693 : vector<2x8xf32>
    %696 = vector.extract_strided_slice %14 {offsets = [0, 0], sizes = [8, 96], strides = [1, 1]} : vector<24x96xf32> to vector<8x96xf32>
    %cst_262 = arith.constant dense<0.000000e+00> : vector<2x96xf32>
    %697 = tpu.matmul %639, %696, %cst_262 {dimension_numbers = #tpu.dot_dimension_numbers<[1], [0], [0], [1], [0, 0, 1, 1], [], []>} : vector<2x8xf32>, vector<8x96xf32>, vector<2x96xf32> -> vector<2x96xf32>
    %698 = vector.extract_strided_slice %14 {offsets = [8, 0], sizes = [16, 96], strides = [1, 1]} : vector<24x96xf32> to vector<16x96xf32>
    %cst_263 = arith.constant dense<0.000000e+00> : vector<2x96xf32>
    %699 = tpu.matmul %671, %698, %cst_263 {dimension_numbers = #tpu.dot_dimension_numbers<[1], [0], [0], [1], [0, 0, 1, 1], [], []>} : vector<2x16xf32>, vector<16x96xf32>, vector<2x96xf32> -> vector<2x96xf32>
    %700 = arith.addf %697, %699 : vector<2x96xf32>
    %701 = vector.broadcast %15 : vector<1x96xf32> to vector<2x96xf32>
    %702 = arith.addf %700, %701 : vector<2x96xf32>
    %cst_264 = arith.constant dense<0.000000e+00> : vector<2x96xf32>
    %703 = tpu.matmul %632, %16, %cst_264 {dimension_numbers = #tpu.dot_dimension_numbers<[1], [0], [0], [1], [0, 0, 1, 1], [], []>} : vector<2x32xf32>, vector<32x96xf32>, vector<2x96xf32> -> vector<2x96xf32>
    %704 = vector.broadcast %17 : vector<1x96xf32> to vector<2x96xf32>
    %705 = arith.addf %703, %704 : vector<2x96xf32>
    %706 = vector.extract_strided_slice %702 {offsets = [0, 0], sizes = [2, 32], strides = [1, 1]} : vector<2x96xf32> to vector<2x32xf32>
    %707 = vector.extract_strided_slice %705 {offsets = [0, 0], sizes = [2, 32], strides = [1, 1]} : vector<2x96xf32> to vector<2x32xf32>
    %708 = arith.addf %706, %707 : vector<2x32xf32>
    %cst_265 = arith.constant 5.000000e-01 : f32
    %709 = vector.broadcast %cst_265 : f32 to vector<2x32xf32>
    %710 = arith.mulf %709, %708 : vector<2x32xf32>
    %711 = math.tanh %710 : vector<2x32xf32>
    %cst_266 = arith.constant 1.000000e+00 : f32
    %712 = vector.broadcast %cst_266 : f32 to vector<2x32xf32>
    %713 = arith.addf %711, %712 : vector<2x32xf32>
    %cst_267 = arith.constant 5.000000e-01 : f32
    %714 = vector.broadcast %cst_267 : f32 to vector<2x32xf32>
    %715 = arith.mulf %714, %713 : vector<2x32xf32>
    %716 = vector.extract_strided_slice %702 {offsets = [0, 32], sizes = [2, 32], strides = [1, 1]} : vector<2x96xf32> to vector<2x32xf32>
    %717 = vector.extract_strided_slice %705 {offsets = [0, 32], sizes = [2, 32], strides = [1, 1]} : vector<2x96xf32> to vector<2x32xf32>
    %718 = arith.addf %716, %717 : vector<2x32xf32>
    %cst_268 = arith.constant 5.000000e-01 : f32
    %719 = vector.broadcast %cst_268 : f32 to vector<2x32xf32>
    %720 = arith.mulf %719, %718 : vector<2x32xf32>
    %721 = math.tanh %720 : vector<2x32xf32>
    %cst_269 = arith.constant 1.000000e+00 : f32
    %722 = vector.broadcast %cst_269 : f32 to vector<2x32xf32>
    %723 = arith.addf %721, %722 : vector<2x32xf32>
    %cst_270 = arith.constant 5.000000e-01 : f32
    %724 = vector.broadcast %cst_270 : f32 to vector<2x32xf32>
    %725 = arith.mulf %724, %723 : vector<2x32xf32>
    %726 = vector.extract_strided_slice %702 {offsets = [0, 64], sizes = [2, 32], strides = [1, 1]} : vector<2x96xf32> to vector<2x32xf32>
    %727 = vector.extract_strided_slice %705 {offsets = [0, 64], sizes = [2, 32], strides = [1, 1]} : vector<2x96xf32> to vector<2x32xf32>
    %728 = arith.mulf %715, %727 : vector<2x32xf32>
    %729 = arith.addf %726, %728 : vector<2x32xf32>
    %730 = math.tanh %729 : vector<2x32xf32>
    %cst_271 = arith.constant 1.000000e+00 : f32
    %731 = vector.broadcast %cst_271 : f32 to vector<2x32xf32>
    %732 = arith.subf %731, %725 : vector<2x32xf32>
    %733 = arith.mulf %732, %730 : vector<2x32xf32>
    %734 = arith.mulf %725, %632 : vector<2x32xf32>
    %735 = arith.addf %733, %734 : vector<2x32xf32>
    %736 = arith.index_cast %c6_i32 : i32 to index
    %c0_272 = arith.constant 0 : index
    %c0_273 = arith.constant 0 : index
    %737 = vector.load %arg21[%736, %c0_272, %c0_273] : memref<8x2x8xf32, #tpu.memory_space<vmem>>, vector<1x2x8xf32>
    %738 = vector.shape_cast %737 : vector<1x2x8xf32> to vector<2x8xf32>
    %739 = vector.shape_cast %695 : vector<2x8xf32> to vector<1x2x8xf32>
    tpu.vector_store %arg21[%736, %c0_272, %c0_273], %739 {strides = array<i32>} : memref<8x2x8xf32, #tpu.memory_space<vmem>>, vector<1x2x8xf32>,
    %c7_i32 = arith.constant 7 : i32
    %740 = arith.index_cast %c7_i32 : i32 to index
    %c0_274 = arith.constant 0 : index
    %c0_275 = arith.constant 0 : index
    %741 = vector.load %arg0[%740, %c0_274, %c0_275] : memref<8x2x8xf32, #tpu.memory_space<vmem>>, vector<1x2x8xf32>
    %742 = vector.shape_cast %741 : vector<1x2x8xf32> to vector<2x8xf32>
    %743 = arith.index_cast %c7_i32 : i32 to index
    %c0_276 = arith.constant 0 : index
    %c0_277 = arith.constant 0 : index
    %744 = vector.load %arg1[%743, %c0_276, %c0_277] : memref<8x2x16xf32, #tpu.memory_space<vmem>>, vector<1x2x16xf32>
    %745 = vector.shape_cast %744 : vector<1x2x16xf32> to vector<2x16xf32>
    %746 = vector.extract_strided_slice %0 {offsets = [0, 0], sizes = [8, 32], strides = [1, 1]} : vector<40x32xf32> to vector<8x32xf32>
    %cst_278 = arith.constant dense<0.000000e+00> : vector<2x32xf32>
    %747 = tpu.matmul %742, %746, %cst_278 {dimension_numbers = #tpu.dot_dimension_numbers<[1], [0], [0], [1], [0, 0, 1, 1], [], []>} : vector<2x8xf32>, vector<8x32xf32>, vector<2x32xf32> -> vector<2x32xf32>
    %748 = vector.extract_strided_slice %0 {offsets = [8, 0], sizes = [32, 32], strides = [1, 1]} : vector<40x32xf32> to vector<32x32xf32>
    %cst_279 = arith.constant dense<0.000000e+00> : vector<2x32xf32>
    %749 = tpu.matmul %735, %748, %cst_279 {dimension_numbers = #tpu.dot_dimension_numbers<[1], [0], [0], [1], [0, 0, 1, 1], [], []>} : vector<2x32xf32>, vector<32x32xf32>, vector<2x32xf32> -> vector<2x32xf32>
    %750 = arith.addf %747, %749 : vector<2x32xf32>
    %751 = vector.broadcast %1 : vector<1x32xf32> to vector<2x32xf32>
    %752 = arith.addf %750, %751 : vector<2x32xf32>
    %cst_280 = arith.constant 0.000000e+00 : f32
    %753 = vector.broadcast %cst_280 : f32 to vector<2x32xf32>
    %754 = arith.maximumf %752, %753 : vector<2x32xf32>
    %cst_281 = arith.constant dense<0.000000e+00> : vector<2x32xf32>
    %755 = tpu.matmul %754, %2, %cst_281 {dimension_numbers = #tpu.dot_dimension_numbers<[1], [0], [0], [1], [0, 0, 1, 1], [], []>} : vector<2x32xf32>, vector<32x32xf32>, vector<2x32xf32> -> vector<2x32xf32>
    %756 = vector.broadcast %3 : vector<1x32xf32> to vector<2x32xf32>
    %757 = arith.addf %755, %756 : vector<2x32xf32>
    %cst_282 = arith.constant 0.000000e+00 : f32
    %758 = vector.broadcast %cst_282 : f32 to vector<2x32xf32>
    %759 = arith.maximumf %757, %758 : vector<2x32xf32>
    %cst_283 = arith.constant dense<0.000000e+00> : vector<2x16xf32>
    %760 = tpu.matmul %759, %4, %cst_283 {dimension_numbers = #tpu.dot_dimension_numbers<[1], [0], [0], [1], [0, 0, 1, 1], [], []>} : vector<2x32xf32>, vector<32x16xf32>, vector<2x16xf32> -> vector<2x16xf32>
    %761 = vector.broadcast %5 : vector<1x16xf32> to vector<2x16xf32>
    %762 = arith.addf %760, %761 : vector<2x16xf32>
    %cst_284 = arith.constant dense<0.000000e+00> : vector<2x16xf32>
    %763 = tpu.matmul %759, %6, %cst_284 {dimension_numbers = #tpu.dot_dimension_numbers<[1], [0], [0], [1], [0, 0, 1, 1], [], []>} : vector<2x32xf32>, vector<32x16xf32>, vector<2x16xf32> -> vector<2x16xf32>
    %764 = vector.broadcast %7 : vector<1x16xf32> to vector<2x16xf32>
    %765 = arith.addf %763, %764 : vector<2x16xf32>
    %cst_285 = arith.constant 2.000000e+01 : f32
    %766 = vector.broadcast %cst_285 : f32 to vector<2x16xf32>
    %767 = arith.cmpf ogt, %765, %766 : vector<2x16xf32>
    %cst_286 = arith.constant 2.000000e+01 : f32
    %768 = vector.broadcast %cst_286 : f32 to vector<2x16xf32>
    %769 = arith.minimumf %765, %768 : vector<2x16xf32>
    %770 = math.exp %769 : vector<2x16xf32>
    %771 = math.log1p %770 : vector<2x16xf32>
    %772 = arith.select %767, %765, %771 : vector<2x16xi1>, vector<2x16xf32>
    %773 = arith.mulf %745, %772 : vector<2x16xf32>
    %774 = arith.addf %773, %762 : vector<2x16xf32>
    %775 = vector.extract_strided_slice %8 {offsets = [0, 0], sizes = [16, 32], strides = [1, 1]} : vector<48x32xf32> to vector<16x32xf32>
    %cst_287 = arith.constant dense<0.000000e+00> : vector<2x32xf32>
    %776 = tpu.matmul %774, %775, %cst_287 {dimension_numbers = #tpu.dot_dimension_numbers<[1], [0], [0], [1], [0, 0, 1, 1], [], []>} : vector<2x16xf32>, vector<16x32xf32>, vector<2x32xf32> -> vector<2x32xf32>
    %777 = vector.extract_strided_slice %8 {offsets = [16, 0], sizes = [32, 32], strides = [1, 1]} : vector<48x32xf32> to vector<32x32xf32>
    %cst_288 = arith.constant dense<0.000000e+00> : vector<2x32xf32>
    %778 = tpu.matmul %735, %777, %cst_288 {dimension_numbers = #tpu.dot_dimension_numbers<[1], [0], [0], [1], [0, 0, 1, 1], [], []>} : vector<2x32xf32>, vector<32x32xf32>, vector<2x32xf32> -> vector<2x32xf32>
    %779 = arith.addf %776, %778 : vector<2x32xf32>
    %780 = vector.broadcast %9 : vector<1x32xf32> to vector<2x32xf32>
    %781 = arith.addf %779, %780 : vector<2x32xf32>
    %cst_289 = arith.constant 0.000000e+00 : f32
    %782 = vector.broadcast %cst_289 : f32 to vector<2x32xf32>
    %783 = arith.maximumf %781, %782 : vector<2x32xf32>
    %cst_290 = arith.constant dense<0.000000e+00> : vector<2x32xf32>
    %784 = tpu.matmul %783, %10, %cst_290 {dimension_numbers = #tpu.dot_dimension_numbers<[1], [0], [0], [1], [0, 0, 1, 1], [], []>} : vector<2x32xf32>, vector<32x32xf32>, vector<2x32xf32> -> vector<2x32xf32>
    %785 = vector.broadcast %11 : vector<1x32xf32> to vector<2x32xf32>
    %786 = arith.addf %784, %785 : vector<2x32xf32>
    %cst_291 = arith.constant 0.000000e+00 : f32
    %787 = vector.broadcast %cst_291 : f32 to vector<2x32xf32>
    %788 = arith.maximumf %786, %787 : vector<2x32xf32>
    %cst_292 = arith.constant dense<0.000000e+00> : vector<2x8xf32>
    %789 = tpu.matmul %788, %12, %cst_292 {dimension_numbers = #tpu.dot_dimension_numbers<[1], [0], [0], [1], [0, 0, 1, 1], [], []>} : vector<2x32xf32>, vector<32x8xf32>, vector<2x8xf32> -> vector<2x8xf32>
    %790 = vector.broadcast %13 : vector<1x8xf32> to vector<2x8xf32>
    %791 = arith.addf %789, %790 : vector<2x8xf32>
    %cst_293 = arith.constant 5.000000e-01 : f32
    %792 = vector.broadcast %cst_293 : f32 to vector<2x8xf32>
    %793 = arith.mulf %792, %791 : vector<2x8xf32>
    %794 = math.tanh %793 : vector<2x8xf32>
    %cst_294 = arith.constant 1.000000e+00 : f32
    %795 = vector.broadcast %cst_294 : f32 to vector<2x8xf32>
    %796 = arith.addf %794, %795 : vector<2x8xf32>
    %cst_295 = arith.constant 5.000000e-01 : f32
    %797 = vector.broadcast %cst_295 : f32 to vector<2x8xf32>
    %798 = arith.mulf %797, %796 : vector<2x8xf32>
    %799 = vector.extract_strided_slice %14 {offsets = [0, 0], sizes = [8, 96], strides = [1, 1]} : vector<24x96xf32> to vector<8x96xf32>
    %cst_296 = arith.constant dense<0.000000e+00> : vector<2x96xf32>
    %800 = tpu.matmul %742, %799, %cst_296 {dimension_numbers = #tpu.dot_dimension_numbers<[1], [0], [0], [1], [0, 0, 1, 1], [], []>} : vector<2x8xf32>, vector<8x96xf32>, vector<2x96xf32> -> vector<2x96xf32>
    %801 = vector.extract_strided_slice %14 {offsets = [8, 0], sizes = [16, 96], strides = [1, 1]} : vector<24x96xf32> to vector<16x96xf32>
    %cst_297 = arith.constant dense<0.000000e+00> : vector<2x96xf32>
    %802 = tpu.matmul %774, %801, %cst_297 {dimension_numbers = #tpu.dot_dimension_numbers<[1], [0], [0], [1], [0, 0, 1, 1], [], []>} : vector<2x16xf32>, vector<16x96xf32>, vector<2x96xf32> -> vector<2x96xf32>
    %803 = arith.addf %800, %802 : vector<2x96xf32>
    %804 = vector.broadcast %15 : vector<1x96xf32> to vector<2x96xf32>
    %805 = arith.addf %803, %804 : vector<2x96xf32>
    %cst_298 = arith.constant dense<0.000000e+00> : vector<2x96xf32>
    %806 = tpu.matmul %735, %16, %cst_298 {dimension_numbers = #tpu.dot_dimension_numbers<[1], [0], [0], [1], [0, 0, 1, 1], [], []>} : vector<2x32xf32>, vector<32x96xf32>, vector<2x96xf32> -> vector<2x96xf32>
    %807 = vector.broadcast %17 : vector<1x96xf32> to vector<2x96xf32>
    %808 = arith.addf %806, %807 : vector<2x96xf32>
    %809 = vector.extract_strided_slice %805 {offsets = [0, 0], sizes = [2, 32], strides = [1, 1]} : vector<2x96xf32> to vector<2x32xf32>
    %810 = vector.extract_strided_slice %808 {offsets = [0, 0], sizes = [2, 32], strides = [1, 1]} : vector<2x96xf32> to vector<2x32xf32>
    %811 = arith.addf %809, %810 : vector<2x32xf32>
    %cst_299 = arith.constant 5.000000e-01 : f32
    %812 = vector.broadcast %cst_299 : f32 to vector<2x32xf32>
    %813 = arith.mulf %812, %811 : vector<2x32xf32>
    %814 = math.tanh %813 : vector<2x32xf32>
    %cst_300 = arith.constant 1.000000e+00 : f32
    %815 = vector.broadcast %cst_300 : f32 to vector<2x32xf32>
    %816 = arith.addf %814, %815 : vector<2x32xf32>
    %cst_301 = arith.constant 5.000000e-01 : f32
    %817 = vector.broadcast %cst_301 : f32 to vector<2x32xf32>
    %818 = arith.mulf %817, %816 : vector<2x32xf32>
    %819 = vector.extract_strided_slice %805 {offsets = [0, 32], sizes = [2, 32], strides = [1, 1]} : vector<2x96xf32> to vector<2x32xf32>
    %820 = vector.extract_strided_slice %808 {offsets = [0, 32], sizes = [2, 32], strides = [1, 1]} : vector<2x96xf32> to vector<2x32xf32>
    %821 = arith.addf %819, %820 : vector<2x32xf32>
    %cst_302 = arith.constant 5.000000e-01 : f32
    %822 = vector.broadcast %cst_302 : f32 to vector<2x32xf32>
    %823 = arith.mulf %822, %821 : vector<2x32xf32>
    %824 = math.tanh %823 : vector<2x32xf32>
    %cst_303 = arith.constant 1.000000e+00 : f32
    %825 = vector.broadcast %cst_303 : f32 to vector<2x32xf32>
    %826 = arith.addf %824, %825 : vector<2x32xf32>
    %cst_304 = arith.constant 5.000000e-01 : f32
    %827 = vector.broadcast %cst_304 : f32 to vector<2x32xf32>
    %828 = arith.mulf %827, %826 : vector<2x32xf32>
    %829 = vector.extract_strided_slice %805 {offsets = [0, 64], sizes = [2, 32], strides = [1, 1]} : vector<2x96xf32> to vector<2x32xf32>
    %830 = vector.extract_strided_slice %808 {offsets = [0, 64], sizes = [2, 32], strides = [1, 1]} : vector<2x96xf32> to vector<2x32xf32>
    %831 = arith.mulf %818, %830 : vector<2x32xf32>
    %832 = arith.addf %829, %831 : vector<2x32xf32>
    %833 = math.tanh %832 : vector<2x32xf32>
    %cst_305 = arith.constant 1.000000e+00 : f32
    %834 = vector.broadcast %cst_305 : f32 to vector<2x32xf32>
    %835 = arith.subf %834, %828 : vector<2x32xf32>
    %836 = arith.mulf %835, %833 : vector<2x32xf32>
    %837 = arith.mulf %828, %735 : vector<2x32xf32>
    %838 = arith.addf %836, %837 : vector<2x32xf32>
    %839 = arith.index_cast %c7_i32 : i32 to index
    %c0_306 = arith.constant 0 : index
    %c0_307 = arith.constant 0 : index
    %840 = vector.load %arg21[%839, %c0_306, %c0_307] : memref<8x2x8xf32, #tpu.memory_space<vmem>>, vector<1x2x8xf32>
    %841 = vector.shape_cast %840 : vector<1x2x8xf32> to vector<2x8xf32>
    %842 = vector.shape_cast %798 : vector<2x8xf32> to vector<1x2x8xf32>
    tpu.vector_store %arg21[%839, %c0_306, %c0_307], %842 {strides = array<i32>} : memref<8x2x8xf32, #tpu.memory_space<vmem>>, vector<1x2x8xf32>,
    %c8_i32 = arith.constant 8 : i32
    %c0_308 = arith.constant 0 : index
    %c0_309 = arith.constant 0 : index
    %843 = vector.load %arg22[%c0_308, %c0_309] : memref<2x32xf32, #tpu.memory_space<vmem>>, vector<2x32xf32>
    tpu.vector_store %arg22[%c0_308, %c0_309], %838 {strides = array<i32>} : memref<2x32xf32, #tpu.memory_space<vmem>>, vector<2x32xf32>,
    return
  }
}

</mosaic_0001>

<bundles_post_ra>
// kernel: catvrnn_forward.1
= control target key start
LH: loop header
LB: loop body
LE: loop exit
PB: predicated region body
PF: predicated region fallthrough
CT: control target
= control target key end

     0   :  { %v9502_v0 = vmov 0.0|0.0   ;;  %vm9503_vm0 = vmmov 0   ;;  %v9504_v4 = vmov 0.0   ;;  %vm120_vm1 = vcmask 261120   ;;  %s10782_s3 = inlined_call_operand.vmem [shape: f32[40,32], index: 3, kind: input, shape index: {}]   ;;  %s10783_s2 = inlined_call_operand.vmem [shape: f32[2,32], index: 2, kind: input, shape index: {}]   ;;  %s10784_s0 = inlined_call_operand.vmem [shape: f32[8,2,8], index: 0, kind: input, shape index: {}]   ;;  %s10785_s5 = inlined_call_operand.vmem [shape: f32[32,32], index: 5, kind: input, shape index: {}]   ;;  %s10786_s7 = inlined_call_operand.vmem [shape: f32[32,16], index: 7, kind: input, shape index: {}]   ;;  %s10787_s4 = inlined_call_operand.vmem [shape: f32[1,32], index: 4, kind: input, shape index: {}]   ;;  %s10788_s9 = inlined_call_operand.vmem [shape: f32[32,16], index: 9, kind: input, shape index: {}]   ;;  %s10789_s6 = inlined_call_operand.vmem [shape: f32[1,32], index: 6, kind: input, shape index: {}]   ;;  %s10790_s11 = inlined_call_operand.vmem [shape: f32[48,32], index: 11, kind: input, shape index: {}]   ;;  %s10791_s10 = inlined_call_operand.vmem [shape: f32[1,16], index: 10, kind: input, shape index: {}]   ;;  %s10792_s8 = inlined_call_operand.vmem [shape: f32[1,16], index: 8, kind: input, shape index: {}]   ;;  %s10793_s1 = inlined_call_operand.vmem [shape: f32[8,2,16], index: 1, kind: input, shape index: {}]   ;;  %s10794_s13 = inlined_call_operand.vmem [shape: f32[32,32], index: 13, kind: input, shape index: {}]   ;;  %s10795_s15 = inlined_call_operand.vmem [shape: f32[32,8], index: 15, kind: input, shape index: {}]   ;;  %s10796_s12 = inlined_call_operand.vmem [shape: f32[1,32], index: 12, kind: input, shape index: {}]   ;;  %s10797_s17 = inlined_call_operand.vmem [shape: f32[24,96], index: 17, kind: input, shape index: {}]   ;;  %s10798_s19 = inlined_call_operand.vmem [shape: f32[32,96], index: 19, kind: input, shape index: {}]   ;;  %s10799_s14 = inlined_call_operand.vmem [shape: f32[1,32], index: 14, kind: input, shape index: {}]   ;;  %s10800_s20 = inlined_call_operand.vmem [shape: f32[1,96], index: 20, kind: input, shape index: {}]   ;;  %s10801_s16 = inlined_call_operand.vmem [shape: f32[1,8], index: 16, kind: input, shape index: {}]   ;;  %s10802_s18 = inlined_call_operand.vmem [shape: f32[1,96], index: 18, kind: input, shape index: {}]   ;;  %s10803_s21 = inlined_call_operand.vmem [shape: f32[8,2,8], index: 21, kind: output, shape index: {0}]   ;;  %s10804_s22 = inlined_call_operand.vmem [shape: f32[2,32], index: 22, kind: output, shape index: {1}]  }
   0x1   :  { %10811 = sst [smem:[#allocation2_spill]] %s10782_s3  ;;  %8970 = vmatprep.subr.bf16.mxu0 %v9502_v0  ;;  %8082 = vmatprep.mubr.msk.f32.mxu0 %vm9503_vm0, %v9504_v4  ;;  %vm194_vm2 = vcmask 64512   ;;  %v9746_v37 = vld [vmem:[%s10789_s6] ss:$0 sm:$0xff]  ;;  %v93_v42 = vld [vmem:[%s10790_s11 + $0x10] sm:$0xff]  ;;  %v94_v43 = vld [vmem:[%s10790_s11 + $0x18] sm:$0xff] }
   0x2   :  { %10812 = sst [smem:[#allocation3_spill]] %s10783_s2  ;;  %s10818_s29 = sld [smem:[#allocation2_spill]]  ;;  %8976 = vmatprep.subr.bf16.mxu1 %v9502_v0  ;;  %8098 = vmatprep.mubr.msk.f32.mxu1 %vm9503_vm0, %v9504_v4  ;;  %v9761_v44 = vpack.c.bf16 %v94_v43, %v93_v42  ;;  %v95_v45 = vld [vmem:[%s10790_s11 + $0x20] sm:$0xff]  ;;  %v96_v46 = vld [vmem:[%s10790_s11 + $0x28] sm:$0xff]  ;;  %vm597_vm5 = vcmask 130048   ;;  %vm1092_vm6 = vcmask 58368  }
   0x3   :  { %10813 = sst [smem:[#allocation4_spill]] %s10784_s0  ;;  %s10819_s25 = sld [smem:[#allocation3_spill]]  ;;  %v9771_v47 = vpack.c.bf16 %v96_v46, %v95_v45  ;;  %v91_v48 = vld [vmem:[%s10790_s11] sm:$0xff]  ;;  %v92_v49 = vld [vmem:[%s10790_s11 + $0x8] sm:$0xff] }
   0x4   :  { %10814 = sst [smem:[#allocation5_spill]] %s10785_s5  ;;  %s10820_s28 = sld [smem:[#allocation4_spill]]  ;;  %v9779_v50 = vpack.c.bf16 %v92_v49, %v91_v48  ;;  %v9792_v51 = vld [vmem:[%s10791_s10] ss:$0 sm:$0xff]  ;;  %v113_v48 = vld [vmem:[%s10798_s19 + $0x8] sm:$0xff] }
   0x5   :  { %10815 = sst [smem:[#allocation6_spill]] %s10786_s7  ;;  %s10821_s3 = sld [smem:[#allocation5_spill]]  ;;  %v112_v46 = vld [vmem:[%s10798_s19] sm:$0xff] }
   0x6   :  { %10816 = sst [smem:[#allocation7_spill]] %s10787_s4  ;;  %s10822_s27 = sld [smem:[#allocation6_spill]]  ;;  %v9861_v49 = vpack.c.bf16 %v113_v48, %v112_v46 }
   0x7   :  { %10817 = sst [smem:[#allocation8_spill]] %s10788_s9  ;;  %s10823_s23 = sld [smem:[#allocation7_spill]] }
   0x8   :  { %v71_v1 = vld [vmem:[%s10818_s29 + $0x8] sm:$0xff]  ;;  %v72_v2 = vld [vmem:[%s10818_s29 + $0x10] sm:$0xff]  ;;  %v73_v3 = vld [vmem:[%s10818_s29 + $0x18] sm:$0xff]  ;;  %s10824_s24 = sld [smem:[#allocation8_spill]]  ;;  %s9505_s9 = smov 64  }
   0x9   :  { %v9635_v5 = vpack.c.bf16 %v72_v2, %v71_v1  ;;  %v74_v6 = vld [vmem:[%s10818_s29 + $0x20] sm:$0xff]  ;;  %s9507_s5 = smov 32  }
   0xa   :  { %v9644_v7 = vpack.c.bf16 %v74_v6, %v73_v3  ;;  %v9651_v8 = vld [vmem:[%s10819_s25] sm:$0x3] }
   0xb   :  { %8972 = vmatpush3.bf16.msra.mxu0 %v9635_v5  ;;  %v9657_v9 = vld [vmem:[%s10818_s29] sm:$0xff]  ;;  %v77_v12 = vld [vmem:[%s10821_s3 + $0x8] sm:$0xff]  ;;  %v78_v14 = vld [vmem:[%s10821_s3 + $0x10] sm:$0xff] }
   0xc   :  { %8973 = vmatprep.subr.bf16.mxu0 %v9502_v0  ;;  %v9667_v10 = vld [vmem:[%s10820_s28] sm:$0x3]  ;;  %v79_v15 = vld [vmem:[%s10821_s3 + $0x18] sm:$0xff]  ;;  %v82_v18 = vld [vmem:[%s10822_s27 + $0x8] sm:$0xff] }
   0xd   :  { %v76_v11 = vld [vmem:[%s10821_s3] sm:$0xff]  ;;  %v9690_v16 = vpack.c.bf16 %v79_v15, %v78_v14  ;;  %v83_v31 = vld [vmem:[%s10822_s27 + $0x10] sm:$0xff]  ;;  %v84_v32 = vld [vmem:[%s10822_s27 + $0x18] sm:$0xff] }
   0xe   :  { %v9680_v13 = vpack.c.bf16 %v77_v12, %v76_v11  ;;  %v81_v17 = vld [vmem:[%s10822_s27] sm:$0xff]  ;;  %v87_v27 = vld [vmem:[%s10824_s24 + $0x8] sm:$0xff]  ;;  %v88_v33 = vld [vmem:[%s10824_s24 + $0x10] sm:$0xff]  ;;  %v9732_v34 = vpack.c.bf16 %v84_v32, %v83_v31 }
   0xf   :  { %8975 = vmatpush3.bf16.msra.mxu0 %v9644_v7  ;;  %v9700_v19 = vpack.c.bf16 %v82_v18, %v81_v17  ;;  %v9707_v22 = vld [vmem:[%s10823_s23] ss:$0 sm:$0xff]  ;;  %v89_v35 = vld [vmem:[%s10824_s24 + $0x18] sm:$0xff]  ;;  %v104_v31 = vld [vmem:[%s10795_s15 + $0x8] sm:$0xff] }
  0x10   :  { %8085 = vmatprep.subr.mxu0 %v9504_v4  ;;  %8978 = vmatpush3.bf16.msra.mxu1 %v9680_v13  ;;  %v86_v26 = vld [vmem:[%s10824_s24] sm:$0xff]  ;;  %v9737_v36 = vpack.c.bf16 %v89_v35, %v88_v33 }
  0x11   :  { %8979 = vmatprep.subr.bf16.mxu1 %v9502_v0  ;;  %v9716_v29 = vpack.c.bf16 %v87_v27, %v86_v26  ;;  %v9798_v6 = vld [vmem:[%s10792_s8] ss:$0 sm:$0xff]  ;;  %v100_v26 = vld [vmem:[%s10794_s13 + $0x10] sm:$0xff]  ;;  %v101_v27 = vld [vmem:[%s10794_s13 + $0x18] sm:$0xff] }
  0x12   :  { %8083 = vmatmul.mubr.msk.f32.vlgmr.msra.gmra.mrb[0].mxu0 %vm120_vm1, %v9651_v8  ;;  %v119_v11 = vld [vmem:[%s10793_s1] sm:$0x3] }
  0x13   :  { %8086 = vmatpush3.msra.mxu0 %v9657_v9  ;;  %8087 = vmatprep.mubr.msk.f32.mxu0 %vm9503_vm0, %v9504_v4  ;;  %v9840_v33 = vld [vmem:[%s10796_s12] ss:$0 sm:$0xff] }
  0x14   :  { %8982 = vmatprep.subr.bf16.mxu0 %v9502_v0  ;;  %8981 = vmatpush3.bf16.msra.mxu1 %v9690_v16 }
  0x15   :  { %8988 = vmatprep.subr.bf16.mxu1 %v9502_v0 }
  0x16   :  { %8088 = vmatmul.mubr.msk.f32.vlgmr.msra.gmra.mrb[2].mxu0 %vm194_vm2, %v9667_v10 }
  0x17   :  { %8109 = vmatprep.mubr.msk.f32.mxu0 %vm9503_vm0, %v9504_v4  ;;  %8984 = vmatpush3.bf16.msra.mxu0 %v9700_v19 }
  0x18   :  { %8985 = vmatprep.subr.bf16.mxu0 %v9502_v0 }
  0x1b   :  { %8987 = vmatpush3.bf16.msra.mxu0 %v9732_v34 }
  0x1c   :  { %8994 = vmatprep.subr.bf16.mxu0 %v9502_v0 }
  0xe5   :  { %v190_v20 = vpop.f32.mrb[0].mxu0 }
  0xe6   :  { %v8084_v21 = vpop.f32.mrb[1].mxu0 }
  0xe7   :  { %v99_v21 = vld [vmem:[%s10794_s13 + $0x8] sm:$0xff] }
  0xe9   :  { %v264_v23 = vpop.f32.mrb[2].mxu0 }
  0xea   :  { %v265_v24 = vadd.f32 %v264_v23, %v190_v20  ;;  %v8089_v25 = vpop.f32.mrb[3].mxu0  ;;  %v98_v20 = vld [vmem:[%s10794_s13] sm:$0xff]  ;;  %s9506_s13 = smov 96  }
  0xeb   :  { %v9813_v23 = vpack.c.bf16 %v99_v21, %v98_v20  ;;  %v9935_v21 = vld [vmem:[%s10802_s18] ss:$0 sm:$0xff] }
  0xec   :  { %v274_v28 = vadd.f32 %v9707_v22, %v265_v24 }
  0xee   :  { %v275_v30 = vmax.f32 %v274_v28, 0.0  ;;  %v9823_v28 = vpack.c.bf16 %v101_v27, %v100_v26 }
  0xf0   :  { %8099 = vmatmul.mubr.msk.f32.vlgmr.msra.gmra.mrb[0].mxu1 %vm120_vm1, %v275_v30  ;;  %v103_v30 = vld [vmem:[%s10795_s15] sm:$0xff] }
  0xf1   :  { %8990 = vmatpush3.bf16.msra.mxu1 %v9716_v29  ;;  %8120 = vmatprep.mubr.msk.f32.mxu1 %vm9503_vm0, %v9504_v4  ;;  %v9833_v32 = vpack.c.bf16 %v104_v31, %v103_v30 }
  0xf2   :  { %8991 = vmatprep.subr.bf16.mxu1 %v9502_v0 }
  0xf5   :  { %8993 = vmatpush3.bf16.msra.mxu1 %v9737_v36 }
  0xf6   :  { %9000 = vmatprep.subr.bf16.mxu1 %v9502_v0 }
 0x1c3   :  { %v351_v38 = vpop.f32.mrb[0].mxu1 }
 0x1c4   :  { %v352_v39 = vadd.f32 %v9746_v37, %v351_v38  ;;  %v8100_v40 = vpop.f32.mrb[1].mxu1 }
 0x1c5   :  { %v109_v40 = vld [vmem:[%s10797_s17 + $0x8] sm:$0xff] }
 0x1c6   :  { %v355_v41 = vmax.f32 %v352_v39, 0.0 }
 0x1c8   :  { %8110 = vmatmul.mubr.msk.f32.vlgmr.msra.gmra.mrb[4].mxu0 %vm120_vm1, %v355_v41  ;;  %8121 = vmatmul.mubr.msk.f32.vlgmr.msra.gmra.mrb[2].mxu1 %vm120_vm1, %v355_v41  ;;  %v110_v41 = vld [vmem:[%s10797_s17 + $0x10] sm:$0xff] }
 0x1c9   :  { %8131 = vmatprep.mubr.msk.f32.mxu0 %vm9503_vm0, %v9504_v4  ;;  %8138 = vmatprep.mubr.msk.f32.mxu1 %vm9503_vm0, %v9504_v4  ;;  %v9849_v43 = vpack.c.bf16 %v110_v41, %v109_v40 }
 0x1ca   :  { %8996 = vmatpush3.bf16.msra.mxu0 %v9761_v44  ;;  %9002 = vmatpush3.bf16.msra.mxu1 %v9779_v50 }
 0x1cb   :  { %8997 = vmatprep.subr.bf16.mxu0 %v9502_v0  ;;  %9003 = vmatprep.subr.bf16.mxu1 %v9502_v0 }
 0x1ce   :  { %8999 = vmatpush3.bf16.msra.mxu0 %v9771_v47 }
 0x1cf   :  { %9009 = vmatprep.subr.bf16.mxu0 %v9502_v0 }
 0x1d1   :  { %8132 = vmatmul.mubr.msk.f32.vlgmr.msra.gmra.mrb[6].mxu0 %vm120_vm1, %v9651_v8 }
 0x1d2   :  { %8160 = vmatprep.mubr.msk.f32.mxu0 %vm9503_vm0, %v9504_v4  ;;  %9011 = vmatpush3.bf16.msra.mxu0 %v9833_v32 }
 0x1d3   :  { %9012 = vmatprep.subr.bf16.mxu0 %v9502_v0 }
 0x29b   :  { %v431_v52 = vpop.f32.mrb[4].mxu0  ;;  %v507_v53 = vpop.f32.mrb[2].mxu1 }
 0x29c   :  { %v508_v54 = vadd.f32 %v9792_v51, %v507_v53  ;;  %v8111_v55 = vpop.f32.mrb[5].mxu0  ;;  %v8122_v56 = vpop.f32.mrb[3].mxu1  ;;  %v432_v15 = vadd.f32 %v9798_v6, %v431_v52  ;;  %v114_v52 = vld [vmem:[%s10798_s19 + $0x10] sm:$0xff]  ;;  %v115_v53 = vld [vmem:[%s10798_s19 + $0x18] sm:$0xff] }
 0x29d   :  { %v105_v55 = vld [vmem:[%s10795_s15 + $0x10] sm:$0xff]  ;;  %v106_v56 = vld [vmem:[%s10795_s15 + $0x18] sm:$0xff] }
 0x29e   :  { %v512_v57 = vmin.f32 %v508_v54, 20.0  ;;  %vm511_vm4 = vcmp.gt.f32.partialorder %v508_v54, 20.0 }
 0x2a0   :  { %v513_v58 = vmul.f32 1.442695, %v512_v57  ;;  %v9891_v57 = vpack.c.bf16 %v106_v56, %v105_v55  ;;  %v9948_v55 = vld [vmem:[%s10820_s28 + $0x2] sm:$0x3] }
 0x2a2   :  { %9408 = vpow2.f32 %v513_v58  ;;  %9014 = vmatpush3.bf16.msra.mxu0 %v9891_v57  ;;  %v9898_v58 = vld [vmem:[%s10799_s14] ss:$0 sm:$0xff] }
 0x2a3   :  { %8170 = vmatprep.subr.mxu0 %v9504_v4 }
 0x2a4   :  { %v593_v24 = vpop.f32.mrb[6].mxu0 }
 0x2a5   :  { %v8133_v25 = vpop.f32.mrb[7].mxu0 }
 0x2ac   :  { %v9409_v59 = vpop.eup %9408 }
 0x2ad   :  { %v515_v60 = vadd.f32 1.0, %v9409_v59  ;;  %v518_v61 = vmul.f32 -0.5, %v9409_v59  ;;  %v521_v63 = vand.u32 2147483647, %v9409_v59 }
 0x2af   :  { %9410 = vlog2.f32 %v515_v60  ;;  %v519_v62 = vadd.f32 1.0, %v518_v61  ;;  %vm522_vm3 = vcmp.lt.f32.partialorder %v521_v63, 0.0004427343  ;;  %v9904_v63 = vld [vmem:[%s10797_s17] sm:$0xff] }
 0x2b1   :  { %v520_v3 = vmul.f32 %v9409_v59, %v519_v62 }
 0x2b9   :  { %v9411_v1 = vpop.eup %9410 }
 0x2ba   :  { %v517_v2 = vmul.f32 0.6931472, %v9411_v1 }
 0x2bc   :  { %v523_v12 = vsel %vm522_vm3, %v520_v3, %v517_v2  ;;  %v9916_v3 = vld [vmem:[%s10800_s20] ss:$0 sm:$0xff] }
 0x2bd   :  { %v524_v14 = vsel %vm511_vm4, %v508_v54, %v523_v12  ;;  %v9872_v54 = vpack.c.bf16 %v115_v53, %v114_v52 }
 0x2be   :  { %v525_v17 = vmul.f32 %v524_v14, %v119_v11 }
 0x2c0   :  { %v526_v18 = vadd.f32 %v525_v17, %v432_v15 }
 0x2c2   :  { %8139 = vmatmul.mubr.msk.f32.vlgmr.msra.gmra.mrb[4].mxu1 %vm597_vm5, %v526_v18 }
 0x2c3   :  { %8149 = vmatprep.mubr.msk.f32.mxu1 %vm9503_vm0, %v9504_v4  ;;  %9005 = vmatpush3.bf16.msra.mxu1 %v9813_v23 }
 0x2c4   :  { %9006 = vmatprep.subr.bf16.mxu1 %v9502_v0 }
 0x2c7   :  { %9008 = vmatpush3.bf16.msra.mxu1 %v9823_v28 }
 0x2c8   :  { %9015 = vmatprep.subr.bf16.mxu1 %v9502_v0 }
 0x395   :  { %v667_v35 = vpop.f32.mrb[4].mxu1 }
 0x396   :  { %v668_v38 = vadd.f32 %v667_v35, %v593_v24  ;;  %v8140_v39 = vpop.f32.mrb[5].mxu1 }
 0x398   :  { %v677_v42 = vadd.f32 %v9840_v33, %v668_v38 }
 0x39a   :  { %v678_v45 = vmax.f32 %v677_v42, 0.0 }
 0x39c   :  { %8150 = vmatmul.mubr.msk.f32.vlgmr.msra.gmra.mrb[6].mxu1 %vm120_vm1, %v678_v45 }
 0x39d   :  { %9017 = vmatpush3.bf16.msra.mxu1 %v9849_v43  ;;  %8167 = vmatprep.mubr.msk.f32.mxu1 %vm9503_vm0, %v9504_v4 }
 0x39e   :  { %9018 = vmatprep.subr.bf16.mxu1 %v9502_v0 }
 0x3a0   :  { %8168 = vmatmul.mubr.msk.f32.vlgmr.msra.gmra.mrb[8].mxu1 %vm597_vm5, %v526_v18 }
 0x3a1   :  { %9020 = vmatpush3.bf16.msra.mxu1 %v9861_v49  ;;  %8183 = vmatprep.mubr.msk.f32.mxu1 %vm9503_vm0, %v9504_v4 }
 0x3a2   :  { %9021 = vmatprep.subr.bf16.mxu1 %v9502_v0 }
 0x3a5   :  { %9023 = vmatpush3.bf16.msra.mxu1 %v9872_v54 }
 0x3a6   :  { %8197 = vmatprep.subr.mxu1 %v9504_v4 }
 0x3a8   :  { %8184 = vmatmul.mubr.msk.f32.vlgmr.msra.gmra.mrb[10].mxu1 %vm120_vm1, %v9651_v8 }
 0x3a9   :  { %8198 = vmatpush3.msra.mxu1 %v9657_v9  ;;  %8199 = vmatprep.mubr.msk.f32.mxu1 %vm9503_vm0, %v9504_v4 }
 0x3aa   :  { %9036 = vmatprep.subr.bf16.mxu1 %v9502_v0 }
 0x3ac   :  { %8200 = vmatmul.mubr.msk.f32.vlgmr.msra.gmra.mrb[12].mxu1 %vm194_vm2, %v9948_v55 }
 0x3ad   :  { %9038 = vmatpush3.bf16.msra.mxu1 %v9700_v19  ;;  %8221 = vmatprep.mubr.msk.f32.mxu1 %vm9503_vm0, %v9504_v4 }
 0x3ae   :  { %9039 = vmatprep.subr.bf16.mxu1 %v9502_v0 }
 0x3b1   :  { %9041 = vmatpush3.bf16.msra.mxu1 %v9732_v34 }
 0x3b2   :  { %9048 = vmatprep.subr.bf16.mxu1 %v9502_v0 }
 0x46f   :  { %v754_v59 = vpop.f32.mrb[6].mxu1 }
 0x470   :  { %v755_v60 = vadd.f32 %v9898_v58, %v754_v59  ;;  %v8151_v61 = vpop.f32.mrb[7].mxu1 }
 0x472   :  { %v758_v62 = vmax.f32 %v755_v60, 0.0 }
 0x473   :  { %v908_v1 = vpop.f32.mrb[8].mxu1 }
 0x474   :  { %8161 = vmatmul.mubr.msk.f32.vlgmr.msra.gmra.mrb[8].mxu0 %vm120_vm1, %v758_v62  ;;  %v8169_v2 = vpop.f32.mrb[9].mxu1 }
 0x475   :  { %8171 = vmatpush3.msra.mxu0 %v9904_v63  ;;  %8172 = vmatprep.mubr.msk.f32.mxu0 %vm9503_vm0, %v9504_v4 }
 0x476   :  { %9024 = vmatprep.subr.bf16.mxu0 %v9502_v0 }
 0x478   :  { %8173 = vmatmul.mubr.msk.f32.vlgmr.msra.gmra.mrb[10].mxu0 %vm194_vm2, %v9667_v10  ;;  %v9929_v10 = vld [vmem:[%s10801_s16] ss:$0 sm:$0xff] }
 0x479   :  { %9026 = vmatpush3.bf16.msra.mxu0 %v9635_v5  ;;  %8194 = vmatprep.mubr.msk.f32.mxu0 %vm9503_vm0, %v9504_v4 }
 0x47a   :  { %9027 = vmatprep.subr.bf16.mxu0 %v9502_v0 }
 0x47b   :  { %v1061_v11 = vpop.f32.mrb[10].mxu1 }
 0x47c   :  { %v1062_v12 = vadd.f32 %v9916_v3, %v1061_v11  ;;  %v8185_v14 = vpop.f32.mrb[11].mxu1 }
 0x47d   :  { %9029 = vmatpush3.bf16.msra.mxu0 %v9644_v7 }
 0x47e   :  { %1071 = vrot.lane.b32.xlu0 %v1062_v12, %s9505_s9  ;;  %9030 = vmatprep.subr.bf16.mxu0 %v9502_v0 }
 0x47f   :  { %v1242_v2 = vpop.f32.mrb[12].mxu1 }
 0x480   :  { %v8201_v11 = vpop.f32.mrb[13].mxu1 }
 0x4f0   :  { %v1072_v42 = vpop.permute.xlu0 %1071 }
 0x547   :  { %v834_v15 = vpop.f32.mrb[8].mxu0 }
 0x548   :  { %v835_v17 = vadd.f32 %v9929_v10, %v834_v15  ;;  %v8162_v18 = vpop.f32.mrb[9].mxu0 }
 0x54a   :  { %v838_v20 = vmul.f32 0.5, %v835_v17 }
 0x54b   :  { %v978_v24 = vpop.f32.mrb[10].mxu0 }
 0x54c   :  { %9412 = vtanh.f32 %v838_v20  ;;  %v979_v25 = vadd.f32 %v978_v24, %v908_v1  ;;  %v8174_v26 = vpop.f32.mrb[11].mxu0 }
 0x54e   :  { %v988_v27 = vadd.f32 %v9935_v21, %v979_v25 }
 0x550   :  { %v1065_v30 = vadd.f32 %v1062_v12, %v988_v27 }
 0x552   :  { %v1066_v31 = vmul.f32 0.5, %v1065_v30 }
 0x554   :  { %9414 = vtanh.f32 %v1066_v31 }
 0x556   :  { %v9413_v35 = vpop.eup %9412 }
 0x557   :  { %v840_v38 = vadd.f32 1.0, %v9413_v35 }
 0x559   :  { %v841_v39 = vmul.f32 0.5, %v840_v38 }
 0x55b   :  { %1093 = vst.msk [vmem:[%s10803_s21] sm:$0x3] %vm1092_vm6, %v841_v39 }
 0x55e   :  { %v9415_v40 = vpop.eup %9414 }
 0x55f   :  { %v1068_v41 = vadd.f32 1.0, %v9415_v40 }
 0x561   :  { %v1069_v45 = vmul.f32 0.5, %v1068_v41 }
 0x563   :  { %v1074_v46 = vmul.f32 %v1072_v42, %v1069_v45 }
 0x565   :  { %1076 = vrot.lane.b32.xlu0 %v1074_v46, %s9505_s9 }
 0x5d7   :  { %v1077_v48 = vpop.permute.xlu0 %1076 }
 0x5d8   :  { %v1079_v52 = vadd.f32 %v1077_v48, %v988_v27 }
 0x5da   :  { %9416 = vtanh.f32 %v1079_v52 }
 0x5e4   :  { %v9417_v53 = vpop.eup %9416 }
 0x5e5   :  { %1083 = vrot.lane.b32.xlu1 %v9417_v53, %s9506_s13 }
 0x5e9   :  { %1087 = vrot.lane.b32.xlu1 %v9651_v8, %s9507_s5  ;;  %v1081_v8 = vsub.f32 1.0, %v1069_v45 }
 0x657   :  { %v1084_v56 = vpop.permute.xlu1 %1083 }
 0x658   :  { %v1086_v60 = vmul.f32 %v1084_v56, %v1081_v8 }
 0x65b   :  { %v1088_v59 = vpop.permute.xlu1 %1087 }
 0x65c   :  { %v1090_v61 = vmul.f32 %v1088_v59, %v1069_v45 }
 0x65e   :  { %v9958_v62 = vadd.f32 %v1090_v61, %v1086_v60  ;;  %v7570_v60 = vld [vmem:[%s10793_s1 + $0x2] sm:$0x3] }
 0x660   :  { %1099 = vrot.lane.b32.xlu0 %v9958_v62, %s9506_s13 }
 0x6d2   :  { %v9962_v1 = vpop.permute.xlu0 %1099 }
 0x6d3   :  { %8195 = vmatmul.mubr.msk.f32.vlgmr.msra.gmra.mrb[12].mxu0 %vm120_vm1, %v9962_v1 }
 0x6d4   :  { %9032 = vmatpush3.bf16.msra.mxu0 %v9680_v13  ;;  %8210 = vmatprep.mubr.msk.f32.mxu0 %vm9503_vm0, %v9504_v4 }
 0x6d5   :  { %9033 = vmatprep.subr.bf16.mxu0 %v9502_v0 }
 0x6d8   :  { %9035 = vmatpush3.bf16.msra.mxu0 %v9690_v16 }
 0x6d9   :  { %9042 = vmatprep.subr.bf16.mxu0 %v9502_v0 }
 0x7a6   :  { %v1169_v12 = vpop.f32.mrb[12].mxu0 }
 0x7a7   :  { %v1243_v14 = vadd.f32 %v1242_v2, %v1169_v12  ;;  %v8196_v15 = vpop.f32.mrb[13].mxu0 }
 0x7a9   :  { %v1246_v17 = vadd.f32 %v9707_v22, %v1243_v14 }
 0x7ab   :  { %v1247_v18 = vmax.f32 %v1246_v17, 0.0 }
 0x7ad   :  { %8211 = vmatmul.mubr.msk.f32.vlgmr.msra.gmra.mrb[14].mxu0 %vm120_vm1, %v1247_v18 }
 0x7ae   :  { %9044 = vmatpush3.bf16.msra.mxu0 %v9716_v29  ;;  %8232 = vmatprep.mubr.msk.f32.mxu0 %vm9503_vm0, %v9504_v4 }
 0x7af   :  { %9045 = vmatprep.subr.bf16.mxu0 %v9502_v0 }
 0x7b2   :  { %9047 = vmatpush3.bf16.msra.mxu0 %v9737_v36 }
 0x7b3   :  { %9054 = vmatprep.subr.bf16.mxu0 %v9502_v0 }
 0x880   :  { %v1317_v20 = vpop.f32.mrb[14].mxu0 }
 0x881   :  { %v1318_v24 = vadd.f32 %v9746_v37, %v1317_v20  ;;  %v8212_v25 = vpop.f32.mrb[15].mxu0 }
 0x883   :  { %v1321_v26 = vmax.f32 %v1318_v24, 0.0 }
 0x885   :  { %8222 = vmatmul.mubr.msk.f32.vlgmr.msra.gmra.mrb[14].mxu1 %vm120_vm1, %v1321_v26  ;;  %8233 = vmatmul.mubr.msk.f32.vlgmr.msra.gmra.mrb[16].mxu0 %vm120_vm1, %v1321_v26 }
 0x886   :  { %9050 = vmatpush3.bf16.msra.mxu1 %v9761_v44  ;;  %8243 = vmatprep.mubr.msk.f32.mxu1 %vm9503_vm0, %v9504_v4 }
 0x887   :  { %9051 = vmatprep.subr.bf16.mxu1 %v9502_v0  ;;  %9056 = vmatpush3.bf16.msra.mxu0 %v9779_v50 }
 0x888   :  { %8250 = vmatprep.mubr.msk.f32.mxu0 %vm9503_vm0, %v9504_v4  ;;  %9063 = vmatprep.subr.bf16.mxu0 %v9502_v0 }
 0x88a   :  { %9053 = vmatpush3.bf16.msra.mxu1 %v9771_v47 }
 0x88b   :  { %9057 = vmatprep.subr.bf16.mxu1 %v9502_v0 }
 0x88d   :  { %8244 = vmatmul.mubr.msk.f32.vlgmr.msra.gmra.mrb[16].mxu1 %vm120_vm1, %v9962_v1 }
 0x88e   :  { %9059 = vmatpush3.bf16.msra.mxu1 %v9813_v23  ;;  %8261 = vmatprep.mubr.msk.f32.mxu1 %vm9503_vm0, %v9504_v4 }
 0x88f   :  { %9060 = vmatprep.subr.bf16.mxu1 %v9502_v0 }
 0x892   :  { %9062 = vmatpush3.bf16.msra.mxu1 %v9823_v28 }
 0x893   :  { %9069 = vmatprep.subr.bf16.mxu1 %v9502_v0 }
 0x958   :  { %v1391_v27 = vpop.f32.mrb[14].mxu1  ;;  %v1461_v30 = vpop.f32.mrb[16].mxu0 }
 0x959   :  { %v1462_v31 = vadd.f32 %v9792_v51, %v1461_v30  ;;  %v8223_v35 = vpop.f32.mrb[15].mxu1  ;;  %v8234_v38 = vpop.f32.mrb[17].mxu0  ;;  %v1392_v11 = vadd.f32 %v9798_v6, %v1391_v27 }
 0x95b   :  { %v1466_v39 = vmin.f32 %v1462_v31, 20.0  ;;  %vm1465_vm8 = vcmp.gt.f32.partialorder %v1462_v31, 20.0 }
 0x95d   :  { %v1467_v40 = vmul.f32 1.442695, %v1466_v39 }
 0x95f   :  { %9418 = vpow2.f32 %v1467_v40 }
 0x960   :  { %v1547_v41 = vpop.f32.mrb[16].mxu1 }
 0x961   :  { %v8245_v42 = vpop.f32.mrb[17].mxu1 }
 0x969   :  { %v9419_v45 = vpop.eup %9418 }
 0x96a   :  { %v1469_v46 = vadd.f32 1.0, %v9419_v45  ;;  %v1472_v48 = vmul.f32 -0.5, %v9419_v45  ;;  %v1475_v53 = vand.u32 2147483647, %v9419_v45 }
 0x96c   :  { %9420 = vlog2.f32 %v1469_v46  ;;  %v1473_v52 = vadd.f32 1.0, %v1472_v48  ;;  %vm1476_vm7 = vcmp.lt.f32.partialorder %v1475_v53, 0.0004427343 }
 0x96e   :  { %v1474_v59 = vmul.f32 %v9419_v45, %v1473_v52 }
 0x976   :  { %v9421_v56 = vpop.eup %9420 }
 0x977   :  { %v1471_v8 = vmul.f32 0.6931472, %v9421_v56 }
 0x979   :  { %v1477_v61 = vsel %vm1476_vm7, %v1474_v59, %v1471_v8 }
 0x97a   :  { %v1478_v2 = vsel %vm1465_vm8, %v1462_v31, %v1477_v61 }
 0x97b   :  { %v1479_v12 = vmul.f32 %v7570_v60, %v1478_v2 }
 0x97d   :  { %v1480_v14 = vadd.f32 %v1479_v12, %v1392_v11 }
 0x97f   :  { %8251 = vmatmul.mubr.msk.f32.vlgmr.msra.gmra.mrb[18].mxu0 %vm597_vm5, %v1480_v14 }
 0x980   :  { %9065 = vmatpush3.bf16.msra.mxu0 %v9833_v32  ;;  %8272 = vmatprep.mubr.msk.f32.mxu0 %vm9503_vm0, %v9504_v4 }
 0x981   :  { %9066 = vmatprep.subr.bf16.mxu0 %v9502_v0 }
 0x984   :  { %9068 = vmatpush3.bf16.msra.mxu0 %v9891_v57 }
 0x985   :  { %8282 = vmatprep.subr.mxu0 %v9504_v4 }
 0xa52   :  { %v1620_v15 = vpop.f32.mrb[18].mxu0 }
 0xa53   :  { %v1621_v17 = vadd.f32 %v1620_v15, %v1547_v41  ;;  %v8252_v18 = vpop.f32.mrb[19].mxu0 }
 0xa55   :  { %v1624_v20 = vadd.f32 %v9840_v33, %v1621_v17 }
 0xa57   :  { %v1625_v24 = vmax.f32 %v1624_v20, 0.0  ;;  %v10059_v20 = vld [vmem:[%s10820_s28 + $0x4] sm:$0x3] }
 0xa59   :  { %8262 = vmatmul.mubr.msk.f32.vlgmr.msra.gmra.mrb[18].mxu1 %vm120_vm1, %v1625_v24 }
 0xa5a   :  { %9071 = vmatpush3.bf16.msra.mxu1 %v9849_v43  ;;  %8279 = vmatprep.mubr.msk.f32.mxu1 %vm9503_vm0, %v9504_v4 }
 0xa5b   :  { %9072 = vmatprep.subr.bf16.mxu1 %v9502_v0 }
 0xa5d   :  { %8280 = vmatmul.mubr.msk.f32.vlgmr.msra.gmra.mrb[20].mxu1 %vm597_vm5, %v1480_v14 }
 0xa5e   :  { %9074 = vmatpush3.bf16.msra.mxu1 %v9861_v49  ;;  %8295 = vmatprep.mubr.msk.f32.mxu1 %vm9503_vm0, %v9504_v4 }
 0xa5f   :  { %9075 = vmatprep.subr.bf16.mxu1 %v9502_v0 }
 0xa62   :  { %9077 = vmatpush3.bf16.msra.mxu1 %v9872_v54 }
 0xa63   :  { %8309 = vmatprep.subr.mxu1 %v9504_v4 }
 0xa65   :  { %8296 = vmatmul.mubr.msk.f32.vlgmr.msra.gmra.mrb[22].mxu1 %vm120_vm1, %v9962_v1 }
 0xa66   :  { %8310 = vmatpush3.msra.mxu1 %v9657_v9  ;;  %8311 = vmatprep.mubr.msk.f32.mxu1 %vm9503_vm0, %v9504_v4 }
 0xa67   :  { %9090 = vmatprep.subr.bf16.mxu1 %v9502_v0 }
 0xa69   :  { %8312 = vmatmul.mubr.msk.f32.vlgmr.msra.gmra.mrb[24].mxu1 %vm194_vm2, %v10059_v20 }
 0xa6a   :  { %9092 = vmatpush3.bf16.msra.mxu1 %v9700_v19  ;;  %8333 = vmatprep.mubr.msk.f32.mxu1 %vm9503_vm0, %v9504_v4 }
 0xa6b   :  { %9093 = vmatprep.subr.bf16.mxu1 %v9502_v0 }
 0xa6e   :  { %9095 = vmatpush3.bf16.msra.mxu1 %v9732_v34 }
 0xa6f   :  { %9102 = vmatprep.subr.bf16.mxu1 %v9502_v0 }
 0xb2c   :  { %v1695_v25 = vpop.f32.mrb[18].mxu1 }
 0xb2d   :  { %v1696_v26 = vadd.f32 %v9898_v58, %v1695_v25  ;;  %v8263_v27 = vpop.f32.mrb[19].mxu1 }
 0xb2f   :  { %v1699_v30 = vmax.f32 %v1696_v26, 0.0 }
 0xb30   :  { %v1843_v31 = vpop.f32.mrb[20].mxu1 }
 0xb31   :  { %8273 = vmatmul.mubr.msk.f32.vlgmr.msra.gmra.mrb[20].mxu0 %vm120_vm1, %v1699_v30  ;;  %v8281_v35 = vpop.f32.mrb[21].mxu1 }
 0xb32   :  { %8283 = vmatpush3.msra.mxu0 %v9904_v63  ;;  %8284 = vmatprep.mubr.msk.f32.mxu0 %vm9503_vm0, %v9504_v4 }
 0xb33   :  { %9078 = vmatprep.subr.bf16.mxu0 %v9502_v0 }
 0xb35   :  { %8285 = vmatmul.mubr.msk.f32.vlgmr.msra.gmra.mrb[22].mxu0 %vm194_vm2, %v9948_v55 }
 0xb36   :  { %9080 = vmatpush3.bf16.msra.mxu0 %v9635_v5  ;;  %8306 = vmatprep.mubr.msk.f32.mxu0 %vm9503_vm0, %v9504_v4 }
 0xb37   :  { %9081 = vmatprep.subr.bf16.mxu0 %v9502_v0 }
 0xb38   :  { %v1984_v1 = vpop.f32.mrb[22].mxu1 }
 0xb39   :  { %v1985_v38 = vadd.f32 %v9916_v3, %v1984_v1  ;;  %v8297_v39 = vpop.f32.mrb[23].mxu1 }
 0xb3a   :  { %9083 = vmatpush3.bf16.msra.mxu0 %v9644_v7 }
 0xb3b   :  { %1994 = vrot.lane.b32.xlu1 %v1985_v38, %s9505_s9  ;;  %9084 = vmatprep.subr.bf16.mxu0 %v9502_v0 }
 0xbad   :  { %v1995_v12 = vpop.permute.xlu1 %1994 }
 0xc04   :  { %v1769_v40 = vpop.f32.mrb[20].mxu0 }
 0xc05   :  { %v1770_v55 = vadd.f32 %v9929_v10, %v1769_v40  ;;  %v8274_v41 = vpop.f32.mrb[21].mxu0 }
 0xc07   :  { %v1773_v42 = vmul.f32 0.5, %v1770_v55 }
 0xc08   :  { %v1913_v45 = vpop.f32.mrb[22].mxu0 }
 0xc09   :  { %9422 = vtanh.f32 %v1773_v42  ;;  %v1914_v46 = vadd.f32 %v1913_v45, %v1843_v31  ;;  %v8286_v48 = vpop.f32.mrb[23].mxu0 }
 0xc0b   :  { %v1917_v52 = vadd.f32 %v9935_v21, %v1914_v46 }
 0xc0d   :  { %v1988_v53 = vadd.f32 %v1985_v38, %v1917_v52 }
 0xc0f   :  { %v1989_v56 = vmul.f32 0.5, %v1988_v53 }
 0xc11   :  { %9424 = vtanh.f32 %v1989_v56 }
 0xc13   :  { %v9423_v8 = vpop.eup %9422 }
 0xc14   :  { %v1775_v59 = vadd.f32 1.0, %v9423_v8 }
 0xc16   :  { %v1776_v60 = vmul.f32 0.5, %v1775_v59 }
 0xc18   :  { %7583 = vst.msk [vmem:[%s10803_s21 + $0x2] sm:$0x3] %vm1092_vm6, %v1776_v60 }
 0xc1b   :  { %v9425_v61 = vpop.eup %9424 }
 0xc1c   :  { %v1991_v2 = vadd.f32 1.0, %v9425_v61 }
 0xc1e   :  { %v1992_v11 = vmul.f32 0.5, %v1991_v2 }
 0xc20   :  { %v1997_v14 = vmul.f32 %v1995_v12, %v1992_v11  ;;  %v2004_v24 = vsub.f32 1.0, %v1992_v11  ;;  %v2010_v26 = vmul.f32 %v1992_v11, %v9958_v62  ;;  %v2162_v62 = vpop.f32.mrb[24].mxu1 }
 0xc21   :  { %v8313_v35 = vpop.f32.mrb[25].mxu1 }
 0xc22   :  { %1999 = vrot.lane.b32.xlu0 %v1997_v14, %s9505_s9 }
 0xc94   :  { %v2000_v15 = vpop.permute.xlu0 %1999 }
 0xc95   :  { %v2002_v17 = vadd.f32 %v2000_v15, %v1917_v52 }
 0xc97   :  { %9426 = vtanh.f32 %v2002_v17 }
 0xca1   :  { %v9427_v18 = vpop.eup %9426 }
 0xca2   :  { %2006 = vrot.lane.b32.xlu1 %v9427_v18, %s9506_s13 }
 0xd14   :  { %v2007_v25 = vpop.permute.xlu1 %2006 }
 0xd15   :  { %v2009_v27 = vmul.f32 %v2007_v25, %v2004_v24  ;;  %v7585_v24 = vld [vmem:[%s10793_s1 + $0x4] sm:$0x3] }
 0xd17   :  { %v10070_v30 = vadd.f32 %v2010_v26, %v2009_v27 }
 0xd19   :  { %2019 = vrot.lane.b32.xlu0 %v10070_v30, %s9506_s13 }
 0xd8b   :  { %v10074_v31 = vpop.permute.xlu0 %2019 }
 0xd8c   :  { %8307 = vmatmul.mubr.msk.f32.vlgmr.msra.gmra.mrb[24].mxu0 %vm120_vm1, %v10074_v31 }
 0xd8d   :  { %9086 = vmatpush3.bf16.msra.mxu0 %v9680_v13  ;;  %8322 = vmatprep.mubr.msk.f32.mxu0 %vm9503_vm0, %v9504_v4 }
 0xd8e   :  { %9087 = vmatprep.subr.bf16.mxu0 %v9502_v0 }
 0xd91   :  { %9089 = vmatpush3.bf16.msra.mxu0 %v9690_v16 }
 0xd92   :  { %9096 = vmatprep.subr.bf16.mxu0 %v9502_v0 }
 0xe5f   :  { %v2089_v1 = vpop.f32.mrb[24].mxu0 }
 0xe60   :  { %v2163_v38 = vadd.f32 %v2162_v62, %v2089_v1  ;;  %v8308_v39 = vpop.f32.mrb[25].mxu0 }
 0xe62   :  { %v2166_v40 = vadd.f32 %v9707_v22, %v2163_v38 }
 0xe64   :  { %v2167_v55 = vmax.f32 %v2166_v40, 0.0 }
 0xe66   :  { %8323 = vmatmul.mubr.msk.f32.vlgmr.msra.gmra.mrb[26].mxu0 %vm120_vm1, %v2167_v55 }
 0xe67   :  { %9098 = vmatpush3.bf16.msra.mxu0 %v9716_v29  ;;  %8344 = vmatprep.mubr.msk.f32.mxu0 %vm9503_vm0, %v9504_v4 }
 0xe68   :  { %9099 = vmatprep.subr.bf16.mxu0 %v9502_v0 }
 0xe6b   :  { %9101 = vmatpush3.bf16.msra.mxu0 %v9737_v36 }
 0xe6c   :  { %9108 = vmatprep.subr.bf16.mxu0 %v9502_v0 }
 0xf39   :  { %v2237_v41 = vpop.f32.mrb[26].mxu0 }
 0xf3a   :  { %v2238_v42 = vadd.f32 %v9746_v37, %v2237_v41  ;;  %v8324_v45 = vpop.f32.mrb[27].mxu0 }
 0xf3c   :  { %v2241_v46 = vmax.f32 %v2238_v42, 0.0 }
 0xf3e   :  { %8334 = vmatmul.mubr.msk.f32.vlgmr.msra.gmra.mrb[26].mxu1 %vm120_vm1, %v2241_v46  ;;  %8345 = vmatmul.mubr.msk.f32.vlgmr.msra.gmra.mrb[28].mxu0 %vm120_vm1, %v2241_v46 }
 0xf3f   :  { %9104 = vmatpush3.bf16.msra.mxu1 %v9761_v44  ;;  %8355 = vmatprep.mubr.msk.f32.mxu1 %vm9503_vm0, %v9504_v4 }
 0xf40   :  { %9105 = vmatprep.subr.bf16.mxu1 %v9502_v0  ;;  %9110 = vmatpush3.bf16.msra.mxu0 %v9779_v50 }
 0xf41   :  { %8362 = vmatprep.mubr.msk.f32.mxu0 %vm9503_vm0, %v9504_v4  ;;  %9117 = vmatprep.subr.bf16.mxu0 %v9502_v0 }
 0xf43   :  { %9107 = vmatpush3.bf16.msra.mxu1 %v9771_v47 }
 0xf44   :  { %9111 = vmatprep.subr.bf16.mxu1 %v9502_v0 }
 0xf46   :  { %8356 = vmatmul.mubr.msk.f32.vlgmr.msra.gmra.mrb[28].mxu1 %vm120_vm1, %v10074_v31 }
 0xf47   :  { %9113 = vmatpush3.bf16.msra.mxu1 %v9813_v23  ;;  %8373 = vmatprep.mubr.msk.f32.mxu1 %vm9503_vm0, %v9504_v4 }
 0xf48   :  { %9114 = vmatprep.subr.bf16.mxu1 %v9502_v0 }
 0xf4b   :  { %9116 = vmatpush3.bf16.msra.mxu1 %v9823_v28 }
 0xf4c   :  { %9123 = vmatprep.subr.bf16.mxu1 %v9502_v0 }
0x1011   :  { %v2311_v22 = vpop.f32.mrb[26].mxu1  ;;  %v2381_v37 = vpop.f32.mrb[28].mxu0 }
0x1012   :  { %v2382_v48 = vadd.f32 %v9792_v51, %v2381_v37  ;;  %v8335_v52 = vpop.f32.mrb[27].mxu1  ;;  %v8346_v53 = vpop.f32.mrb[29].mxu0  ;;  %v2312_v27 = vadd.f32 %v9798_v6, %v2311_v22 }
0x1014   :  { %v2386_v56 = vmin.f32 %v2382_v48, 20.0  ;;  %vm2385_vm10 = vcmp.gt.f32.partialorder %v2382_v48, 20.0 }
0x1016   :  { %v2387_v8 = vmul.f32 1.442695, %v2386_v56 }
0x1018   :  { %9428 = vpow2.f32 %v2387_v8 }
0x1019   :  { %v2467_v59 = vpop.f32.mrb[28].mxu1 }
0x101a   :  { %v8357_v60 = vpop.f32.mrb[29].mxu1 }
0x1022   :  { %v9429_v61 = vpop.eup %9428 }
0x1023   :  { %v2389_v2 = vadd.f32 1.0, %v9429_v61  ;;  %v2392_v11 = vmul.f32 -0.5, %v9429_v61  ;;  %v2395_v14 = vand.u32 2147483647, %v9429_v61 }
0x1025   :  { %9430 = vlog2.f32 %v2389_v2  ;;  %v2393_v12 = vadd.f32 1.0, %v2392_v11  ;;  %vm2396_vm9 = vcmp.lt.f32.partialorder %v2395_v14, 0.0004427343 }
0x1027   :  { %v2394_v18 = vmul.f32 %v9429_v61, %v2393_v12 }
0x102f   :  { %v9431_v15 = vpop.eup %9430 }
0x1030   :  { %v2391_v17 = vmul.f32 0.6931472, %v9431_v15 }
0x1032   :  { %v2397_v25 = vsel %vm2396_vm9, %v2394_v18, %v2391_v17 }
0x1033   :  { %v2398_v26 = vsel %vm2385_vm10, %v2382_v48, %v2397_v25 }
0x1034   :  { %v2399_v62 = vmul.f32 %v7585_v24, %v2398_v26 }
0x1036   :  { %v2400_v35 = vadd.f32 %v2399_v62, %v2312_v27 }
0x1038   :  { %8363 = vmatmul.mubr.msk.f32.vlgmr.msra.gmra.mrb[30].mxu0 %vm597_vm5, %v2400_v35 }
0x1039   :  { %9119 = vmatpush3.bf16.msra.mxu0 %v9833_v32  ;;  %8384 = vmatprep.mubr.msk.f32.mxu0 %vm9503_vm0, %v9504_v4 }
0x103a   :  { %9120 = vmatprep.subr.bf16.mxu0 %v9502_v0 }
0x103d   :  { %9122 = vmatpush3.bf16.msra.mxu0 %v9891_v57 }
0x103e   :  { %8394 = vmatprep.subr.mxu0 %v9504_v4 }
0x110b   :  { %v2540_v1 = vpop.f32.mrb[30].mxu0 }
0x110c   :  { %v2541_v38 = vadd.f32 %v2540_v1, %v2467_v59  ;;  %v8364_v39 = vpop.f32.mrb[31].mxu0 }
0x110e   :  { %v2544_v6 = vadd.f32 %v9840_v33, %v2541_v38 }
0x1110   :  { %v2545_v40 = vmax.f32 %v2544_v6, 0.0 }
0x1112   :  { %8374 = vmatmul.mubr.msk.f32.vlgmr.msra.gmra.mrb[30].mxu1 %vm120_vm1, %v2545_v40 }
0x1113   :  { %9125 = vmatpush3.bf16.msra.mxu1 %v9849_v43  ;;  %8391 = vmatprep.mubr.msk.f32.mxu1 %vm9503_vm0, %v9504_v4 }
0x1114   :  { %9126 = vmatprep.subr.bf16.mxu1 %v9502_v0 }
0x1116   :  { %8392 = vmatmul.mubr.msk.f32.vlgmr.msra.gmra.mrb[32].mxu1 %vm597_vm5, %v2400_v35  ;;  %v10171_v35 = vld [vmem:[%s10820_s28 + $0x6] sm:$0x3] }
0x1117   :  { %9128 = vmatpush3.bf16.msra.mxu1 %v9861_v49  ;;  %8407 = vmatprep.mubr.msk.f32.mxu1 %vm9503_vm0, %v9504_v4 }
0x1118   :  { %9129 = vmatprep.subr.bf16.mxu1 %v9502_v0 }
0x111b   :  { %9131 = vmatpush3.bf16.msra.mxu1 %v9872_v54 }
0x111c   :  { %8421 = vmatprep.subr.mxu1 %v9504_v4 }
0x111e   :  { %8408 = vmatmul.mubr.msk.f32.vlgmr.msra.gmra.mrb[34].mxu1 %vm120_vm1, %v10074_v31 }
0x111f   :  { %8422 = vmatpush3.msra.mxu1 %v9657_v9  ;;  %8423 = vmatprep.mubr.msk.f32.mxu1 %vm9503_vm0, %v9504_v4 }
0x1120   :  { %9144 = vmatprep.subr.bf16.mxu1 %v9502_v0 }
0x1122   :  { %8424 = vmatmul.mubr.msk.f32.vlgmr.msra.gmra.mrb[36].mxu1 %vm194_vm2, %v10171_v35 }
0x1123   :  { %9146 = vmatpush3.bf16.msra.mxu1 %v9700_v19  ;;  %8445 = vmatprep.mubr.msk.f32.mxu1 %vm9503_vm0, %v9504_v4 }
0x1124   :  { %9147 = vmatprep.subr.bf16.mxu1 %v9502_v0 }
0x1127   :  { %9149 = vmatpush3.bf16.msra.mxu1 %v9732_v34 }
0x1128   :  { %9156 = vmatprep.subr.bf16.mxu1 %v9502_v0 }
0x11e5   :  { %v2615_v55 = vpop.f32.mrb[30].mxu1 }
0x11e6   :  { %v2616_v41 = vadd.f32 %v9898_v58, %v2615_v55  ;;  %v8375_v42 = vpop.f32.mrb[31].mxu1 }
0x11e8   :  { %v2619_v45 = vmax.f32 %v2616_v41, 0.0 }
0x11e9   :  { %v2763_v46 = vpop.f32.mrb[32].mxu1 }
0x11ea   :  { %8385 = vmatmul.mubr.msk.f32.vlgmr.msra.gmra.mrb[32].mxu0 %vm120_vm1, %v2619_v45  ;;  %v8393_v22 = vpop.f32.mrb[33].mxu1 }
0x11eb   :  { %8395 = vmatpush3.msra.mxu0 %v9904_v63  ;;  %8396 = vmatprep.mubr.msk.f32.mxu0 %vm9503_vm0, %v9504_v4  ;;  %v10199_v22 = vld [vmem:[%s10823_s23] ss:$0 sm:$0xff] }
0x11ec   :  { %9132 = vmatprep.subr.bf16.mxu0 %v9502_v0 }
0x11ee   :  { %8397 = vmatmul.mubr.msk.f32.vlgmr.msra.gmra.mrb[34].mxu0 %vm194_vm2, %v10059_v20 }
0x11ef   :  { %9134 = vmatpush3.bf16.msra.mxu0 %v9635_v5  ;;  %8418 = vmatprep.mubr.msk.f32.mxu0 %vm9503_vm0, %v9504_v4 }
0x11f0   :  { %9135 = vmatprep.subr.bf16.mxu0 %v9502_v0 }
0x11f1   :  { %v2904_v9 = vpop.f32.mrb[34].mxu1 }
0x11f2   :  { %v2905_v31 = vadd.f32 %v9916_v3, %v2904_v9  ;;  %v8409_v37 = vpop.f32.mrb[35].mxu1 }
0x11f3   :  { %9137 = vmatpush3.bf16.msra.mxu0 %v9644_v7 }
0x11f4   :  { %2914 = vrot.lane.b32.xlu1 %v2905_v31, %s9505_s9  ;;  %9138 = vmatprep.subr.bf16.mxu0 %v9502_v0 }
0x1266   :  { %v2915_v24 = vpop.permute.xlu1 %2914 }
0x12bd   :  { %v2689_v48 = vpop.f32.mrb[32].mxu0 }
0x12be   :  { %v2690_v20 = vadd.f32 %v9929_v10, %v2689_v48  ;;  %v8386_v52 = vpop.f32.mrb[33].mxu0  ;;  %v10212_v48 = vld [vmem:[%s10789_s6] ss:$0 sm:$0xff] }
0x12c0   :  { %v2693_v53 = vmul.f32 0.5, %v2690_v20 }
0x12c1   :  { %v2833_v56 = vpop.f32.mrb[34].mxu0 }
0x12c2   :  { %9432 = vtanh.f32 %v2693_v53  ;;  %v2834_v8 = vadd.f32 %v2833_v56, %v2763_v46  ;;  %v8398_v59 = vpop.f32.mrb[35].mxu0 }
0x12c4   :  { %v2837_v60 = vadd.f32 %v9935_v21, %v2834_v8 }
0x12c6   :  { %v2908_v61 = vadd.f32 %v2905_v31, %v2837_v60 }
0x12c8   :  { %v2909_v2 = vmul.f32 0.5, %v2908_v61 }
0x12ca   :  { %9434 = vtanh.f32 %v2909_v2 }
0x12cc   :  { %v9433_v11 = vpop.eup %9432 }
0x12cd   :  { %v2695_v12 = vadd.f32 1.0, %v9433_v11 }
0x12cf   :  { %v2696_v14 = vmul.f32 0.5, %v2695_v12 }
0x12d1   :  { %7598 = vst.msk [vmem:[%s10803_s21 + $0x4] sm:$0x3] %vm1092_vm6, %v2696_v14 }
0x12d4   :  { %v9435_v15 = vpop.eup %9434 }
0x12d5   :  { %v2911_v17 = vadd.f32 1.0, %v9435_v15 }
0x12d7   :  { %v2912_v18 = vmul.f32 0.5, %v2911_v17 }
0x12d9   :  { %v2917_v25 = vmul.f32 %v2915_v24, %v2912_v18  ;;  %v2924_v1 = vsub.f32 1.0, %v2912_v18  ;;  %v2930_v39 = vmul.f32 %v2912_v18, %v10070_v30  ;;  %v3082_v30 = vpop.f32.mrb[36].mxu1 }
0x12da   :  { %v8425_v41 = vpop.f32.mrb[37].mxu1 }
0x12db   :  { %2919 = vrot.lane.b32.xlu0 %v2917_v25, %s9505_s9 }
0x134d   :  { %v2920_v26 = vpop.permute.xlu0 %2919 }
0x134e   :  { %v2922_v27 = vadd.f32 %v2920_v26, %v2837_v60 }
0x1350   :  { %9436 = vtanh.f32 %v2922_v27 }
0x135a   :  { %v9437_v62 = vpop.eup %9436 }
0x135b   :  { %2926 = vrot.lane.b32.xlu1 %v9437_v62, %s9506_s13 }
0x13cd   :  { %v2927_v38 = vpop.permute.xlu1 %2926 }
0x13ce   :  { %v2929_v6 = vmul.f32 %v2927_v38, %v2924_v1 }
0x13d0   :  { %v10182_v40 = vadd.f32 %v2930_v39, %v2929_v6  ;;  %v10242_v39 = vld [vmem:[%s10792_s8] ss:$0 sm:$0xff] }
0x13d2   :  { %2939 = vrot.lane.b32.xlu0 %v10182_v40, %s9506_s13 }
0x1444   :  { %v10186_v55 = vpop.permute.xlu0 %2939 }
0x1445   :  { %8419 = vmatmul.mubr.msk.f32.vlgmr.msra.gmra.mrb[36].mxu0 %vm120_vm1, %v10186_v55 }
0x1446   :  { %9140 = vmatpush3.bf16.msra.mxu0 %v9680_v13  ;;  %8434 = vmatprep.mubr.msk.f32.mxu0 %vm9503_vm0, %v9504_v4 }
0x1447   :  { %9141 = vmatprep.subr.bf16.mxu0 %v9502_v0 }
0x144a   :  { %9143 = vmatpush3.bf16.msra.mxu0 %v9690_v16 }
0x144b   :  { %9150 = vmatprep.subr.bf16.mxu0 %v9502_v0 }
0x1518   :  { %v3009_v42 = vpop.f32.mrb[36].mxu0 }
0x1519   :  { %v3083_v45 = vadd.f32 %v3082_v30, %v3009_v42  ;;  %v8420_v46 = vpop.f32.mrb[37].mxu0 }
0x151b   :  { %v3086_v9 = vadd.f32 %v10199_v22, %v3083_v45 }
0x151d   :  { %v3087_v31 = vmax.f32 %v3086_v9, 0.0 }
0x151f   :  { %8435 = vmatmul.mubr.msk.f32.vlgmr.msra.gmra.mrb[38].mxu0 %vm120_vm1, %v3087_v31 }
0x1520   :  { %9152 = vmatpush3.bf16.msra.mxu0 %v9716_v29  ;;  %8456 = vmatprep.mubr.msk.f32.mxu0 %vm9503_vm0, %v9504_v4 }
0x1521   :  { %9153 = vmatprep.subr.bf16.mxu0 %v9502_v0 }
0x1524   :  { %9155 = vmatpush3.bf16.msra.mxu0 %v9737_v36 }
0x1525   :  { %9162 = vmatprep.subr.bf16.mxu0 %v9502_v0 }
0x15f2   :  { %v3157_v37 = vpop.f32.mrb[38].mxu0 }
0x15f3   :  { %v3158_v20 = vadd.f32 %v10212_v48, %v3157_v37  ;;  %v8436_v52 = vpop.f32.mrb[39].mxu0 }
0x15f5   :  { %v3161_v53 = vmax.f32 %v3158_v20, 0.0 }
0x15f7   :  { %8446 = vmatmul.mubr.msk.f32.vlgmr.msra.gmra.mrb[38].mxu1 %vm120_vm1, %v3161_v53  ;;  %8457 = vmatmul.mubr.msk.f32.vlgmr.msra.gmra.mrb[40].mxu0 %vm120_vm1, %v3161_v53 }
0x15f8   :  { %9158 = vmatpush3.bf16.msra.mxu1 %v9761_v44  ;;  %8467 = vmatprep.mubr.msk.f32.mxu1 %vm9503_vm0, %v9504_v4 }
0x15f9   :  { %9159 = vmatprep.subr.bf16.mxu1 %v9502_v0  ;;  %9164 = vmatpush3.bf16.msra.mxu0 %v9779_v50 }
0x15fa   :  { %8474 = vmatprep.mubr.msk.f32.mxu0 %vm9503_vm0, %v9504_v4  ;;  %9171 = vmatprep.subr.bf16.mxu0 %v9502_v0 }
0x15fc   :  { %9161 = vmatpush3.bf16.msra.mxu1 %v9771_v47 }
0x15fd   :  { %9165 = vmatprep.subr.bf16.mxu1 %v9502_v0 }
0x15ff   :  { %8468 = vmatmul.mubr.msk.f32.vlgmr.msra.gmra.mrb[40].mxu1 %vm120_vm1, %v10186_v55 }
0x1600   :  { %9167 = vmatpush3.bf16.msra.mxu1 %v9813_v23  ;;  %8485 = vmatprep.mubr.msk.f32.mxu1 %vm9503_vm0, %v9504_v4 }
0x1601   :  { %9168 = vmatprep.subr.bf16.mxu1 %v9502_v0 }
0x1604   :  { %9170 = vmatpush3.bf16.msra.mxu1 %v9823_v28 }
0x1605   :  { %9177 = vmatprep.subr.bf16.mxu1 %v9502_v0 }
0x16ca   :  { %v3231_v56 = vpop.f32.mrb[38].mxu1  ;;  %v3301_v8 = vpop.f32.mrb[40].mxu0 }
0x16cb   :  { %v3302_v59 = vadd.f32 %v9792_v51, %v3301_v8  ;;  %v8447_v60 = vpop.f32.mrb[39].mxu1  ;;  %v8458_v61 = vpop.f32.mrb[41].mxu0  ;;  %v7600_v51 = vld [vmem:[%s10793_s1 + $0x6] sm:$0x3]  ;;  %v3232_v6 = vadd.f32 %v10242_v39, %v3231_v56 }
0x16cd   :  { %v3306_v2 = vmin.f32 %v3302_v59, 20.0  ;;  %vm3305_vm12 = vcmp.gt.f32.partialorder %v3302_v59, 20.0 }
0x16cf   :  { %v3307_v11 = vmul.f32 1.442695, %v3306_v2 }
0x16d1   :  { %9438 = vpow2.f32 %v3307_v11 }
0x16d2   :  { %v3387_v12 = vpop.f32.mrb[40].mxu1 }
0x16d3   :  { %v8469_v14 = vpop.f32.mrb[41].mxu1 }
0x16db   :  { %v9439_v15 = vpop.eup %9438 }
0x16dc   :  { %v3309_v17 = vadd.f32 1.0, %v9439_v15  ;;  %v3312_v18 = vmul.f32 -0.5, %v9439_v15  ;;  %v3315_v25 = vand.u32 2147483647, %v9439_v15 }
0x16de   :  { %9440 = vlog2.f32 %v3309_v17  ;;  %v3313_v24 = vadd.f32 1.0, %v3312_v18  ;;  %vm3316_vm11 = vcmp.lt.f32.partialorder %v3315_v25, 0.0004427343 }
0x16e0   :  { %v3314_v62 = vmul.f32 %v9439_v15, %v3313_v24 }
0x16e8   :  { %v9441_v26 = vpop.eup %9440 }
0x16e9   :  { %v3311_v27 = vmul.f32 0.6931472, %v9441_v26 }
0x16eb   :  { %v3317_v1 = vsel %vm3316_vm11, %v3314_v62, %v3311_v27 }
0x16ec   :  { %v3318_v38 = vsel %vm3305_vm12, %v3302_v59, %v3317_v1 }
0x16ed   :  { %v3319_v30 = vmul.f32 %v7600_v51, %v3318_v38  ;;  %v10303_v38 = vld [vmem:[%s10820_s28 + $0x8] sm:$0x3] }
0x16ef   :  { %v3320_v41 = vadd.f32 %v3319_v30, %v3232_v6 }
0x16f1   :  { %8475 = vmatmul.mubr.msk.f32.vlgmr.msra.gmra.mrb[42].mxu0 %vm597_vm5, %v3320_v41 }
0x16f2   :  { %9173 = vmatpush3.bf16.msra.mxu0 %v9833_v32  ;;  %8496 = vmatprep.mubr.msk.f32.mxu0 %vm9503_vm0, %v9504_v4 }
0x16f3   :  { %9174 = vmatprep.subr.bf16.mxu0 %v9502_v0 }
0x16f6   :  { %9176 = vmatpush3.bf16.msra.mxu0 %v9891_v57 }
0x16f7   :  { %8506 = vmatprep.subr.mxu0 %v9504_v4 }
0x17c4   :  { %v3460_v42 = vpop.f32.mrb[42].mxu0 }
0x17c5   :  { %v3461_v45 = vadd.f32 %v3460_v42, %v3387_v12  ;;  %v8476_v46 = vpop.f32.mrb[43].mxu0 }
0x17c7   :  { %v3464_v9 = vadd.f32 %v9840_v33, %v3461_v45  ;;  %v10270_v33 = vld [vmem:[%s10818_s29] sm:$0xff] }
0x17c9   :  { %v3465_v31 = vmax.f32 %v3464_v9, 0.0 }
0x17cb   :  { %8486 = vmatmul.mubr.msk.f32.vlgmr.msra.gmra.mrb[42].mxu1 %vm120_vm1, %v3465_v31 }
0x17cc   :  { %9179 = vmatpush3.bf16.msra.mxu1 %v9849_v43  ;;  %8503 = vmatprep.mubr.msk.f32.mxu1 %vm9503_vm0, %v9504_v4 }
0x17cd   :  { %9180 = vmatprep.subr.bf16.mxu1 %v9502_v0 }
0x17cf   :  { %8504 = vmatmul.mubr.msk.f32.vlgmr.msra.gmra.mrb[44].mxu1 %vm597_vm5, %v3320_v41 }
0x17d0   :  { %9182 = vmatpush3.bf16.msra.mxu1 %v9861_v49  ;;  %8519 = vmatprep.mubr.msk.f32.mxu1 %vm9503_vm0, %v9504_v4 }
0x17d1   :  { %9183 = vmatprep.subr.bf16.mxu1 %v9502_v0 }
0x17d4   :  { %9185 = vmatpush3.bf16.msra.mxu1 %v9872_v54 }
0x17d5   :  { %8533 = vmatprep.subr.mxu1 %v9504_v4 }
0x17d7   :  { %8520 = vmatmul.mubr.msk.f32.vlgmr.msra.gmra.mrb[46].mxu1 %vm120_vm1, %v10186_v55 }
0x17d8   :  { %8534 = vmatpush3.msra.mxu1 %v10270_v33  ;;  %8535 = vmatprep.mubr.msk.f32.mxu1 %vm9503_vm0, %v9504_v4 }
0x17d9   :  { %9198 = vmatprep.subr.bf16.mxu1 %v9502_v0 }
0x17db   :  { %8536 = vmatmul.mubr.msk.f32.vlgmr.msra.gmra.mrb[48].mxu1 %vm194_vm2, %v10303_v38 }
0x17dc   :  { %9200 = vmatpush3.bf16.msra.mxu1 %v9700_v19  ;;  %8557 = vmatprep.mubr.msk.f32.mxu1 %vm9503_vm0, %v9504_v4 }
0x17dd   :  { %9201 = vmatprep.subr.bf16.mxu1 %v9502_v0 }
0x17e0   :  { %9203 = vmatpush3.bf16.msra.mxu1 %v9732_v34 }
0x17e1   :  { %9210 = vmatprep.subr.bf16.mxu1 %v9502_v0 }
0x189e   :  { %v3535_v37 = vpop.f32.mrb[42].mxu1 }
0x189f   :  { %v3536_v20 = vadd.f32 %v9898_v58, %v3535_v37  ;;  %v8487_v52 = vpop.f32.mrb[43].mxu1 }
0x18a1   :  { %v3539_v53 = vmax.f32 %v3536_v20, 0.0 }
0x18a2   :  { %v3683_v56 = vpop.f32.mrb[44].mxu1 }
0x18a3   :  { %8497 = vmatmul.mubr.msk.f32.vlgmr.msra.gmra.mrb[44].mxu0 %vm120_vm1, %v3539_v53  ;;  %v8505_v55 = vpop.f32.mrb[45].mxu1 }
0x18a4   :  { %8507 = vmatpush3.msra.mxu0 %v9904_v63  ;;  %8508 = vmatprep.mubr.msk.f32.mxu0 %vm9503_vm0, %v9504_v4 }
0x18a5   :  { %9186 = vmatprep.subr.bf16.mxu0 %v9502_v0 }
0x18a7   :  { %8509 = vmatmul.mubr.msk.f32.vlgmr.msra.gmra.mrb[46].mxu0 %vm194_vm2, %v10171_v35 }
0x18a8   :  { %9188 = vmatpush3.bf16.msra.mxu0 %v9635_v5  ;;  %8530 = vmatprep.mubr.msk.f32.mxu0 %vm9503_vm0, %v9504_v4 }
0x18a9   :  { %9189 = vmatprep.subr.bf16.mxu0 %v9502_v0 }
0x18aa   :  { %v3824_v58 = vpop.f32.mrb[46].mxu1 }
0x18ab   :  { %v3825_v8 = vadd.f32 %v9916_v3, %v3824_v58  ;;  %v8521_v59 = vpop.f32.mrb[47].mxu1 }
0x18ac   :  { %9191 = vmatpush3.bf16.msra.mxu0 %v9644_v7 }
0x18ad   :  { %3834 = vrot.lane.b32.xlu1 %v3825_v8, %s9505_s9  ;;  %9192 = vmatprep.subr.bf16.mxu0 %v9502_v0 }
0x191f   :  { %v3835_v27 = vpop.permute.xlu1 %3834 }
0x1976   :  { %v3609_v63 = vpop.f32.mrb[44].mxu0 }
0x1977   :  { %v3610_v35 = vadd.f32 %v9929_v10, %v3609_v63  ;;  %v8498_v60 = vpop.f32.mrb[45].mxu0 }
0x1979   :  { %v3613_v61 = vmul.f32 0.5, %v3610_v35  ;;  %v10360_v35 = vld [vmem:[%s10791_s10] ss:$0 sm:$0xff] }
0x197a   :  { %v3753_v2 = vpop.f32.mrb[46].mxu0 }
0x197b   :  { %9442 = vtanh.f32 %v3613_v61  ;;  %v3754_v11 = vadd.f32 %v3753_v2, %v3683_v56  ;;  %v8510_v12 = vpop.f32.mrb[47].mxu0 }
0x197d   :  { %v3757_v14 = vadd.f32 %v9935_v21, %v3754_v11 }
0x197f   :  { %v3828_v15 = vadd.f32 %v3825_v8, %v3757_v14 }
0x1981   :  { %v3829_v3 = vmul.f32 0.5, %v3828_v15 }
0x1983   :  { %9444 = vtanh.f32 %v3829_v3 }
0x1985   :  { %v9443_v17 = vpop.eup %9442 }
0x1986   :  { %v3615_v18 = vadd.f32 1.0, %v9443_v17 }
0x1988   :  { %v3616_v24 = vmul.f32 0.5, %v3615_v18 }
0x198a   :  { %7613 = vst.msk [vmem:[%s10803_s21 + $0x6] sm:$0x3] %vm1092_vm6, %v3616_v24 }
0x198d   :  { %v9445_v10 = vpop.eup %9444 }
0x198e   :  { %v3831_v25 = vadd.f32 1.0, %v9445_v10 }
0x1990   :  { %v3832_v26 = vmul.f32 0.5, %v3831_v25 }
0x1992   :  { %v3837_v62 = vmul.f32 %v3835_v27, %v3832_v26  ;;  %v3844_v6 = vsub.f32 1.0, %v3832_v26  ;;  %v3850_v41 = vmul.f32 %v3832_v26, %v10182_v40  ;;  %v4002_v40 = vpop.f32.mrb[48].mxu1 }
0x1993   :  { %v8537_v9 = vpop.f32.mrb[49].mxu1 }
0x1994   :  { %3839 = vrot.lane.b32.xlu0 %v3837_v62, %s9505_s9  ;;  %v7615_v62 = vld [vmem:[%s10793_s1 + $0x8] sm:$0x3]  ;;  %v10377_v9 = vld [vmem:[%s10796_s12] ss:$0 sm:$0xff] }
0x1a06   :  { %v3840_v51 = vpop.permute.xlu0 %3839 }
0x1a07   :  { %v3842_v21 = vadd.f32 %v3840_v51, %v3757_v14 }
0x1a09   :  { %9446 = vtanh.f32 %v3842_v21 }
0x1a13   :  { %v9447_v1 = vpop.eup %9446 }
0x1a14   :  { %3846 = vrot.lane.b32.xlu1 %v9447_v1, %s9506_s13 }
0x1a86   :  { %v3847_v30 = vpop.permute.xlu1 %3846 }
0x1a87   :  { %v3849_v42 = vmul.f32 %v3847_v30, %v3844_v6 }
0x1a89   :  { %v10314_v45 = vadd.f32 %v3850_v41, %v3849_v42 }
0x1a8b   :  { %3859 = vrot.lane.b32.xlu0 %v10314_v45, %s9506_s13 }
0x1afd   :  { %v10318_v46 = vpop.permute.xlu0 %3859 }
0x1afe   :  { %8531 = vmatmul.mubr.msk.f32.vlgmr.msra.gmra.mrb[48].mxu0 %vm120_vm1, %v10318_v46 }
0x1aff   :  { %9194 = vmatpush3.bf16.msra.mxu0 %v9680_v13  ;;  %8546 = vmatprep.mubr.msk.f32.mxu0 %vm9503_vm0, %v9504_v4 }
0x1b00   :  { %9195 = vmatprep.subr.bf16.mxu0 %v9502_v0 }
0x1b03   :  { %9197 = vmatpush3.bf16.msra.mxu0 %v9690_v16 }
0x1b04   :  { %9204 = vmatprep.subr.bf16.mxu0 %v9502_v0 }
0x1bd1   :  { %v3929_v31 = vpop.f32.mrb[48].mxu0 }
0x1bd2   :  { %v4003_v37 = vadd.f32 %v4002_v40, %v3929_v31  ;;  %v8532_v20 = vpop.f32.mrb[49].mxu0 }
0x1bd4   :  { %v4006_v52 = vadd.f32 %v10199_v22, %v4003_v37 }
0x1bd6   :  { %v4007_v53 = vmax.f32 %v4006_v52, 0.0  ;;  %v10401_v52 = vld [vmem:[%s10799_s14] ss:$0 sm:$0xff] }
0x1bd8   :  { %8547 = vmatmul.mubr.msk.f32.vlgmr.msra.gmra.mrb[50].mxu0 %vm120_vm1, %v4007_v53 }
0x1bd9   :  { %9206 = vmatpush3.bf16.msra.mxu0 %v9716_v29  ;;  %8568 = vmatprep.mubr.msk.f32.mxu0 %vm9503_vm0, %v9504_v4 }
0x1bda   :  { %9207 = vmatprep.subr.bf16.mxu0 %v9502_v0 }
0x1bdd   :  { %9209 = vmatpush3.bf16.msra.mxu0 %v9737_v36 }
0x1bde   :  { %9216 = vmatprep.subr.bf16.mxu0 %v9502_v0 }
0x1cab   :  { %v4077_v56 = vpop.f32.mrb[50].mxu0 }
0x1cac   :  { %v4078_v55 = vadd.f32 %v10212_v48, %v4077_v56  ;;  %v8548_v58 = vpop.f32.mrb[51].mxu0 }
0x1cae   :  { %v4081_v8 = vmax.f32 %v4078_v55, 0.0 }
0x1cb0   :  { %8558 = vmatmul.mubr.msk.f32.vlgmr.msra.gmra.mrb[50].mxu1 %vm120_vm1, %v4081_v8  ;;  %8569 = vmatmul.mubr.msk.f32.vlgmr.msra.gmra.mrb[52].mxu0 %vm120_vm1, %v4081_v8  ;;  %v10408_v8 = vld [vmem:[%s10797_s17] sm:$0xff] }
0x1cb1   :  { %9212 = vmatpush3.bf16.msra.mxu1 %v9761_v44  ;;  %8579 = vmatprep.mubr.msk.f32.mxu1 %vm9503_vm0, %v9504_v4 }
0x1cb2   :  { %9213 = vmatprep.subr.bf16.mxu1 %v9502_v0  ;;  %9218 = vmatpush3.bf16.msra.mxu0 %v9779_v50 }
0x1cb3   :  { %8586 = vmatprep.mubr.msk.f32.mxu0 %vm9503_vm0, %v9504_v4  ;;  %9225 = vmatprep.subr.bf16.mxu0 %v9502_v0 }
0x1cb5   :  { %9215 = vmatpush3.bf16.msra.mxu1 %v9771_v47 }
0x1cb6   :  { %9219 = vmatprep.subr.bf16.mxu1 %v9502_v0 }
0x1cb8   :  { %8580 = vmatmul.mubr.msk.f32.vlgmr.msra.gmra.mrb[52].mxu1 %vm120_vm1, %v10318_v46 }
0x1cb9   :  { %9221 = vmatpush3.bf16.msra.mxu1 %v9813_v23  ;;  %8597 = vmatprep.mubr.msk.f32.mxu1 %vm9503_vm0, %v9504_v4 }
0x1cba   :  { %9222 = vmatprep.subr.bf16.mxu1 %v9502_v0 }
0x1cbd   :  { %9224 = vmatpush3.bf16.msra.mxu1 %v9823_v28 }
0x1cbe   :  { %9231 = vmatprep.subr.bf16.mxu1 %v9502_v0 }
0x1d83   :  { %v4151_v59 = vpop.f32.mrb[50].mxu1  ;;  %v4221_v63 = vpop.f32.mrb[52].mxu0 }
0x1d84   :  { %v4222_v60 = vadd.f32 %v10360_v35, %v4221_v63  ;;  %v8559_v61 = vpop.f32.mrb[51].mxu1  ;;  %v8570_v2 = vpop.f32.mrb[53].mxu0  ;;  %v4152_v1 = vadd.f32 %v10242_v39, %v4151_v59  ;;  %v10423_v63 = vld [vmem:[%s10800_s20] ss:$0 sm:$0xff] }
0x1d85   :  { %v10432_v2 = vld [vmem:[%s10801_s16] ss:$0 sm:$0xff] }
0x1d86   :  { %v4226_v11 = vmin.f32 %v4222_v60, 20.0  ;;  %vm4225_vm14 = vcmp.gt.f32.partialorder %v4222_v60, 20.0 }
0x1d88   :  { %v4227_v12 = vmul.f32 1.442695, %v4226_v11 }
0x1d8a   :  { %9448 = vpow2.f32 %v4227_v12 }
0x1d8b   :  { %v4307_v14 = vpop.f32.mrb[52].mxu1 }
0x1d8c   :  { %v8581_v15 = vpop.f32.mrb[53].mxu1 }
0x1d94   :  { %v9449_v3 = vpop.eup %9448 }
0x1d95   :  { %v4229_v17 = vadd.f32 1.0, %v9449_v3  ;;  %v4232_v18 = vmul.f32 -0.5, %v9449_v3  ;;  %v4235_v10 = vand.u32 2147483647, %v9449_v3 }
0x1d97   :  { %9450 = vlog2.f32 %v4229_v17  ;;  %v4233_v24 = vadd.f32 1.0, %v4232_v18  ;;  %vm4236_vm13 = vcmp.lt.f32.partialorder %v4235_v10, 0.0004427343  ;;  %v10438_v18 = vld [vmem:[%s10802_s18] ss:$0 sm:$0xff] }
0x1d99   :  { %v4234_v27 = vmul.f32 %v9449_v3, %v4233_v24 }
0x1da1   :  { %v9451_v25 = vpop.eup %9450 }
0x1da2   :  { %v4231_v26 = vmul.f32 0.6931472, %v9451_v25 }
0x1da4   :  { %v4237_v51 = vsel %vm4236_vm13, %v4234_v27, %v4231_v26 }
0x1da5   :  { %v4238_v21 = vsel %vm4225_vm14, %v4222_v60, %v4237_v51 }
0x1da6   :  { %v4239_v6 = vmul.f32 %v7615_v62, %v4238_v21 }
0x1da8   :  { %v4240_v30 = vadd.f32 %v4239_v6, %v4152_v1 }
0x1daa   :  { %8587 = vmatmul.mubr.msk.f32.vlgmr.msra.gmra.mrb[54].mxu0 %vm597_vm5, %v4240_v30 }
0x1dab   :  { %9227 = vmatpush3.bf16.msra.mxu0 %v9833_v32  ;;  %8608 = vmatprep.mubr.msk.f32.mxu0 %vm9503_vm0, %v9504_v4 }
0x1dac   :  { %9228 = vmatprep.subr.bf16.mxu0 %v9502_v0 }
0x1daf   :  { %9230 = vmatpush3.bf16.msra.mxu0 %v9891_v57 }
0x1db0   :  { %8618 = vmatprep.subr.mxu0 %v9504_v4 }
0x1e7d   :  { %v4380_v41 = vpop.f32.mrb[54].mxu0 }
0x1e7e   :  { %v4381_v42 = vadd.f32 %v4380_v41, %v4307_v14  ;;  %v8588_v40 = vpop.f32.mrb[55].mxu0 }
0x1e80   :  { %v4384_v31 = vadd.f32 %v10377_v9, %v4381_v42 }
0x1e82   :  { %v4385_v37 = vmax.f32 %v4384_v31, 0.0  ;;  %v10450_v31 = vld [vmem:[%s10820_s28 + $0xa] sm:$0x3] }
0x1e84   :  { %8598 = vmatmul.mubr.msk.f32.vlgmr.msra.gmra.mrb[54].mxu1 %vm120_vm1, %v4385_v37 }
0x1e85   :  { %9233 = vmatpush3.bf16.msra.mxu1 %v9849_v43  ;;  %8615 = vmatprep.mubr.msk.f32.mxu1 %vm9503_vm0, %v9504_v4 }
0x1e86   :  { %9234 = vmatprep.subr.bf16.mxu1 %v9502_v0 }
0x1e88   :  { %8616 = vmatmul.mubr.msk.f32.vlgmr.msra.gmra.mrb[56].mxu1 %vm597_vm5, %v4240_v30 }
0x1e89   :  { %9236 = vmatpush3.bf16.msra.mxu1 %v9861_v49  ;;  %8631 = vmatprep.mubr.msk.f32.mxu1 %vm9503_vm0, %v9504_v4 }
0x1e8a   :  { %9237 = vmatprep.subr.bf16.mxu1 %v9502_v0 }
0x1e8d   :  { %9239 = vmatpush3.bf16.msra.mxu1 %v9872_v54 }
0x1e8e   :  { %8645 = vmatprep.subr.mxu1 %v9504_v4 }
0x1e90   :  { %8632 = vmatmul.mubr.msk.f32.vlgmr.msra.gmra.mrb[58].mxu1 %vm120_vm1, %v10318_v46 }
0x1e91   :  { %8646 = vmatpush3.msra.mxu1 %v10270_v33  ;;  %8647 = vmatprep.mubr.msk.f32.mxu1 %vm9503_vm0, %v9504_v4 }
0x1e92   :  { %9252 = vmatprep.subr.bf16.mxu1 %v9502_v0 }
0x1e94   :  { %8648 = vmatmul.mubr.msk.f32.vlgmr.msra.gmra.mrb[60].mxu1 %vm194_vm2, %v10450_v31 }
0x1e95   :  { %9254 = vmatpush3.bf16.msra.mxu1 %v9700_v19  ;;  %8669 = vmatprep.mubr.msk.f32.mxu1 %vm9503_vm0, %v9504_v4 }
0x1e96   :  { %9255 = vmatprep.subr.bf16.mxu1 %v9502_v0 }
0x1e99   :  { %9257 = vmatpush3.bf16.msra.mxu1 %v9732_v34 }
0x1e9a   :  { %9264 = vmatprep.subr.bf16.mxu1 %v9502_v0 }
0x1f57   :  { %v4455_v20 = vpop.f32.mrb[54].mxu1 }
0x1f58   :  { %v4456_v53 = vadd.f32 %v10401_v52, %v4455_v20  ;;  %v8599_v56 = vpop.f32.mrb[55].mxu1 }
0x1f5a   :  { %v4459_v55 = vmax.f32 %v4456_v53, 0.0 }
0x1f5b   :  { %v4603_v58 = vpop.f32.mrb[56].mxu1 }
0x1f5c   :  { %8609 = vmatmul.mubr.msk.f32.vlgmr.msra.gmra.mrb[56].mxu0 %vm120_vm1, %v4459_v55  ;;  %v8617_v46 = vpop.f32.mrb[57].mxu1 }
0x1f5d   :  { %8619 = vmatpush3.msra.mxu0 %v10408_v8  ;;  %8620 = vmatprep.mubr.msk.f32.mxu0 %vm9503_vm0, %v9504_v4 }
0x1f5e   :  { %9240 = vmatprep.subr.bf16.mxu0 %v9502_v0 }
0x1f60   :  { %8621 = vmatmul.mubr.msk.f32.vlgmr.msra.gmra.mrb[58].mxu0 %vm194_vm2, %v10303_v38 }
0x1f61   :  { %9242 = vmatpush3.bf16.msra.mxu0 %v9635_v5  ;;  %8642 = vmatprep.mubr.msk.f32.mxu0 %vm9503_vm0, %v9504_v4 }
0x1f62   :  { %9243 = vmatprep.subr.bf16.mxu0 %v9502_v0 }
0x1f63   :  { %v4744_v59 = vpop.f32.mrb[58].mxu1 }
0x1f64   :  { %v4745_v60 = vadd.f32 %v10423_v63, %v4744_v59  ;;  %v8633_v61 = vpop.f32.mrb[59].mxu1 }
0x1f65   :  { %9245 = vmatpush3.bf16.msra.mxu0 %v9644_v7 }
0x1f66   :  { %4754 = vrot.lane.b32.xlu1 %v4745_v60, %s9505_s9  ;;  %9246 = vmatprep.subr.bf16.mxu0 %v9502_v0 }
0x1fd8   :  { %v4755_v6 = vpop.permute.xlu1 %4754 }
0x202f   :  { %v4529_v38 = vpop.f32.mrb[56].mxu0 }
0x2030   :  { %v4530_v11 = vadd.f32 %v10432_v2, %v4529_v38  ;;  %v8610_v12 = vpop.f32.mrb[57].mxu0 }
0x2032   :  { %v4533_v14 = vmul.f32 0.5, %v4530_v11 }
0x2033   :  { %v4673_v15 = vpop.f32.mrb[58].mxu0 }
0x2034   :  { %9452 = vtanh.f32 %v4533_v14  ;;  %v4674_v3 = vadd.f32 %v4673_v15, %v4603_v58  ;;  %v8622_v17 = vpop.f32.mrb[59].mxu0 }
0x2036   :  { %v4677_v24 = vadd.f32 %v10438_v18, %v4674_v3 }
0x2038   :  { %v4748_v10 = vadd.f32 %v4745_v60, %v4677_v24 }
0x203a   :  { %v4749_v25 = vmul.f32 0.5, %v4748_v10 }
0x203c   :  { %9454 = vtanh.f32 %v4749_v25 }
0x203e   :  { %v9453_v26 = vpop.eup %9452 }
0x203f   :  { %v4535_v27 = vadd.f32 1.0, %v9453_v26 }
0x2041   :  { %v4536_v62 = vmul.f32 0.5, %v4535_v27 }
0x2043   :  { %7628 = vst.msk [vmem:[%s10803_s21 + $0x8] sm:$0x3] %vm1092_vm6, %v4536_v62 }
0x2046   :  { %v9455_v51 = vpop.eup %9454 }
0x2047   :  { %v4751_v21 = vadd.f32 1.0, %v9455_v51 }
0x2049   :  { %v4752_v1 = vmul.f32 0.5, %v4751_v21 }
0x204b   :  { %v4757_v30 = vmul.f32 %v4755_v6, %v4752_v1  ;;  %v4764_v37 = vsub.f32 1.0, %v4752_v1  ;;  %v4770_v53 = vmul.f32 %v4752_v1, %v10314_v45  ;;  %v4922_v45 = vpop.f32.mrb[60].mxu1 }
0x204c   :  { %v8649_v46 = vpop.f32.mrb[61].mxu1 }
0x204d   :  { %4759 = vrot.lane.b32.xlu0 %v4757_v30, %s9505_s9 }
0x20bf   :  { %v4760_v41 = vpop.permute.xlu0 %4759 }
0x20c0   :  { %v4762_v42 = vadd.f32 %v4760_v41, %v4677_v24 }
0x20c2   :  { %9456 = vtanh.f32 %v4762_v42 }
0x20cc   :  { %v9457_v40 = vpop.eup %9456 }
0x20cd   :  { %4766 = vrot.lane.b32.xlu1 %v9457_v40, %s9506_s13 }
0x213f   :  { %v4767_v20 = vpop.permute.xlu1 %4766 }
0x2140   :  { %v4769_v56 = vmul.f32 %v4767_v20, %v4764_v37 }
0x2142   :  { %v10461_v55 = vadd.f32 %v4770_v53, %v4769_v56  ;;  %v7630_v53 = vld [vmem:[%s10793_s1 + $0xa] sm:$0x3] }
0x2144   :  { %4779 = vrot.lane.b32.xlu0 %v10461_v55, %s9506_s13 }
0x21b6   :  { %v10465_v58 = vpop.permute.xlu0 %4779 }
0x21b7   :  { %8643 = vmatmul.mubr.msk.f32.vlgmr.msra.gmra.mrb[60].mxu0 %vm120_vm1, %v10465_v58 }
0x21b8   :  { %9248 = vmatpush3.bf16.msra.mxu0 %v9680_v13  ;;  %8658 = vmatprep.mubr.msk.f32.mxu0 %vm9503_vm0, %v9504_v4 }
0x21b9   :  { %9249 = vmatprep.subr.bf16.mxu0 %v9502_v0 }
0x21bc   :  { %9251 = vmatpush3.bf16.msra.mxu0 %v9690_v16 }
0x21bd   :  { %9258 = vmatprep.subr.bf16.mxu0 %v9502_v0 }
0x228a   :  { %v4849_v59 = vpop.f32.mrb[60].mxu0 }
0x228b   :  { %v4923_v60 = vadd.f32 %v4922_v45, %v4849_v59  ;;  %v8644_v61 = vpop.f32.mrb[61].mxu0 }
0x228d   :  { %v4926_v38 = vadd.f32 %v10199_v22, %v4923_v60 }
0x228f   :  { %v4927_v11 = vmax.f32 %v4926_v38, 0.0 }
0x2291   :  { %8659 = vmatmul.mubr.msk.f32.vlgmr.msra.gmra.mrb[62].mxu0 %vm120_vm1, %v4927_v11 }
0x2292   :  { %9260 = vmatpush3.bf16.msra.mxu0 %v9716_v29  ;;  %8680 = vmatprep.mubr.msk.f32.mxu0 %vm9503_vm0, %v9504_v4 }
0x2293   :  { %9261 = vmatprep.subr.bf16.mxu0 %v9502_v0 }
0x2296   :  { %9263 = vmatpush3.bf16.msra.mxu0 %v9737_v36 }
0x2297   :  { %9270 = vmatprep.subr.bf16.mxu0 %v9502_v0 }
0x2364   :  { %v4997_v12 = vpop.f32.mrb[62].mxu0 }
0x2365   :  { %v4998_v14 = vadd.f32 %v10212_v48, %v4997_v12  ;;  %v8660_v15 = vpop.f32.mrb[63].mxu0 }
0x2367   :  { %v5001_v3 = vmax.f32 %v4998_v14, 0.0 }
0x2369   :  { %8670 = vmatmul.mubr.msk.f32.vlgmr.msra.gmra.mrb[62].mxu1 %vm120_vm1, %v5001_v3  ;;  %8681 = vmatmul.mubr.msk.f32.vlgmr.msra.gmra.mrb[64].mxu0 %vm120_vm1, %v5001_v3 }
0x236a   :  { %9266 = vmatpush3.bf16.msra.mxu1 %v9761_v44  ;;  %8691 = vmatprep.mubr.msk.f32.mxu1 %vm9503_vm0, %v9504_v4 }
0x236b   :  { %9267 = vmatprep.subr.bf16.mxu1 %v9502_v0  ;;  %9272 = vmatpush3.bf16.msra.mxu0 %v9779_v50 }
0x236c   :  { %8698 = vmatprep.mubr.msk.f32.mxu0 %vm9503_vm0, %v9504_v4  ;;  %9279 = vmatprep.subr.bf16.mxu0 %v9502_v0 }
0x236e   :  { %9269 = vmatpush3.bf16.msra.mxu1 %v9771_v47 }
0x236f   :  { %9273 = vmatprep.subr.bf16.mxu1 %v9502_v0 }
0x2371   :  { %8692 = vmatmul.mubr.msk.f32.vlgmr.msra.gmra.mrb[64].mxu1 %vm120_vm1, %v10465_v58 }
0x2372   :  { %9275 = vmatpush3.bf16.msra.mxu1 %v9813_v23  ;;  %8709 = vmatprep.mubr.msk.f32.mxu1 %vm9503_vm0, %v9504_v4 }
0x2373   :  { %9276 = vmatprep.subr.bf16.mxu1 %v9502_v0 }
0x2376   :  { %9278 = vmatpush3.bf16.msra.mxu1 %v9823_v28 }
0x2377   :  { %9285 = vmatprep.subr.bf16.mxu1 %v9502_v0 }
0x243c   :  { %v5071_v17 = vpop.f32.mrb[62].mxu1  ;;  %v5141_v24 = vpop.f32.mrb[64].mxu0 }
0x243d   :  { %v5142_v10 = vadd.f32 %v10360_v35, %v5141_v24  ;;  %v8671_v25 = vpop.f32.mrb[63].mxu1  ;;  %v8682_v26 = vpop.f32.mrb[65].mxu0  ;;  %v5072_v46 = vadd.f32 %v10242_v39, %v5071_v17 }
0x243f   :  { %v5146_v27 = vmin.f32 %v5142_v10, 20.0  ;;  %vm5145_vm3 = vcmp.gt.f32.partialorder %v5142_v10, 20.0 }
0x2441   :  { %v5147_v62 = vmul.f32 1.442695, %v5146_v27 }
0x2443   :  { %9458 = vpow2.f32 %v5147_v62 }
0x2444   :  { %v5227_v51 = vpop.f32.mrb[64].mxu1 }
0x2445   :  { %v8693_v21 = vpop.f32.mrb[65].mxu1 }
0x244d   :  { %v9459_v1 = vpop.eup %9458 }
0x244e   :  { %v5149_v6 = vadd.f32 1.0, %v9459_v1  ;;  %v5152_v30 = vmul.f32 -0.5, %v9459_v1  ;;  %v5155_v42 = vand.u32 2147483647, %v9459_v1 }
0x2450   :  { %9460 = vlog2.f32 %v5149_v6  ;;  %v5153_v41 = vadd.f32 1.0, %v5152_v30  ;;  %vm5156_vm15 = vcmp.lt.f32.partialorder %v5155_v42, 0.0004427343 }
0x2452   :  { %v5154_v20 = vmul.f32 %v9459_v1, %v5153_v41 }
0x245a   :  { %v9461_v40 = vpop.eup %9460 }
0x245b   :  { %v5151_v37 = vmul.f32 0.6931472, %v9461_v40 }
0x245d   :  { %v5157_v56 = vsel %vm5156_vm15, %v5154_v20, %v5151_v37 }
0x245e   :  { %v5158_v45 = vsel %vm5145_vm3, %v5142_v10, %v5157_v56 }
0x245f   :  { %v5159_v59 = vmul.f32 %v7630_v53, %v5158_v45 }
0x2461   :  { %v5160_v60 = vadd.f32 %v5159_v59, %v5072_v46 }
0x2463   :  { %8699 = vmatmul.mubr.msk.f32.vlgmr.msra.gmra.mrb[66].mxu0 %vm597_vm5, %v5160_v60 }
0x2464   :  { %9281 = vmatpush3.bf16.msra.mxu0 %v9833_v32  ;;  %8720 = vmatprep.mubr.msk.f32.mxu0 %vm9503_vm0, %v9504_v4 }
0x2465   :  { %9282 = vmatprep.subr.bf16.mxu0 %v9502_v0 }
0x2468   :  { %9284 = vmatpush3.bf16.msra.mxu0 %v9891_v57 }
0x2469   :  { %8730 = vmatprep.subr.mxu0 %v9504_v4 }
0x2536   :  { %v5300_v61 = vpop.f32.mrb[66].mxu0 }
0x2537   :  { %v5301_v38 = vadd.f32 %v5300_v61, %v5227_v51  ;;  %v8700_v11 = vpop.f32.mrb[67].mxu0 }
0x2539   :  { %v5304_v12 = vadd.f32 %v10377_v9, %v5301_v38 }
0x253b   :  { %v5305_v14 = vmax.f32 %v5304_v12, 0.0  ;;  %v10562_v12 = vld [vmem:[%s10820_s28 + $0xc] sm:$0x3] }
0x253d   :  { %8710 = vmatmul.mubr.msk.f32.vlgmr.msra.gmra.mrb[66].mxu1 %vm120_vm1, %v5305_v14 }
0x253e   :  { %9287 = vmatpush3.bf16.msra.mxu1 %v9849_v43  ;;  %8727 = vmatprep.mubr.msk.f32.mxu1 %vm9503_vm0, %v9504_v4 }
0x253f   :  { %9288 = vmatprep.subr.bf16.mxu1 %v9502_v0 }
0x2541   :  { %8728 = vmatmul.mubr.msk.f32.vlgmr.msra.gmra.mrb[68].mxu1 %vm597_vm5, %v5160_v60 }
0x2542   :  { %9290 = vmatpush3.bf16.msra.mxu1 %v9861_v49  ;;  %8743 = vmatprep.mubr.msk.f32.mxu1 %vm9503_vm0, %v9504_v4 }
0x2543   :  { %9291 = vmatprep.subr.bf16.mxu1 %v9502_v0 }
0x2546   :  { %9293 = vmatpush3.bf16.msra.mxu1 %v9872_v54 }
0x2547   :  { %8757 = vmatprep.subr.mxu1 %v9504_v4 }
0x2549   :  { %8744 = vmatmul.mubr.msk.f32.vlgmr.msra.gmra.mrb[70].mxu1 %vm120_vm1, %v10465_v58 }
0x254a   :  { %8758 = vmatpush3.msra.mxu1 %v10270_v33  ;;  %8759 = vmatprep.mubr.msk.f32.mxu1 %vm9503_vm0, %v9504_v4 }
0x254b   :  { %9306 = vmatprep.subr.bf16.mxu1 %v9502_v0 }
0x254d   :  { %8760 = vmatmul.mubr.msk.f32.vlgmr.msra.gmra.mrb[72].mxu1 %vm194_vm2, %v10562_v12 }
0x254e   :  { %9308 = vmatpush3.bf16.msra.mxu1 %v9700_v19  ;;  %8781 = vmatprep.mubr.msk.f32.mxu1 %vm9503_vm0, %v9504_v4 }
0x254f   :  { %9309 = vmatprep.subr.bf16.mxu1 %v9502_v0 }
0x2552   :  { %9311 = vmatpush3.bf16.msra.mxu1 %v9732_v34 }
0x2553   :  { %9318 = vmatprep.subr.bf16.mxu1 %v9502_v0 }
0x2610   :  { %v5375_v15 = vpop.f32.mrb[66].mxu1 }
0x2611   :  { %v5376_v3 = vadd.f32 %v10401_v52, %v5375_v15  ;;  %v8711_v17 = vpop.f32.mrb[67].mxu1 }
0x2613   :  { %v5379_v24 = vmax.f32 %v5376_v3, 0.0 }
0x2614   :  { %v5523_v10 = vpop.f32.mrb[68].mxu1 }
0x2615   :  { %8721 = vmatmul.mubr.msk.f32.vlgmr.msra.gmra.mrb[68].mxu0 %vm120_vm1, %v5379_v24  ;;  %v8729_v25 = vpop.f32.mrb[69].mxu1 }
0x2616   :  { %8731 = vmatpush3.msra.mxu0 %v10408_v8  ;;  %8732 = vmatprep.mubr.msk.f32.mxu0 %vm9503_vm0, %v9504_v4 }
0x2617   :  { %9294 = vmatprep.subr.bf16.mxu0 %v9502_v0 }
0x2619   :  { %8733 = vmatmul.mubr.msk.f32.vlgmr.msra.gmra.mrb[70].mxu0 %vm194_vm2, %v10450_v31 }
0x261a   :  { %9296 = vmatpush3.bf16.msra.mxu0 %v9635_v5  ;;  %8754 = vmatprep.mubr.msk.f32.mxu0 %vm9503_vm0, %v9504_v4 }
0x261b   :  { %9297 = vmatprep.subr.bf16.mxu0 %v9502_v0 }
0x261c   :  { %v5664_v58 = vpop.f32.mrb[70].mxu1 }
0x261d   :  { %v5665_v26 = vadd.f32 %v10423_v63, %v5664_v58  ;;  %v8745_v27 = vpop.f32.mrb[71].mxu1 }
0x261e   :  { %9299 = vmatpush3.bf16.msra.mxu0 %v9644_v7 }
0x261f   :  { %5674 = vrot.lane.b32.xlu1 %v5665_v26, %s9505_s9  ;;  %9300 = vmatprep.subr.bf16.mxu0 %v9502_v0 }
0x2691   :  { %v5675_v59 = vpop.permute.xlu1 %5674 }
0x26e8   :  { %v5449_v62 = vpop.f32.mrb[68].mxu0 }
0x26e9   :  { %v5450_v31 = vadd.f32 %v10432_v2, %v5449_v62  ;;  %v8722_v51 = vpop.f32.mrb[69].mxu0 }
0x26eb   :  { %v5453_v21 = vmul.f32 0.5, %v5450_v31 }
0x26ec   :  { %v5593_v1 = vpop.f32.mrb[70].mxu0 }
0x26ed   :  { %9462 = vtanh.f32 %v5453_v21  ;;  %v5594_v6 = vadd.f32 %v5593_v1, %v5523_v10  ;;  %v8734_v30 = vpop.f32.mrb[71].mxu0 }
0x26ef   :  { %v5597_v41 = vadd.f32 %v10438_v18, %v5594_v6 }
0x26f1   :  { %v5668_v42 = vadd.f32 %v5665_v26, %v5597_v41 }
0x26f3   :  { %v5669_v40 = vmul.f32 0.5, %v5668_v42 }
0x26f5   :  { %9464 = vtanh.f32 %v5669_v40 }
0x26f7   :  { %v9463_v37 = vpop.eup %9462 }
0x26f8   :  { %v5455_v20 = vadd.f32 1.0, %v9463_v37 }
0x26fa   :  { %v5456_v53 = vmul.f32 0.5, %v5455_v20 }
0x26fc   :  { %7643 = vst.msk [vmem:[%s10803_s21 + $0xa] sm:$0x3] %vm1092_vm6, %v5456_v53 }
0x26ff   :  { %v9465_v56 = vpop.eup %9464 }
0x2700   :  { %v5671_v45 = vadd.f32 1.0, %v9465_v56 }
0x2702   :  { %v5672_v46 = vmul.f32 0.5, %v5671_v45 }
0x2704   :  { %v5677_v60 = vmul.f32 %v5675_v59, %v5672_v46  ;;  %v5684_v14 = vsub.f32 1.0, %v5672_v46  ;;  %v5690_v3 = vmul.f32 %v5672_v46, %v10461_v55  ;;  %v5842_v55 = vpop.f32.mrb[72].mxu1 }
0x2705   :  { %v8761_v25 = vpop.f32.mrb[73].mxu1 }
0x2706   :  { %5679 = vrot.lane.b32.xlu0 %v5677_v60, %s9505_s9 }
0x2778   :  { %v5680_v61 = vpop.permute.xlu0 %5679 }
0x2779   :  { %v5682_v38 = vadd.f32 %v5680_v61, %v5597_v41 }
0x277b   :  { %9466 = vtanh.f32 %v5682_v38 }
0x2785   :  { %v9467_v11 = vpop.eup %9466 }
0x2786   :  { %5686 = vrot.lane.b32.xlu1 %v9467_v11, %s9506_s13 }
0x27f8   :  { %v5687_v15 = vpop.permute.xlu1 %5686 }
0x27f9   :  { %v5689_v17 = vmul.f32 %v5687_v15, %v5684_v14  ;;  %v7645_v14 = vld [vmem:[%s10793_s1 + $0xc] sm:$0x3] }
0x27fb   :  { %v10573_v24 = vadd.f32 %v5690_v3, %v5689_v17 }
0x27fd   :  { %5699 = vrot.lane.b32.xlu0 %v10573_v24, %s9506_s13 }
0x286f   :  { %v10577_v10 = vpop.permute.xlu0 %5699 }
0x2870   :  { %8755 = vmatmul.mubr.msk.f32.vlgmr.msra.gmra.mrb[72].mxu0 %vm120_vm1, %v10577_v10 }
0x2871   :  { %9302 = vmatpush3.bf16.msra.mxu0 %v9680_v13  ;;  %8770 = vmatprep.mubr.msk.f32.mxu0 %vm9503_vm0, %v9504_v4 }
0x2872   :  { %9303 = vmatprep.subr.bf16.mxu0 %v9502_v0 }
0x2875   :  { %9305 = vmatpush3.bf16.msra.mxu0 %v9690_v16 }
0x2876   :  { %9312 = vmatprep.subr.bf16.mxu0 %v9502_v0 }
0x2943   :  { %v5769_v58 = vpop.f32.mrb[72].mxu0 }
0x2944   :  { %v5843_v26 = vadd.f32 %v5842_v55, %v5769_v58  ;;  %v8756_v27 = vpop.f32.mrb[73].mxu0 }
0x2946   :  { %v5846_v62 = vadd.f32 %v10199_v22, %v5843_v26 }
0x2948   :  { %v5847_v31 = vmax.f32 %v5846_v62, 0.0 }
0x294a   :  { %8771 = vmatmul.mubr.msk.f32.vlgmr.msra.gmra.mrb[74].mxu0 %vm120_vm1, %v5847_v31 }
0x294b   :  { %9314 = vmatpush3.bf16.msra.mxu0 %v9716_v29  ;;  %8792 = vmatprep.mubr.msk.f32.mxu0 %vm9503_vm0, %v9504_v4 }
0x294c   :  { %9315 = vmatprep.subr.bf16.mxu0 %v9502_v0 }
0x294f   :  { %9317 = vmatpush3.bf16.msra.mxu0 %v9737_v36 }
0x2950   :  { %9324 = vmatprep.subr.bf16.mxu0 %v9502_v0 }
0x2a1d   :  { %v5917_v51 = vpop.f32.mrb[74].mxu0 }
0x2a1e   :  { %v5918_v21 = vadd.f32 %v10212_v48, %v5917_v51  ;;  %v8772_v1 = vpop.f32.mrb[75].mxu0 }
0x2a20   :  { %v5921_v6 = vmax.f32 %v5918_v21, 0.0 }
0x2a22   :  { %8782 = vmatmul.mubr.msk.f32.vlgmr.msra.gmra.mrb[74].mxu1 %vm120_vm1, %v5921_v6  ;;  %8793 = vmatmul.mubr.msk.f32.vlgmr.msra.gmra.mrb[76].mxu0 %vm120_vm1, %v5921_v6 }
0x2a23   :  { %9320 = vmatpush3.bf16.msra.mxu1 %v9761_v44  ;;  %8803 = vmatprep.mubr.msk.f32.mxu1 %vm9503_vm0, %v9504_v4 }
0x2a24   :  { %9321 = vmatprep.subr.bf16.mxu1 %v9502_v0  ;;  %9326 = vmatpush3.bf16.msra.mxu0 %v9779_v50 }
0x2a25   :  { %8810 = vmatprep.mubr.msk.f32.mxu0 %vm9503_vm0, %v9504_v4  ;;  %9333 = vmatprep.subr.bf16.mxu0 %v9502_v0 }
0x2a27   :  { %9323 = vmatpush3.bf16.msra.mxu1 %v9771_v47 }
0x2a28   :  { %9327 = vmatprep.subr.bf16.mxu1 %v9502_v0 }
0x2a2a   :  { %8804 = vmatmul.mubr.msk.f32.vlgmr.msra.gmra.mrb[76].mxu1 %vm120_vm1, %v10577_v10 }
0x2a2b   :  { %9329 = vmatpush3.bf16.msra.mxu1 %v9813_v23  ;;  %8821 = vmatprep.mubr.msk.f32.mxu1 %vm9503_vm0, %v9504_v4 }
0x2a2c   :  { %9330 = vmatprep.subr.bf16.mxu1 %v9502_v0 }
0x2a2f   :  { %9332 = vmatpush3.bf16.msra.mxu1 %v9823_v28 }
0x2a30   :  { %9339 = vmatprep.subr.bf16.mxu1 %v9502_v0 }
0x2af5   :  { %v5991_v22 = vpop.f32.mrb[74].mxu1  ;;  %v6061_v48 = vpop.f32.mrb[76].mxu0 }
0x2af6   :  { %v6062_v30 = vadd.f32 %v10360_v35, %v6061_v48  ;;  %v8783_v41 = vpop.f32.mrb[75].mxu1  ;;  %v8794_v42 = vpop.f32.mrb[77].mxu0  ;;  %v5992_v17 = vadd.f32 %v10242_v39, %v5991_v22 }
0x2af8   :  { %v6066_v40 = vmin.f32 %v6062_v30, 20.0  ;;  %vm6065_vm7 = vcmp.gt.f32.partialorder %v6062_v30, 20.0 }
0x2afa   :  { %v6067_v37 = vmul.f32 1.442695, %v6066_v40 }
0x2afc   :  { %9468 = vpow2.f32 %v6067_v37 }
0x2afd   :  { %v6147_v20 = vpop.f32.mrb[76].mxu1 }
0x2afe   :  { %v8805_v53 = vpop.f32.mrb[77].mxu1 }
0x2b06   :  { %v9469_v56 = vpop.eup %9468 }
0x2b07   :  { %v6069_v45 = vadd.f32 1.0, %v9469_v56  ;;  %v6072_v46 = vmul.f32 -0.5, %v9469_v56  ;;  %v6075_v60 = vand.u32 2147483647, %v9469_v56 }
0x2b09   :  { %9470 = vlog2.f32 %v6069_v45  ;;  %v6073_v59 = vadd.f32 1.0, %v6072_v46  ;;  %vm6076_vm4 = vcmp.lt.f32.partialorder %v6075_v60, 0.0004427343 }
0x2b0b   :  { %v6074_v11 = vmul.f32 %v9469_v56, %v6073_v59 }
0x2b13   :  { %v9471_v61 = vpop.eup %9470 }
0x2b14   :  { %v6071_v38 = vmul.f32 0.6931472, %v9471_v61 }
0x2b16   :  { %v6077_v15 = vsel %vm6076_vm4, %v6074_v11, %v6071_v38 }
0x2b17   :  { %v6078_v3 = vsel %vm6065_vm7, %v6062_v30, %v6077_v15 }
0x2b18   :  { %v6079_v55 = vmul.f32 %v7645_v14, %v6078_v3 }
0x2b1a   :  { %v6080_v25 = vadd.f32 %v6079_v55, %v5992_v17  ;;  %v10674_v17 = vld [vmem:[%s10820_s28 + $0xe] sm:$0x3] }
0x2b1c   :  { %8811 = vmatmul.mubr.msk.f32.vlgmr.msra.gmra.mrb[78].mxu0 %vm597_vm5, %v6080_v25 }
0x2b1d   :  { %9335 = vmatpush3.bf16.msra.mxu0 %v9833_v32  ;;  %8832 = vmatprep.mubr.msk.f32.mxu0 %vm9503_vm0, %v9504_v4 }
0x2b1e   :  { %9336 = vmatprep.subr.bf16.mxu0 %v9502_v0 }
0x2b21   :  { %9338 = vmatpush3.bf16.msra.mxu0 %v9891_v57 }
0x2b22   :  { %8842 = vmatprep.subr.mxu0 %v9504_v4 }
0x2bef   :  { %v6220_v58 = vpop.f32.mrb[78].mxu0 }
0x2bf0   :  { %v6221_v26 = vadd.f32 %v6220_v58, %v6147_v20  ;;  %v8812_v27 = vpop.f32.mrb[79].mxu0 }
0x2bf2   :  { %v6224_v39 = vadd.f32 %v10377_v9, %v6221_v26 }
0x2bf4   :  { %v6225_v62 = vmax.f32 %v6224_v39, 0.0 }
0x2bf6   :  { %8822 = vmatmul.mubr.msk.f32.vlgmr.msra.gmra.mrb[78].mxu1 %vm120_vm1, %v6225_v62 }
0x2bf7   :  { %9341 = vmatpush3.bf16.msra.mxu1 %v9849_v43  ;;  %8839 = vmatprep.mubr.msk.f32.mxu1 %vm9503_vm0, %v9504_v4 }
0x2bf8   :  { %9342 = vmatprep.subr.bf16.mxu1 %v9502_v0 }
0x2bfa   :  { %8840 = vmatmul.mubr.msk.f32.vlgmr.msra.gmra.mrb[80].mxu1 %vm597_vm5, %v6080_v25 }
0x2bfb   :  { %9344 = vmatpush3.bf16.msra.mxu1 %v9861_v49  ;;  %8855 = vmatprep.mubr.msk.f32.mxu1 %vm9503_vm0, %v9504_v4 }
0x2bfc   :  { %9345 = vmatprep.subr.bf16.mxu1 %v9502_v0 }
0x2bff   :  { %9347 = vmatpush3.bf16.msra.mxu1 %v9872_v54 }
0x2c00   :  { %8869 = vmatprep.subr.mxu1 %v9504_v4 }
0x2c02   :  { %8856 = vmatmul.mubr.msk.f32.vlgmr.msra.gmra.mrb[82].mxu1 %vm120_vm1, %v10577_v10 }
0x2c03   :  { %8870 = vmatpush3.msra.mxu1 %v10270_v33  ;;  %8871 = vmatprep.mubr.msk.f32.mxu1 %vm9503_vm0, %v9504_v4 }
0x2c04   :  { %9360 = vmatprep.subr.bf16.mxu1 %v9502_v0 }
0x2c06   :  { %8872 = vmatmul.mubr.msk.f32.vlgmr.msra.gmra.mrb[84].mxu1 %vm194_vm2, %v10674_v17 }
0x2c07   :  { %9362 = vmatpush3.bf16.msra.mxu1 %v9700_v19  ;;  %8893 = vmatprep.mubr.msk.f32.mxu1 %vm9503_vm0, %v9504_v4 }
0x2c08   :  { %9363 = vmatprep.subr.bf16.mxu1 %v9502_v0 }
0x2c0b   :  { %9365 = vmatpush3.bf16.msra.mxu1 %v9732_v34 }
0x2c0c   :  { %9372 = vmatprep.subr.bf16.mxu1 %v9502_v0 }
0x2cc9   :  { %v6295_v31 = vpop.f32.mrb[78].mxu1 }
0x2cca   :  { %v6296_v51 = vadd.f32 %v10401_v52, %v6295_v31  ;;  %v8823_v21 = vpop.f32.mrb[79].mxu1 }
0x2ccc   :  { %v6299_v1 = vmax.f32 %v6296_v51, 0.0  ;;  %v9499_v51 = vld [vmem:[%s10823_s23] ss:$0 sm:$0xff] }
0x2ccd   :  { %v6443_v6 = vpop.f32.mrb[80].mxu1 }
0x2cce   :  { %8833 = vmatmul.mubr.msk.f32.vlgmr.msra.gmra.mrb[80].mxu0 %vm120_vm1, %v6299_v1  ;;  %v8841_v22 = vpop.f32.mrb[81].mxu1  ;;  %v9500_v1 = vld [vmem:[%s10789_s6] ss:$0 sm:$0xff] }
0x2ccf   :  { %8843 = vmatpush3.msra.mxu0 %v10408_v8  ;;  %8844 = vmatprep.mubr.msk.f32.mxu0 %vm9503_vm0, %v9504_v4 }
0x2cd0   :  { %9348 = vmatprep.subr.bf16.mxu0 %v9502_v0 }
0x2cd2   :  { %8845 = vmatmul.mubr.msk.f32.vlgmr.msra.gmra.mrb[82].mxu0 %vm194_vm2, %v10562_v12 }
0x2cd3   :  { %9350 = vmatpush3.bf16.msra.mxu0 %v9635_v5  ;;  %8866 = vmatprep.mubr.msk.f32.mxu0 %vm9503_vm0, %v9504_v4 }
0x2cd4   :  { %9351 = vmatprep.subr.bf16.mxu0 %v9502_v0 }
0x2cd5   :  { %v6584_v33 = vpop.f32.mrb[82].mxu1 }
0x2cd6   :  { %v6585_v10 = vadd.f32 %v10423_v63, %v6584_v33  ;;  %v8857_v48 = vpop.f32.mrb[83].mxu1 }
0x2cd7   :  { %9353 = vmatpush3.bf16.msra.mxu0 %v9644_v7 }
0x2cd8   :  { %6594 = vrot.lane.b32.xlu1 %v6585_v10, %s9505_s9  ;;  %9354 = vmatprep.subr.bf16.mxu0 %v9502_v0 }
0x2cd9   :  { %v6762_v34 = vpop.f32.mrb[84].mxu1 }
0x2d4a   :  { %v6595_v38 = vpop.permute.xlu1 %6594 }
0x2da1   :  { %v6369_v30 = vpop.f32.mrb[80].mxu0 }
0x2da2   :  { %v6370_v12 = vadd.f32 %v10432_v2, %v6369_v30  ;;  %v8834_v41 = vpop.f32.mrb[81].mxu0 }
0x2da4   :  { %v6373_v5 = vmul.f32 0.5, %v6370_v12 }
0x2da5   :  { %v6513_v42 = vpop.f32.mrb[82].mxu0 }
0x2da6   :  { %9472 = vtanh.f32 %v6373_v5  ;;  %v6514_v40 = vadd.f32 %v6513_v42, %v6443_v6  ;;  %v8846_v37 = vpop.f32.mrb[83].mxu0 }
0x2da8   :  { %v6517_v20 = vadd.f32 %v10438_v18, %v6514_v40 }
0x2daa   :  { %v6588_v53 = vadd.f32 %v6585_v10, %v6517_v20 }
0x2dac   :  { %v6589_v56 = vmul.f32 0.5, %v6588_v53 }
0x2dae   :  { %9474 = vtanh.f32 %v6589_v56 }
0x2db0   :  { %v9473_v45 = vpop.eup %9472 }
0x2db1   :  { %v6375_v7 = vadd.f32 1.0, %v9473_v45  ;;  %v9501_v45 = vld [vmem:[%s10792_s8] ss:$0 sm:$0xff] }
0x2db3   :  { %v6376_v46 = vmul.f32 0.5, %v6375_v7 }
0x2db5   :  { %7658 = vst.msk [vmem:[%s10803_s21 + $0xc] sm:$0x3] %vm1092_vm6, %v6376_v46 }
0x2db8   :  { %v9475_v59 = vpop.eup %9474 }
0x2db9   :  { %v6591_v60 = vadd.f32 1.0, %v9475_v59 }
0x2dbb   :  { %v6592_v61 = vmul.f32 0.5, %v6591_v60 }
0x2dbd   :  { %v6597_v11 = vmul.f32 %v6595_v38, %v6592_v61  ;;  %v6604_v55 = vsub.f32 1.0, %v6592_v61  ;;  %v6610_v58 = vmul.f32 %v6592_v61, %v10573_v24  ;;  %v8873_v24 = vpop.f32.mrb[85].mxu1 }
0x2dbf   :  { %6599 = vrot.lane.b32.xlu0 %v6597_v11, %s9505_s9 }
0x2e31   :  { %v6600_v14 = vpop.permute.xlu0 %6599 }
0x2e32   :  { %v6602_v15 = vadd.f32 %v6600_v14, %v6517_v20 }
0x2e34   :  { %9476 = vtanh.f32 %v6602_v15 }
0x2e3e   :  { %v9477_v3 = vpop.eup %9476 }
0x2e3f   :  { %6606 = vrot.lane.b32.xlu1 %v9477_v3, %s9506_s13 }
0x2eb1   :  { %v6607_v25 = vpop.permute.xlu1 %6606 }
0x2eb2   :  { %v6609_v26 = vmul.f32 %v6607_v25, %v6604_v55 }
0x2eb4   :  { %v10685_v27 = vadd.f32 %v6610_v58, %v6609_v26 }
0x2eb6   :  { %6619 = vrot.lane.b32.xlu0 %v10685_v27, %s9506_s13 }
0x2f28   :  { %v10689_v19 = vpop.permute.xlu0 %6619 }
0x2f29   :  { %8867 = vmatmul.mubr.msk.f32.vlgmr.msra.gmra.mrb[84].mxu0 %vm120_vm1, %v10689_v19 }
0x2f2a   :  { %9356 = vmatpush3.bf16.msra.mxu0 %v9680_v13  ;;  %8882 = vmatprep.mubr.msk.f32.mxu0 %vm9503_vm0, %v9504_v4 }
0x2f2b   :  { %9357 = vmatprep.subr.bf16.mxu0 %v9502_v0 }
0x2f2e   :  { %9359 = vmatpush3.bf16.msra.mxu0 %v9690_v16 }
0x2f2f   :  { %9366 = vmatprep.subr.bf16.mxu0 %v9502_v0 }
0x2ffc   :  { %v6689_v39 = vpop.f32.mrb[84].mxu0 }
0x2ffd   :  { %v6763_v62 = vadd.f32 %v6762_v34, %v6689_v39  ;;  %v8868_v31 = vpop.f32.mrb[85].mxu0 }
0x2fff   :  { %v6766_v21 = vadd.f32 %v9499_v51, %v6763_v62 }
0x3001   :  { %v6767_v13 = vmax.f32 %v6766_v21, 0.0 }
0x3003   :  { %8883 = vmatmul.mubr.msk.f32.vlgmr.msra.gmra.mrb[86].mxu0 %vm120_vm1, %v6767_v13 }
0x3004   :  { %9368 = vmatpush3.bf16.msra.mxu0 %v9716_v29  ;;  %8904 = vmatprep.mubr.msk.f32.mxu0 %vm9503_vm0, %v9504_v4 }
0x3005   :  { %9369 = vmatprep.subr.bf16.mxu0 %v9502_v0 }
0x3008   :  { %9371 = vmatpush3.bf16.msra.mxu0 %v9737_v36 }
0x3009   :  { %9378 = vmatprep.subr.bf16.mxu0 %v9502_v0 }
0x30d6   :  { %v6837_v16 = vpop.f32.mrb[86].mxu0 }
0x30d7   :  { %v6838_v6 = vadd.f32 %v9500_v1, %v6837_v16  ;;  %v8884_v22 = vpop.f32.mrb[87].mxu0 }
0x30d9   :  { %v6841_v33 = vmax.f32 %v6838_v6, 0.0 }
0x30db   :  { %8894 = vmatmul.mubr.msk.f32.vlgmr.msra.gmra.mrb[86].mxu1 %vm120_vm1, %v6841_v33  ;;  %8905 = vmatmul.mubr.msk.f32.vlgmr.msra.gmra.mrb[88].mxu0 %vm120_vm1, %v6841_v33 }
0x30dc   :  { %9374 = vmatpush3.bf16.msra.mxu1 %v9761_v44  ;;  %8915 = vmatprep.mubr.msk.f32.mxu1 %vm9503_vm0, %v9504_v4 }
0x30dd   :  { %9375 = vmatprep.subr.bf16.mxu1 %v9502_v0  ;;  %9380 = vmatpush3.bf16.msra.mxu0 %v9779_v50 }
0x30de   :  { %8922 = vmatprep.mubr.msk.f32.mxu0 %vm9503_vm0, %v9504_v4  ;;  %9387 = vmatprep.subr.bf16.mxu0 %v9502_v0 }
0x30e0   :  { %9377 = vmatpush3.bf16.msra.mxu1 %v9771_v47 }
0x30e1   :  { %9381 = vmatprep.subr.bf16.mxu1 %v9502_v0 }
0x30e3   :  { %8916 = vmatmul.mubr.msk.f32.vlgmr.msra.gmra.mrb[88].mxu1 %vm120_vm1, %v10689_v19 }
0x30e4   :  { %9383 = vmatpush3.bf16.msra.mxu1 %v9813_v23  ;;  %8933 = vmatprep.mubr.msk.f32.mxu1 %vm9503_vm0, %v9504_v4 }
0x30e5   :  { %9384 = vmatprep.subr.bf16.mxu1 %v9502_v0 }
0x30e8   :  { %9386 = vmatpush3.bf16.msra.mxu1 %v9823_v28 }
0x30e9   :  { %9393 = vmatprep.subr.bf16.mxu1 %v9502_v0 }
0x31ae   :  { %v6911_v29 = vpop.f32.mrb[86].mxu1  ;;  %v6981_v36 = vpop.f32.mrb[88].mxu0 }
0x31af   :  { %v6982_v44 = vadd.f32 %v10360_v35, %v6981_v36  ;;  %v8895_v47 = vpop.f32.mrb[87].mxu1  ;;  %v8906_v50 = vpop.f32.mrb[89].mxu0  ;;  %v7660_v35 = vld [vmem:[%s10793_s1 + $0xe] sm:$0x3]  ;;  %v6912_v7 = vadd.f32 %v9501_v45, %v6911_v29 }
0x31b1   :  { %v6986_v10 = vmin.f32 %v6982_v44, 20.0  ;;  %vm6985_vm9 = vcmp.gt.f32.partialorder %v6982_v44, 20.0 }
0x31b3   :  { %v6987_v48 = vmul.f32 1.442695, %v6986_v10 }
0x31b5   :  { %9478 = vpow2.f32 %v6987_v48 }
0x31b6   :  { %v7067_v30 = vpop.f32.mrb[88].mxu1 }
0x31b7   :  { %v8917_v23 = vpop.f32.mrb[89].mxu1 }
0x31bf   :  { %v9479_v12 = vpop.eup %9478 }
0x31c0   :  { %v6989_v41 = vadd.f32 1.0, %v9479_v12  ;;  %v6992_v5 = vmul.f32 -0.5, %v9479_v12  ;;  %v6995_v40 = vand.u32 2147483647, %v9479_v12 }
0x31c2   :  { %9480 = vlog2.f32 %v6989_v41  ;;  %v6993_v42 = vadd.f32 1.0, %v6992_v5  ;;  %vm6996_vm8 = vcmp.lt.f32.partialorder %v6995_v40, 0.0004427343 }
0x31c4   :  { %v6994_v20 = vmul.f32 %v9479_v12, %v6993_v42 }
0x31cc   :  { %v9481_v28 = vpop.eup %9480 }
0x31cd   :  { %v6991_v37 = vmul.f32 0.6931472, %v9481_v28 }
0x31cf   :  { %v6997_v53 = vsel %vm6996_vm8, %v6994_v20, %v6991_v37 }
0x31d0   :  { %v6998_v56 = vsel %vm6985_vm9, %v6982_v44, %v6997_v53 }
0x31d1   :  { %v6999_v46 = vmul.f32 %v7660_v35, %v6998_v56 }
0x31d3   :  { %v7000_v59 = vadd.f32 %v6999_v46, %v6912_v7 }
0x31d5   :  { %8923 = vmatmul.mubr.msk.f32.vlgmr.msra.gmra.mrb[90].mxu0 %vm597_vm5, %v7000_v59 }
0x31d6   :  { %9389 = vmatpush3.bf16.msra.mxu0 %v9833_v32  ;;  %8944 = vmatprep.mubr.msk.f32.mxu0 %vm9503_vm0, %v9504_v4 }
0x31d7   :  { %9390 = vmatprep.subr.bf16.mxu0 %v9502_v0 }
0x31da   :  { %9392 = vmatpush3.bf16.msra.mxu0 %v9891_v57 }
0x31db   :  { %8954 = vmatprep.subr.mxu0 %v9504_v4 }
0x32a8   :  { %v7140_v60 = vpop.f32.mrb[90].mxu0 }
0x32a9   :  { %v7141_v61 = vadd.f32 %v7140_v60, %v7067_v30  ;;  %v8924_v38 = vpop.f32.mrb[91].mxu0 }
0x32ab   :  { %v7144_v11 = vadd.f32 %v10377_v9, %v7141_v61 }
0x32ad   :  { %v7145_v14 = vmax.f32 %v7144_v11, 0.0 }
0x32af   :  { %8934 = vmatmul.mubr.msk.f32.vlgmr.msra.gmra.mrb[90].mxu1 %vm120_vm1, %v7145_v14 }
0x32b0   :  { %9395 = vmatpush3.bf16.msra.mxu1 %v9849_v43  ;;  %8951 = vmatprep.mubr.msk.f32.mxu1 %vm9503_vm0, %v9504_v4 }
0x32b1   :  { %9396 = vmatprep.subr.bf16.mxu1 %v9502_v0 }
0x32b3   :  { %8952 = vmatmul.mubr.msk.f32.vlgmr.msra.gmra.mrb[92].mxu1 %vm597_vm5, %v7000_v59 }
0x32b4   :  { %9398 = vmatpush3.bf16.msra.mxu1 %v9861_v49  ;;  %8967 = vmatprep.mubr.msk.f32.mxu1 %vm9503_vm0, %v9504_v4 }
0x32b5   :  { %9399 = vmatprep.subr.bf16.mxu1 %v9502_v0 }
0x32b8   :  { %9401 = vmatpush3.bf16.msra.mxu1 %v9872_v54 }
0x32bb   :  { %8968 = vmatmul.mubr.msk.f32.vlgmr.msra.gmra.mrb[94].mxu1 %vm120_vm1, %v10689_v19 }
0x3382   :  { %v7215_v32 = vpop.f32.mrb[90].mxu1 }
0x3383   :  { %v7216_v43 = vadd.f32 %v10401_v52, %v7215_v32  ;;  %v8935_v57 = vpop.f32.mrb[91].mxu1 }
0x3385   :  { %v7219_v9 = vmax.f32 %v7216_v43, 0.0 }
0x3386   :  { %v7363_v15 = vpop.f32.mrb[92].mxu1 }
0x3387   :  { %8945 = vmatmul.mubr.msk.f32.vlgmr.msra.gmra.mrb[92].mxu0 %vm120_vm1, %v7219_v9  ;;  %v8953_v3 = vpop.f32.mrb[93].mxu1 }
0x3388   :  { %8955 = vmatpush3.msra.mxu0 %v10408_v8  ;;  %8956 = vmatprep.mubr.msk.f32.mxu0 %vm9503_vm0, %v9504_v4  ;;  %vm7538_vm0 = vcmask 254976  }
0x338b   :  { %8957 = vmatmul.mubr.msk.f32.vlgmr.msra.gmra.mrb[94].mxu0 %vm194_vm2, %v10674_v17 }
0x338e   :  { %v7504_v0 = vpop.f32.mrb[94].mxu1 }
0x338f   :  { %v7505_v49 = vadd.f32 %v10423_v63, %v7504_v0  ;;  %v8969_v54 = vpop.f32.mrb[95].mxu1 }
0x3391   :  { %7514 = vrot.lane.b32.xlu1 %v7505_v49, %s9505_s9 }
0x3403   :  { %v7515_v51 = vpop.permute.xlu1 %7514 }
0x345a   :  { %v7289_v52 = vpop.f32.mrb[92].mxu0 }
0x345b   :  { %v7290_v55 = vadd.f32 %v10432_v2, %v7289_v52  ;;  %v8946_v25 = vpop.f32.mrb[93].mxu0 }
0x345d   :  { %v7293_v58 = vmul.f32 0.5, %v7290_v55 }
0x345e   :  { %v7433_v26 = vpop.f32.mrb[94].mxu0 }
0x345f   :  { %9482 = vtanh.f32 %v7293_v58  ;;  %v7434_v8 = vadd.f32 %v7433_v26, %v7363_v15  ;;  %v8958_v19 = vpop.f32.mrb[95].mxu0 }
0x3461   :  { %v7437_v4 = vadd.f32 %v10438_v18, %v7434_v8 }
0x3463   :  { %v7508_v34 = vadd.f32 %v7505_v49, %v7437_v4 }
0x3465   :  { %v7509_v24 = vmul.f32 0.5, %v7508_v34 }
0x3467   :  { %9484 = vtanh.f32 %v7509_v24 }
0x3469   :  { %v9483_v17 = vpop.eup %9482 }
0x346a   :  { %v7295_v39 = vadd.f32 1.0, %v9483_v17 }
0x346c   :  { %v7296_v63 = vmul.f32 0.5, %v7295_v39 }
0x346e   :  { %7673 = vst.msk [vmem:[%s10803_s21 + $0xe] sm:$0x3] %vm1092_vm6, %v7296_v63 }
0x3471   :  { %v9485_v2 = vpop.eup %9484 }
0x3472   :  { %v7511_v62 = vadd.f32 1.0, %v9485_v2 }
0x3474   :  { %v7512_v31 = vmul.f32 0.5, %v7511_v62 }
0x3476   :  { %v7517_v21 = vmul.f32 %v7515_v51, %v7512_v31  ;;  %v7524_v1 = vsub.f32 1.0, %v7512_v31  ;;  %v7530_v22 = vmul.f32 %v7512_v31, %v10685_v27 }
0x3478   :  { %7519 = vrot.lane.b32.xlu0 %v7517_v21, %s9505_s9 }
0x34ea   :  { %v7520_v13 = vpop.permute.xlu0 %7519 }
0x34eb   :  { %v7522_v18 = vadd.f32 %v7520_v13, %v7437_v4 }
0x34ed   :  { %9486 = vtanh.f32 %v7522_v18 }
0x34f7   :  { %v9487_v16 = vpop.eup %9486 }
0x34f8   :  { %7526 = vrot.lane.b32.xlu1 %v9487_v16, %s9506_s13 }
0x356a   :  { %v7527_v6 = vpop.permute.xlu1 %7526 }
0x356b   :  { %v7529_v33 = vmul.f32 %v7527_v6, %v7524_v1 }
0x356d   :  { %v7531_v29 = vadd.f32 %v7530_v22, %v7529_v33 }
0x356f   :  { %7535 = vrot.lane.b32.xlu0 %v7531_v29, %s9506_s13 }
0x35e1   :  { %v7536_v36 = vpop.permute.xlu0 %7535 }
0x35e2   :  { %7539 = vst.msk [vmem:[%s10804_s22] sm:$0x3] %vm7538_vm0, %v7536_v36 }

</bundles_post_ra>
